<compile_context>
chip_gen: v6e
topology: v6e:2x2x1
jax: 0.10.0
libtpu: 0.0.40
codegen_flags: <defaults>
</compile_context>

<pallas_src>
import jax
import jax.numpy as jnp
from jax import lax
from jax.experimental import pallas as pl
from jax.experimental.pallas import tpu as pltpu

# ----------------------------- configuration --------------------------------
NTYPES = ["A", "B"]
CANON = [("A", "aa", "A"), ("A", "ab", "B"), ("B", "ba", "A"), ("B", "bb", "B")]
ETYPES = [e for (_, e, _) in CANON]
N = 16                       # nodes per type
IN_DIM = {"A": 24, "B": 40}

HID = 8                      # hidden_dim
HEADS = 4                    # n_heads
REL_IN = 16                  # relation_input_dim (layer 0)
REL_HID = 8                  # relation_hidden_dim
NUM_LAYERS = 2
HD = HID * HEADS             # 32
RHD = REL_HID * HEADS        # 32
R = len(CANON)               # 4
RH = R * HEADS               # 16 (relation, head) pairs
LW = R * HD                  # 128 lanes of per-relation features
SW = RH * N                  # 256 lanes of per-(relation, head) scores
NEG_SLOPE = 0.2
GAIN = 1.4142135623730951    # gain('relu')

TYPE_IDX = {nt: i for i, nt in enumerate(NTYPES)}
SRC = [TYPE_IDX[s] for (s, _, _) in CANON]      # [0, 0, 1, 1]
DST = [TYPE_IDX[d] for (_, _, d) in CANON]      # [0, 1, 0, 1]
# The pltpu.roll-by-2-relations pairing trick (0<->2, 1<->3) relies on this layout:
assert SRC == [0, 0, 1, 1] and DST == [0, 1, 0, 1]

LAYER_KEYS = ["node_w", "node_b", "src_w", "src_b", "attd_w", "atts_w",
              "prop_w", "prop_b", "cross_w", "q_w", "q_b", "k_w", "k_b",
              "v_w", "v_b", "fuse_w", "alpha"]


# ------------------------------ kernel helpers -------------------------------
def _leaky(x):
    return jnp.where(x >= 0, x, NEG_SLOPE * x)


def _mm(a, b):
    # bf16 MXU operands, f32 accumulation.
    return jnp.dot(a.astype(jnp.bfloat16), b.astype(jnp.bfloat16),
                   preferred_element_type=jnp.float32)


# ------------------------------ fused kernel ---------------------------------
def _fused_kernel(x_ref, rel0_ref, adj_ref,
                  se_dst_ref, diag_sel_ref, sum_ln_ref, fs_msk_ref, exp_rhd_ref,
                  blkones_ref, dst_rep_ref, rel2typ_ref,
                  proj_w_ref, proj_b_ref,
                  node_w_ref, node_b_ref, src_w_ref, src_b_ref,
                  attd_w_ref, atts_w_ref, prop_w_ref, prop_b_ref,
                  cross_w_ref,
                  q_w_ref, q_b_ref, k_w_ref, k_b_ref, v_w_ref, v_b_ref,
                  fuse_w_ref, alpha_ref,
                  out_ref,
                  h_scr, rel_scr):
    """One grid step == one R_HGT layer.  Layer 0 also runs the input projection.
       Layouts: features (N, R*HD)=(16,128); scores (N, RH*N)=(16,256)."""
    layer = pl.program_id(0)

    # ---- layer 0: fused input projection (both ntypes) + rel-embedding init ----
    @pl.when(layer == 0)
    def _():
        y = _mm(x_ref[...], proj_w_ref[...]) + proj_b_ref[...]          # (16, 64)
        # TODO(synk): PyTorch F.gelu default is erf-exact; tanh approximation used
        # for guaranteed Mosaic lowering.
        c = 0.7978845608028654
        h_scr[...] = 0.5 * y * (1.0 + jnp.tanh(c * (y + 0.044715 * y * y * y)))
        rel_scr[...] = rel0_ref[...]

    h = h_scr[...]            # (16, 64)   [h_A | h_B]
    rel_emb = rel_scr[...]    # (1, 128)   per-relation (padded) embedding
    adj = adj_ref[...]        # (16, 256)  per-(relation, head) adjacency mask

    # 1) node transformation per dst node type (block-diag batched)
    feat_dst = _mm(h, node_w_ref[...]) + node_b_ref[...]                # (16, 64)

    # 2) relation-specific src transform (SRC gather folded into src_w) and
    #    dst-feature replication into relation layout (one selector matmul)
    fs_cat = _mm(h, src_w_ref[...]) + src_b_ref[...]                    # (16, 128)
    fd_cat = _mm(feat_dst, dst_rep_ref[...])                            # (16, 128)

    # 3) relation-conditioned attention weights
    w_dst = _mm(rel_emb, attd_w_ref[...])                               # (1, 128)
    w_src = _mm(rel_emb, atts_w_ref[...])                               # (1, 128)

    # 4) relation-aware GAT: 4 relations x 4 heads in one (16, 256) score tile
    e_dst = _mm(fd_cat * w_dst, se_dst_ref[...])                        # (16, 256)
    e_src_bc = _mm(fs_cat * w_src, se_dst_ref[...])                     # (16_src, 256)
    e_src_row = jnp.sum(e_src_bc * diag_sel_ref[...], axis=0,
                        keepdims=True)                                  # (1, 256)
    s = _leaky(e_dst + e_src_row)
    s = jnp.where(adj > 0, s, -1e30)
    m = jnp.max(s, axis=-1, keepdims=True)          # per-row max (shift-invariant per group)
    p = jnp.exp(s - m) * adj                                            # (16, 256)
    denom = _mm(p, sum_ln_ref[...])                                     # (16, 16)
    inv = pl.reciprocal(jnp.maximum(denom, 1e-9), approx=True)
    fs_bd = jnp.tile(fs_cat.astype(jnp.bfloat16), (RH, 1)) * fs_msk_ref[...]   # (256,128) bf16
    gat_un = _mm(p, fs_bd)                                              # (16, 128)
    inv_feat = _mm(inv, exp_rhd_ref[...])                               # (16, 128)
    gat_cat = jnp.maximum(gat_un, 0.0) * inv_feat                       # (16, 128)

    # 5) relation crossing: softmax over the 2 relations sharing each dst ntype,
    #    done pairwise with a single lane roll (relation r <-> partner r+2 mod 4)
    gat_par = pltpu.roll(gat_cat, shift=2 * HD, axis=1)                 # partner features
    cw = cross_w_ref[...]                                               # (1, 128)
    ss = _leaky(_mm(gat_cat * cw, blkones_ref[...]))                    # self-member score
    so = _leaky(_mm(gat_par * cw, blkones_ref[...]))                    # partner-member score
    mx = jnp.maximum(ss, so)
    ps = jnp.exp(ss - mx)
    po = jnp.exp(so - mx)
    invc = pl.reciprocal(ps + po, approx=True)
    cross_cat = (ps * gat_cat + po * gat_par) * invc                    # (16, 128)

    # 6) relation propagation -> next layer's relation embedding
    rel_new = _mm(rel_emb, prop_w_ref[...]) + prop_b_ref[...]           # (1, 128)
    rel_scr[...] = rel_new

    # 7) relation fusing per dst ntype (attention over relations + gated residual)
    q_rel = _mm(feat_dst, q_w_ref[...]) + q_b_ref[...]                  # (16, 128)
    k_cat = _mm(cross_cat, k_w_ref[...]) + k_b_ref[...]                 # (16, 128)
    v_cat = _mm(cross_cat, v_w_ref[...]) + v_b_ref[...]                 # (16, 128)
    relp = _mm(rel_new, fuse_w_ref[...])                                # (1, 128)
    prod = q_rel * (k_cat + relp)
    scale = 1.0 / (HID ** 0.5)
    scf = _leaky(_mm(prod, blkones_ref[...]) * scale)                   # (16, 128)
    scp = pltpu.roll(scf, shift=2 * HD, axis=1)
    mxf = jnp.maximum(scf, scp)
    pf = jnp.exp(scf - mxf)
    pp = pltpu.roll(pf, shift=2 * HD, axis=1)
    invf = pl.reciprocal(pf + pp, approx=True)
    fused_rel = (pf * invf) * v_cat                                     # (16, 128)
    fused = _mm(fused_rel, rel2typ_ref[...])                            # (16, 64)
    alpha = alpha_ref[...]                                              # (1, 64)
    h_new = alpha * fused + (1.0 - alpha) * feat_dst                    # (16, 64)
    h_scr[...] = h_new

    # lane-dense 128-wide writeback (only the last grid step reaches HBM)
    out_ref[...] = jnp.concatenate([h_new, jnp.zeros_like(h_new)], axis=1)


# ------------------------------ pallas wrapper --------------------------------
def cr_hgn_forward(params, x_cat, adj_exp):
    consts = params["consts"]

    def spec_const(a):
        nd = a.ndim
        return pl.BlockSpec(a.shape, lambda l, _nd=nd: (0,) * _nd)

    def spec_layer(a):
        blk = (None,) + a.shape[1:]
        nd = a.ndim - 1
        return pl.BlockSpec(blk, lambda l, _nd=nd: (l,) + (0,) * _nd)

    const_inputs = [x_cat, params["rel0"], adj_exp,
                    consts["se_dst"], consts["diag_sel"], consts["sum_ln"],
                    consts["fs_msk"], consts["exp_rhd"], consts["blkones"],
                    consts["dst_rep"], consts["rel2typ"],
                    params["proj_w"], params["proj_b"]]
    layer_inputs = [params[k] for k in LAYER_KEYS]

    out = pl.pallas_call(
        _fused_kernel,
        grid=(NUM_LAYERS,),
        in_specs=[spec_const(a) for a in const_inputs]
                 + [spec_layer(a) for a in layer_inputs],
        out_specs=pl.BlockSpec((N, LW), lambda l: (0, 0)),
        out_shape=jax.ShapeDtypeStruct((N, LW), jnp.float32),
        scratch_shapes=[pltpu.VMEM((N, 2 * HD), jnp.float32),     # h carry
                        pltpu.VMEM((1, R * RHD), jnp.float32)],   # rel-emb carry
        compiler_params=pltpu.CompilerParams(
            dimension_semantics=("arbitrary",)),   # sequential layer carry
    )(*const_inputs, *layer_inputs)
    return {"A": out[:, :HD], "B": out[:, HD:2 * HD]}


# --------------------------- parameter construction ---------------------------
class KeyGen:
    def __init__(self, seed):
        self.key = jax.random.PRNGKey(seed)
        self.i = 0

    def __call__(self):
        self.i += 1
        return jax.random.fold_in(self.key, self.i)


def xavier(key, shape, gain=1.0):
    fan_in = shape[-1]
    fan_out = shape[-2] if len(shape) > 1 else shape[-1]
    std = gain * (2.0 / (fan_in + fan_out)) ** 0.5
    return std * jax.random.normal(key, shape, dtype=jnp.float32)


def _block_diag(mats):
    rows = sum(m.shape[0] for m in mats)
    cols = sum(m.shape[1] for m in mats)
    out = jnp.zeros((rows, cols), jnp.float32)
    r = c = 0
    for m in mats:
        out = out.at[r:r + m.shape[0], c:c + m.shape[1]].set(m)
        r += m.shape[0]
        c += m.shape[1]
    return out


def _pad_rows(w, rows):
    pad = rows - w.shape[0]
    if pad > 0:
        w = jnp.concatenate([w, jnp.zeros((pad, w.shape[1]), jnp.float32)], axis=0)
    return w


def _selector_constants():
    f32 = jnp.float32
    feat = jnp.arange(LW)                 # 128 feature lanes  (r, h, d)
    col = jnp.arange(SW)                  # 256 score lanes    (r, h, j)
    rh_feat = feat // HID
    rh_col = col // N
    j_col = col % N
    rh = jnp.arange(RH)
    nodes = jnp.arange(N)
    rows64 = jnp.arange(2 * HD)

    se_dst = (rh_feat[:, None] == rh_col[None, :]).astype(f32)        # (128, 256)
    diag_sel = (nodes[:, None] == j_col[None, :]).astype(f32)         # (16, 256)
    sum_ln = (rh_col[:, None] == rh[None, :]).astype(f32)             # (256, 16)
    fs_msk = (rh_col[:, None] == rh_feat[None, :]).astype(f32)        # (256, 128)
    exp_rhd = (rh[:, None] == rh_feat[None, :]).astype(f32)           # (16, 128)
    blkones = (rh_feat[:, None] == rh_feat[None, :]).astype(f32)      # (128, 128)

    dst_arr = jnp.array(DST)
    t_row = rows64 // HD
    k_row = rows64 % HD
    r_colf = feat // HD
    k_colf = feat % HD
    dst_rep = ((dst_arr[r_colf][None, :] == t_row[:, None])
               & (k_colf[None, :] == k_row[:, None])).astype(f32)     # (64, 128)
    rel2typ = dst_rep.T                                               # (128, 64)
    return dict(se_dst=se_dst, diag_sel=diag_sel, sum_ln=sum_ln, fs_msk=fs_msk,
                exp_rhd=exp_rhd, blkones=blkones, dst_rep=dst_rep, rel2typ=rel2typ)


def build_params(seed=42):
    f32, bf16 = jnp.float32, jnp.bfloat16
    kg = KeyGen(seed)

    # input projection: both ntypes folded into one block matrix
    wa = xavier(kg(), (IN_DIM["A"], HD), GAIN)
    wb = xavier(kg(), (IN_DIM["B"], HD), GAIN)
    proj_w = jnp.zeros((IN_DIM["A"] + IN_DIM["B"], 2 * HD), f32)
    proj_w = proj_w.at[:IN_DIM["A"], :HD].set(wa)
    proj_w = proj_w.at[IN_DIM["A"]:, HD:].set(wb)
    proj_b = jnp.zeros((1, 2 * HD), f32)

    # initial relation embeddings, zero-padded from REL_IN=16 to RHD=32 per relation
    rel0 = jnp.zeros((1, R * RHD), f32)
    for r in range(R):
        v = xavier(kg(), (REL_IN, 1), GAIN).reshape(1, REL_IN)
        rel0 = rel0.at[:, r * RHD: r * RHD + REL_IN].set(v)

    consts_f32 = _selector_constants()
    dst_rep_f32 = consts_f32["dst_rep"]

    stacks = {k: [] for k in LAYER_KEYS}
    for layer_idx in range(NUM_LAYERS):
        rel_in = REL_IN if layer_idx == 0 else RHD
        node_w = _block_diag([xavier(kg(), (HD, HD), GAIN) for _ in NTYPES])   # (64, 64)
        node_b = jnp.zeros((1, 2 * HD), f32)

        # relation-specific src transform with the SRC gather folded in -> (64, 128)
        src_w = jnp.zeros((2 * HD, R * HD), f32)
        for r in range(R):
            w_r = xavier(kg(), (HD, HD), 1.0)
            src_w = src_w.at[SRC[r] * HD:(SRC[r] + 1) * HD,
                             r * HD:(r + 1) * HD].set(w_r)
        src_b = jnp.zeros((1, R * HD), f32)

        cols_dst = jnp.array([hh * 2 * HID + d for hh in range(HEADS) for d in range(HID)])
        cols_src = jnp.array([hh * 2 * HID + HID + d for hh in range(HEADS) for d in range(HID)])
        attd, atts, prop = [], [], []
        for _ in ETYPES:
            w = xavier(kg(), (rel_in, HEADS * 2 * HID), GAIN)
            attd.append(_pad_rows(w[:, cols_dst], RHD))
            atts.append(_pad_rows(w[:, cols_src], RHD))
        for _ in ETYPES:
            prop.append(_pad_rows(xavier(kg(), (rel_in, RHD), GAIN), RHD))
        attd_w = _block_diag(attd)                                             # (128, 128)
        atts_w = _block_diag(atts)
        prop_w = _block_diag(prop)
        prop_b = jnp.zeros((1, R * RHD), f32)

        cross_w = jnp.concatenate(
            [xavier(kg(), (HEADS, HID), GAIN).reshape(1, HD) for _ in ETYPES], axis=1)  # (1,128)

        q_w = _block_diag([xavier(kg(), (HD, HD), GAIN) for _ in NTYPES]) @ dst_rep_f32  # (64,128)
        q_b = jnp.zeros((1, R * HD), f32)
        k_w = _block_diag([xavier(kg(), (HD, HD), GAIN) for _ in ETYPES])      # (128, 128)
        k_b = jnp.zeros((1, R * HD), f32)
        v_w = _block_diag([xavier(kg(), (HD, HD), GAIN) for _ in ETYPES])
        v_b = jnp.zeros((1, R * HD), f32)

        fuse_blocks = []
        for _ in ETYPES:
            fw = xavier(kg(), (HEADS, REL_HID, HID), GAIN)
            fuse_blocks.append(_block_diag([fw[hh] for hh in range(HEADS)]))   # (32, 32)
        fuse_w = _block_diag(fuse_blocks)                                      # (128, 128)

        alpha = jnp.concatenate(
            [jnp.broadcast_to(jax.nn.sigmoid(jax.random.normal(kg(), (1,), f32)), (HD,))
             for _ in NTYPES]).reshape(1, 2 * HD)

        for k, v in dict(node_w=node_w, node_b=node_b, src_w=src_w, src_b=src_b,
                         attd_w=attd_w, atts_w=atts_w, prop_w=prop_w, prop_b=prop_b,
                         cross_w=cross_w, q_w=q_w, q_b=q_b, k_w=k_w, k_b=k_b,
                         v_w=v_w, v_b=v_b, fuse_w=fuse_w, alpha=alpha).items():
            stacks[k].append(v)

    bf16_keys = {"node_w", "src_w", "attd_w", "atts_w", "prop_w",
                 "q_w", "k_w", "v_w", "fuse_w"}
    params = {}
    for k, vs in stacks.items():
        arr = jnp.stack(vs, axis=0)
        params[k] = arr.astype(bf16) if k in bf16_keys else arr

    params["proj_w"] = proj_w.astype(bf16)
    params["proj_b"] = proj_b
    params["rel0"] = rel0
    params["consts"] = {
        "se_dst": consts_f32["se_dst"].astype(bf16),
        "diag_sel": consts_f32["diag_sel"],            # f32: elementwise mask
        "sum_ln": consts_f32["sum_ln"].astype(bf16),
        "fs_msk": consts_f32["fs_msk"].astype(bf16),
        "exp_rhd": consts_f32["exp_rhd"].astype(bf16),
        "blkones": consts_f32["blkones"].astype(bf16),
        "dst_rep": consts_f32["dst_rep"].astype(bf16),
        "rel2typ": consts_f32["rel2typ"].astype(bf16),
    }
    return params


# ----------------------------------- main --------------------------------------
if __name__ == "__main__":
    key = jax.random.PRNGKey(0)
    k_feat, k_adj = jax.random.split(key)

    # node features per type, lane-concatenated into one (16, 64) tile
    feats = {}
    for i, nt in enumerate(NTYPES):
        feats[nt] = jax.random.normal(jax.random.fold_in(k_feat, i),
                                      (N, IN_DIM[nt]), dtype=jnp.float32)
    x_cat = jnp.concatenate([feats["A"], feats["B"]], axis=1)          # (16, 64)

    # dense adjacency masks per canonical etype (dst x src), each dst has >= 1 neighbor,
    # head-expanded + lane-concatenated to one (N, R*HEADS*N) = (16, 256) tile
    adj_blocks = []
    for i in range(R):
        base = (jax.random.uniform(jax.random.fold_in(k_adj, i), (N, N)) < 0.35)
        base = base.astype(jnp.float32)
        base = base.at[jnp.arange(N), jnp.arange(N)].set(1.0)
        adj_blocks.append(jnp.tile(base, (1, HEADS)))
    adj_exp = jnp.concatenate(adj_blocks, axis=1)                      # (16, 256)

    params = build_params(seed=42)

    out = jax.jit(cr_hgn_forward)(params, x_cat, adj_exp)
    out = jax.block_until_ready(out)

    for nt in NTYPES:
        assert out[nt].shape == (N, HD)
        assert bool(jnp.all(jnp.isfinite(out[nt])))
    print("KERNEL_OK")
</pallas_src>

<mosaic_0001>
module attributes {stable_mosaic.version = 11 : i64} {
  func.func @_fused_kernel(%arg0: i32, %arg1: memref<16x64xf32, #tpu.memory_space<vmem>>, %arg2: memref<1x128xf32, #tpu.memory_space<vmem>>, %arg3: memref<16x256xf32, #tpu.memory_space<vmem>>, %arg4: memref<128x256xbf16, #tpu.memory_space<vmem>>, %arg5: memref<16x256xf32, #tpu.memory_space<vmem>>, %arg6: memref<256x16xbf16, #tpu.memory_space<vmem>>, %arg7: memref<256x128xbf16, #tpu.memory_space<vmem>>, %arg8: memref<16x128xbf16, #tpu.memory_space<vmem>>, %arg9: memref<128x128xbf16, #tpu.memory_space<vmem>>, %arg10: memref<64x128xbf16, #tpu.memory_space<vmem>>, %arg11: memref<128x64xbf16, #tpu.memory_space<vmem>>, %arg12: memref<64x64xbf16, #tpu.memory_space<vmem>>, %arg13: memref<1x64xf32, #tpu.memory_space<vmem>>, %arg14: memref<1x64x64xbf16, #tpu.memory_space<vmem>>, %arg15: memref<1x1x64xf32, #tpu.memory_space<vmem>>, %arg16: memref<1x64x128xbf16, #tpu.memory_space<vmem>>, %arg17: memref<1x1x128xf32, #tpu.memory_space<vmem>>, %arg18: memref<1x128x128xbf16, #tpu.memory_space<vmem>>, %arg19: memref<1x128x128xbf16, #tpu.memory_space<vmem>>, %arg20: memref<1x128x128xbf16, #tpu.memory_space<vmem>>, %arg21: memref<1x1x128xf32, #tpu.memory_space<vmem>>, %arg22: memref<1x1x128xf32, #tpu.memory_space<vmem>>, %arg23: memref<1x64x128xbf16, #tpu.memory_space<vmem>>, %arg24: memref<1x1x128xf32, #tpu.memory_space<vmem>>, %arg25: memref<1x128x128xbf16, #tpu.memory_space<vmem>>, %arg26: memref<1x1x128xf32, #tpu.memory_space<vmem>>, %arg27: memref<1x128x128xbf16, #tpu.memory_space<vmem>>, %arg28: memref<1x1x128xf32, #tpu.memory_space<vmem>>, %arg29: memref<1x128x128xbf16, #tpu.memory_space<vmem>>, %arg30: memref<1x1x64xf32, #tpu.memory_space<vmem>>, %arg31: memref<16x128xf32, #tpu.memory_space<vmem>>, %arg32: memref<16x64xf32, #tpu.memory_space<vmem>>, %arg33: memref<1x128xf32, #tpu.memory_space<vmem>>) attributes {dimension_semantics = [#tpu.dimension_semantics<arbitrary>], iteration_bounds = array<i64: 2>, scalar_prefetch = 0 : i64, scratch_operands = 2 : i64, tpu.core_type = #tpu.core_type<tc>, window_params = [{pipeline_mode = #tpu.pipeline_mode<synchronous>, transform_indices = @transform_0, window_bounds = array<i64: 16, 64>}, {pipeline_mode = #tpu.pipeline_mode<synchronous>, transform_indices = @transform_1, window_bounds = array<i64: 1, 128>}, {pipeline_mode = #tpu.pipeline_mode<synchronous>, transform_indices = @transform_2, window_bounds = array<i64: 16, 256>}, {pipeline_mode = #tpu.pipeline_mode<synchronous>, transform_indices = @transform_3, window_bounds = array<i64: 128, 256>}, {pipeline_mode = #tpu.pipeline_mode<synchronous>, transform_indices = @transform_4, window_bounds = array<i64: 16, 256>}, {pipeline_mode = #tpu.pipeline_mode<synchronous>, transform_indices = @transform_5, window_bounds = array<i64: 256, 16>}, {pipeline_mode = #tpu.pipeline_mode<synchronous>, transform_indices = @transform_6, window_bounds = array<i64: 256, 128>}, {pipeline_mode = #tpu.pipeline_mode<synchronous>, transform_indices = @transform_7, window_bounds = array<i64: 16, 128>}, {pipeline_mode = #tpu.pipeline_mode<synchronous>, transform_indices = @transform_8, window_bounds = array<i64: 128, 128>}, {pipeline_mode = #tpu.pipeline_mode<synchronous>, transform_indices = @transform_9, window_bounds = array<i64: 64, 128>}, {pipeline_mode = #tpu.pipeline_mode<synchronous>, transform_indices = @transform_10, window_bounds = array<i64: 128, 64>}, {pipeline_mode = #tpu.pipeline_mode<synchronous>, transform_indices = @transform_11, window_bounds = array<i64: 64, 64>}, {pipeline_mode = #tpu.pipeline_mode<synchronous>, transform_indices = @transform_12, window_bounds = array<i64: 1, 64>}, {transform_indices = @transform_13, window_bounds = array<i64: 1, 64, 64>}, {transform_indices = @transform_14, window_bounds = array<i64: 1, 1, 64>}, {transform_indices = @transform_15, window_bounds = array<i64: 1, 64, 128>}, {transform_indices = @transform_16, window_bounds = array<i64: 1, 1, 128>}, {transform_indices = @transform_17, window_bounds = array<i64: 1, 128, 128>}, {transform_indices = @transform_18, window_bounds = array<i64: 1, 128, 128>}, {transform_indices = @transform_19, window_bounds = array<i64: 1, 128, 128>}, {transform_indices = @transform_20, window_bounds = array<i64: 1, 1, 128>}, {transform_indices = @transform_21, window_bounds = array<i64: 1, 1, 128>}, {transform_indices = @transform_22, window_bounds = array<i64: 1, 64, 128>}, {transform_indices = @transform_23, window_bounds = array<i64: 1, 1, 128>}, {transform_indices = @transform_24, window_bounds = array<i64: 1, 128, 128>}, {transform_indices = @transform_25, window_bounds = array<i64: 1, 1, 128>}, {transform_indices = @transform_26, window_bounds = array<i64: 1, 128, 128>}, {transform_indices = @transform_27, window_bounds = array<i64: 1, 1, 128>}, {transform_indices = @transform_28, window_bounds = array<i64: 1, 128, 128>}, {transform_indices = @transform_29, window_bounds = array<i64: 1, 1, 64>}, {pipeline_mode = #tpu.pipeline_mode<synchronous>, transform_indices = @transform_30, window_bounds = array<i64: 16, 128>}]} {
    %c0_i32 = arith.constant 0 : i32
    %0 = arith.cmpi eq, %arg0, %c0_i32 : i32
    %1 = arith.extui %0 : i1 to i32
    %c0_i32_0 = arith.constant 0 : i32
    %2 = arith.cmpi ne, %1, %c0_i32_0 : i32
    scf.if %2 {
      %c0_122 = arith.constant 0 : index
      %c0_123 = arith.constant 0 : index
      %190 = vector.load %arg1[%c0_122, %c0_123] : memref<16x64xf32, #tpu.memory_space<vmem>>, vector<16x64xf32>
      %c0_124 = arith.constant 0 : index
      %c0_125 = arith.constant 0 : index
      %191 = vector.load %arg12[%c0_124, %c0_125] : memref<64x64xbf16, #tpu.memory_space<vmem>>, vector<64x64xbf16>
      %192 = arith.truncf %190 : vector<16x64xf32> to vector<16x64xbf16>
      %cst_126 = arith.constant dense<0.000000e+00> : vector<16x64xf32>
      %193 = tpu.matmul %192, %191, %cst_126 {dimension_numbers = #tpu.dot_dimension_numbers<[1], [0], [0], [1], [0, 0, 1, 1], [], []>} : vector<16x64xbf16>, vector<64x64xbf16>, vector<16x64xf32> -> vector<16x64xf32>
      %c0_127 = arith.constant 0 : index
      %c0_128 = arith.constant 0 : index
      %194 = vector.load %arg13[%c0_127, %c0_128] : memref<1x64xf32, #tpu.memory_space<vmem>>, vector<1x64xf32>
      %195 = vector.broadcast %194 : vector<1x64xf32> to vector<16x64xf32>
      %196 = arith.addf %193, %195 : vector<16x64xf32>
      %cst_129 = arith.constant 5.000000e-01 : f32
      %197 = vector.broadcast %cst_129 : f32 to vector<16x64xf32>
      %198 = arith.mulf %197, %196 : vector<16x64xf32>
      %cst_130 = arith.constant 4.471500e-02 : f32
      %199 = vector.broadcast %cst_130 : f32 to vector<16x64xf32>
      %200 = arith.mulf %199, %196 : vector<16x64xf32>
      %201 = arith.mulf %200, %196 : vector<16x64xf32>
      %202 = arith.mulf %201, %196 : vector<16x64xf32>
      %203 = arith.addf %196, %202 : vector<16x64xf32>
      %cst_131 = arith.constant 0.797884583 : f32
      %204 = vector.broadcast %cst_131 : f32 to vector<16x64xf32>
      %205 = arith.mulf %204, %203 : vector<16x64xf32>
      %206 = math.tanh %205 : vector<16x64xf32>
      %cst_132 = arith.constant 1.000000e+00 : f32
      %207 = vector.broadcast %cst_132 : f32 to vector<16x64xf32>
      %208 = arith.addf %207, %206 : vector<16x64xf32>
      %209 = arith.mulf %198, %208 : vector<16x64xf32>
      %c0_133 = arith.constant 0 : index
      %c0_134 = arith.constant 0 : index
      %210 = vector.load %arg32[%c0_133, %c0_134] : memref<16x64xf32, #tpu.memory_space<vmem>>, vector<16x64xf32>
      tpu.vector_store %arg32[%c0_133, %c0_134], %209 {strides = array<i32>} : memref<16x64xf32, #tpu.memory_space<vmem>>, vector<16x64xf32>,
      %c0_135 = arith.constant 0 : index
      %c0_136 = arith.constant 0 : index
      %211 = vector.load %arg2[%c0_135, %c0_136] : memref<1x128xf32, #tpu.memory_space<vmem>>, vector<1x128xf32>
      %c0_137 = arith.constant 0 : index
      %c0_138 = arith.constant 0 : index
      %212 = vector.load %arg33[%c0_137, %c0_138] : memref<1x128xf32, #tpu.memory_space<vmem>>, vector<1x128xf32>
      tpu.vector_store %arg33[%c0_137, %c0_138], %211 {strides = array<i32>} : memref<1x128xf32, #tpu.memory_space<vmem>>, vector<1x128xf32>,
    } else {
    }
    %c0 = arith.constant 0 : index
    %c0_1 = arith.constant 0 : index
    %3 = vector.load %arg32[%c0, %c0_1] : memref<16x64xf32, #tpu.memory_space<vmem>>, vector<16x64xf32>
    %c0_2 = arith.constant 0 : index
    %c0_3 = arith.constant 0 : index
    %4 = vector.load %arg33[%c0_2, %c0_3] : memref<1x128xf32, #tpu.memory_space<vmem>>, vector<1x128xf32>
    %c0_4 = arith.constant 0 : index
    %c0_5 = arith.constant 0 : index
    %5 = vector.load %arg3[%c0_4, %c0_5] : memref<16x256xf32, #tpu.memory_space<vmem>>, vector<16x256xf32>
    %c0_6 = arith.constant 0 : index
    %c0_7 = arith.constant 0 : index
    %c0_8 = arith.constant 0 : index
    %6 = vector.load %arg14[%c0_6, %c0_7, %c0_8] : memref<1x64x64xbf16, #tpu.memory_space<vmem>>, vector<1x64x64xbf16>
    %7 = vector.shape_cast %6 : vector<1x64x64xbf16> to vector<64x64xbf16>
    %8 = arith.truncf %3 : vector<16x64xf32> to vector<16x64xbf16>
    %cst = arith.constant dense<0.000000e+00> : vector<16x64xf32>
    %9 = tpu.matmul %8, %7, %cst {dimension_numbers = #tpu.dot_dimension_numbers<[1], [0], [0], [1], [0, 0, 1, 1], [], []>} : vector<16x64xbf16>, vector<64x64xbf16>, vector<16x64xf32> -> vector<16x64xf32>
    %c0_9 = arith.constant 0 : index
    %c0_10 = arith.constant 0 : index
    %c0_11 = arith.constant 0 : index
    %10 = vector.load %arg15[%c0_9, %c0_10, %c0_11] : memref<1x1x64xf32, #tpu.memory_space<vmem>>, vector<1x1x64xf32>
    %11 = vector.shape_cast %10 : vector<1x1x64xf32> to vector<1x64xf32>
    %12 = vector.broadcast %11 : vector<1x64xf32> to vector<16x64xf32>
    %13 = arith.addf %9, %12 : vector<16x64xf32>
    %c0_12 = arith.constant 0 : index
    %c0_13 = arith.constant 0 : index
    %c0_14 = arith.constant 0 : index
    %14 = vector.load %arg16[%c0_12, %c0_13, %c0_14] : memref<1x64x128xbf16, #tpu.memory_space<vmem>>, vector<1x64x128xbf16>
    %15 = vector.shape_cast %14 : vector<1x64x128xbf16> to vector<64x128xbf16>
    %16 = arith.truncf %3 : vector<16x64xf32> to vector<16x64xbf16>
    %cst_15 = arith.constant dense<0.000000e+00> : vector<16x128xf32>
    %17 = tpu.matmul %16, %15, %cst_15 {dimension_numbers = #tpu.dot_dimension_numbers<[1], [0], [0], [1], [0, 0, 1, 1], [], []>} : vector<16x64xbf16>, vector<64x128xbf16>, vector<16x128xf32> -> vector<16x128xf32>
    %c0_16 = arith.constant 0 : index
    %c0_17 = arith.constant 0 : index
    %c0_18 = arith.constant 0 : index
    %18 = vector.load %arg17[%c0_16, %c0_17, %c0_18] : memref<1x1x128xf32, #tpu.memory_space<vmem>>, vector<1x1x128xf32>
    %19 = vector.shape_cast %18 : vector<1x1x128xf32> to vector<1x128xf32>
    %20 = vector.broadcast %19 : vector<1x128xf32> to vector<16x128xf32>
    %21 = arith.addf %17, %20 : vector<16x128xf32>
    %c0_19 = arith.constant 0 : index
    %c0_20 = arith.constant 0 : index
    %22 = vector.load %arg10[%c0_19, %c0_20] : memref<64x128xbf16, #tpu.memory_space<vmem>>, vector<64x128xbf16>
    %23 = arith.truncf %13 : vector<16x64xf32> to vector<16x64xbf16>
    %cst_21 = arith.constant dense<0.000000e+00> : vector<16x128xf32>
    %24 = tpu.matmul %23, %22, %cst_21 {dimension_numbers = #tpu.dot_dimension_numbers<[1], [0], [0], [1], [0, 0, 1, 1], [], []>} : vector<16x64xbf16>, vector<64x128xbf16>, vector<16x128xf32> -> vector<16x128xf32>
    %c0_22 = arith.constant 0 : index
    %c0_23 = arith.constant 0 : index
    %c0_24 = arith.constant 0 : index
    %25 = vector.load %arg18[%c0_22, %c0_23, %c0_24] : memref<1x128x128xbf16, #tpu.memory_space<vmem>>, vector<1x128x128xbf16>
    %26 = vector.shape_cast %25 : vector<1x128x128xbf16> to vector<128x128xbf16>
    %27 = arith.truncf %4 : vector<1x128xf32> to vector<1x128xbf16>
    %cst_25 = arith.constant dense<0.000000e+00> : vector<1x128xf32>
    %28 = tpu.matmul %27, %26, %cst_25 {dimension_numbers = #tpu.dot_dimension_numbers<[1], [0], [0], [1], [0, 0, 1, 1], [], []>} : vector<1x128xbf16>, vector<128x128xbf16>, vector<1x128xf32> -> vector<1x128xf32>
    %c0_26 = arith.constant 0 : index
    %c0_27 = arith.constant 0 : index
    %c0_28 = arith.constant 0 : index
    %29 = vector.load %arg19[%c0_26, %c0_27, %c0_28] : memref<1x128x128xbf16, #tpu.memory_space<vmem>>, vector<1x128x128xbf16>
    %30 = vector.shape_cast %29 : vector<1x128x128xbf16> to vector<128x128xbf16>
    %31 = arith.truncf %4 : vector<1x128xf32> to vector<1x128xbf16>
    %cst_29 = arith.constant dense<0.000000e+00> : vector<1x128xf32>
    %32 = tpu.matmul %31, %30, %cst_29 {dimension_numbers = #tpu.dot_dimension_numbers<[1], [0], [0], [1], [0, 0, 1, 1], [], []>} : vector<1x128xbf16>, vector<128x128xbf16>, vector<1x128xf32> -> vector<1x128xf32>
    %33 = vector.broadcast %28 : vector<1x128xf32> to vector<16x128xf32>
    %34 = arith.mulf %24, %33 : vector<16x128xf32>
    %c0_30 = arith.constant 0 : index
    %c0_31 = arith.constant 0 : index
    %35 = vector.load %arg4[%c0_30, %c0_31] : memref<128x256xbf16, #tpu.memory_space<vmem>>, vector<128x256xbf16>
    %36 = arith.truncf %34 : vector<16x128xf32> to vector<16x128xbf16>
    %cst_32 = arith.constant dense<0.000000e+00> : vector<16x256xf32>
    %37 = tpu.matmul %36, %35, %cst_32 {dimension_numbers = #tpu.dot_dimension_numbers<[1], [0], [0], [1], [0, 0, 1, 1], [], []>} : vector<16x128xbf16>, vector<128x256xbf16>, vector<16x256xf32> -> vector<16x256xf32>
    %38 = vector.broadcast %32 : vector<1x128xf32> to vector<16x128xf32>
    %39 = arith.mulf %21, %38 : vector<16x128xf32>
    %c0_33 = arith.constant 0 : index
    %c0_34 = arith.constant 0 : index
    %40 = vector.load %arg4[%c0_33, %c0_34] : memref<128x256xbf16, #tpu.memory_space<vmem>>, vector<128x256xbf16>
    %41 = arith.truncf %39 : vector<16x128xf32> to vector<16x128xbf16>
    %cst_35 = arith.constant dense<0.000000e+00> : vector<16x256xf32>
    %42 = tpu.matmul %41, %40, %cst_35 {dimension_numbers = #tpu.dot_dimension_numbers<[1], [0], [0], [1], [0, 0, 1, 1], [], []>} : vector<16x128xbf16>, vector<128x256xbf16>, vector<16x256xf32> -> vector<16x256xf32>
    %c0_36 = arith.constant 0 : index
    %c0_37 = arith.constant 0 : index
    %43 = vector.load %arg5[%c0_36, %c0_37] : memref<16x256xf32, #tpu.memory_space<vmem>>, vector<16x256xf32>
    %44 = arith.mulf %42, %43 : vector<16x256xf32>
    %cst_38 = arith.constant dense<0.000000e+00> : vector<256xf32>
    %45 = vector.multi_reduction <add>, %44, %cst_38 [0] : vector<16x256xf32> to vector<256xf32>
    %46 = vector.shape_cast %45 : vector<256xf32> to vector<1x256xf32>
    %47 = vector.broadcast %46 : vector<1x256xf32> to vector<16x256xf32>
    %48 = arith.addf %37, %47 : vector<16x256xf32>
    %cst_39 = arith.constant 0.000000e+00 : f32
    %49 = vector.broadcast %cst_39 : f32 to vector<16x256xf32>
    %50 = arith.cmpf oge, %48, %49 : vector<16x256xf32>
    %cst_40 = arith.constant 2.000000e-01 : f32
    %51 = vector.broadcast %cst_40 : f32 to vector<16x256xf32>
    %52 = arith.mulf %51, %48 : vector<16x256xf32>
    %53 = arith.select %50, %48, %52 : vector<16x256xi1>, vector<16x256xf32>
    %cst_41 = arith.constant 0.000000e+00 : f32
    %54 = vector.broadcast %cst_41 : f32 to vector<16x256xf32>
    %55 = arith.cmpf ogt, %5, %54 : vector<16x256xf32>
    %cst_42 = arith.constant -1.000000e+30 : f32
    %56 = vector.broadcast %cst_42 : f32 to vector<16x256xf32>
    %57 = arith.select %55, %53, %56 : vector<16x256xi1>, vector<16x256xf32>
    %cst_43 = arith.constant dense<0xFF800000> : vector<16xf32>
    %58 = vector.multi_reduction <maximumf>, %57, %cst_43 [1] : vector<16x256xf32> to vector<16xf32>
    %59 = vector.shape_cast %58 : vector<16xf32> to vector<16x1xf32>
    %60 = vector.broadcast %59 : vector<16x1xf32> to vector<16x256xf32>
    %61 = arith.subf %57, %60 : vector<16x256xf32>
    %62 = math.exp %61 : vector<16x256xf32>
    %63 = arith.mulf %62, %5 : vector<16x256xf32>
    %c0_44 = arith.constant 0 : index
    %c0_45 = arith.constant 0 : index
    %64 = vector.load %arg6[%c0_44, %c0_45] : memref<256x16xbf16, #tpu.memory_space<vmem>>, vector<256x16xbf16>
    %65 = arith.truncf %63 : vector<16x256xf32> to vector<16x256xbf16>
    %cst_46 = arith.constant dense<0.000000e+00> : vector<16x16xf32>
    %66 = tpu.matmul %65, %64, %cst_46 {dimension_numbers = #tpu.dot_dimension_numbers<[1], [0], [0], [1], [0, 0, 1, 1], [], []>} : vector<16x256xbf16>, vector<256x16xbf16>, vector<16x16xf32> -> vector<16x16xf32>
    %cst_47 = arith.constant 9.99999971E-10 : f32
    %67 = vector.broadcast %cst_47 : f32 to vector<16x16xf32>
    %68 = arith.maximumf %66, %67 : vector<16x16xf32>
    %69 = tpu.reciprocal %68 {approx = true} : vector<16x16xf32> -> vector<16x16xf32>
    %70 = arith.truncf %21 : vector<16x128xf32> to vector<16x128xbf16>
    %71 = tpu.concatenate %70, %70, %70, %70, %70, %70, %70, %70, %70, %70, %70, %70, %70, %70, %70, %70 in 0 : vector<16x128xbf16>, vector<16x128xbf16>, vector<16x128xbf16>, vector<16x128xbf16>, vector<16x128xbf16>, vector<16x128xbf16>, vector<16x128xbf16>, vector<16x128xbf16>, vector<16x128xbf16>, vector<16x128xbf16>, vector<16x128xbf16>, vector<16x128xbf16>, vector<16x128xbf16>, vector<16x128xbf16>, vector<16x128xbf16>, vector<16x128xbf16> -> vector<256x128xbf16>
    %c0_48 = arith.constant 0 : index
    %c0_49 = arith.constant 0 : index
    %72 = vector.load %arg7[%c0_48, %c0_49] : memref<256x128xbf16, #tpu.memory_space<vmem>>, vector<256x128xbf16>
    %73 = arith.mulf %71, %72 : vector<256x128xbf16>
    %74 = arith.truncf %63 : vector<16x256xf32> to vector<16x256xbf16>
    %cst_50 = arith.constant dense<0.000000e+00> : vector<16x128xf32>
    %75 = tpu.matmul %74, %73, %cst_50 {dimension_numbers = #tpu.dot_dimension_numbers<[1], [0], [0], [1], [0, 0, 1, 1], [], []>} : vector<16x256xbf16>, vector<256x128xbf16>, vector<16x128xf32> -> vector<16x128xf32>
    %c0_51 = arith.constant 0 : index
    %c0_52 = arith.constant 0 : index
    %76 = vector.load %arg8[%c0_51, %c0_52] : memref<16x128xbf16, #tpu.memory_space<vmem>>, vector<16x128xbf16>
    %77 = arith.truncf %69 : vector<16x16xf32> to vector<16x16xbf16>
    %cst_53 = arith.constant dense<0.000000e+00> : vector<16x128xf32>
    %78 = tpu.matmul %77, %76, %cst_53 {dimension_numbers = #tpu.dot_dimension_numbers<[1], [0], [0], [1], [0, 0, 1, 1], [], []>} : vector<16x16xbf16>, vector<16x128xbf16>, vector<16x128xf32> -> vector<16x128xf32>
    %cst_54 = arith.constant 0.000000e+00 : f32
    %79 = vector.broadcast %cst_54 : f32 to vector<16x128xf32>
    %80 = arith.maximumf %75, %79 : vector<16x128xf32>
    %81 = arith.mulf %80, %78 : vector<16x128xf32>
    %c64_i32 = arith.constant 64 : i32
    %82 = tpu.dynamic_rotate %81 by %c64_i32 dim 1 : vector<16x128xf32>, i32 -> vector<16x128xf32>
    %c0_55 = arith.constant 0 : index
    %c0_56 = arith.constant 0 : index
    %c0_57 = arith.constant 0 : index
    %83 = vector.load %arg22[%c0_55, %c0_56, %c0_57] : memref<1x1x128xf32, #tpu.memory_space<vmem>>, vector<1x1x128xf32>
    %84 = vector.shape_cast %83 : vector<1x1x128xf32> to vector<1x128xf32>
    %85 = vector.broadcast %84 : vector<1x128xf32> to vector<16x128xf32>
    %86 = arith.mulf %81, %85 : vector<16x128xf32>
    %c0_58 = arith.constant 0 : index
    %c0_59 = arith.constant 0 : index
    %87 = vector.load %arg9[%c0_58, %c0_59] : memref<128x128xbf16, #tpu.memory_space<vmem>>, vector<128x128xbf16>
    %88 = arith.truncf %86 : vector<16x128xf32> to vector<16x128xbf16>
    %cst_60 = arith.constant dense<0.000000e+00> : vector<16x128xf32>
    %89 = tpu.matmul %88, %87, %cst_60 {dimension_numbers = #tpu.dot_dimension_numbers<[1], [0], [0], [1], [0, 0, 1, 1], [], []>} : vector<16x128xbf16>, vector<128x128xbf16>, vector<16x128xf32> -> vector<16x128xf32>
    %cst_61 = arith.constant 0.000000e+00 : f32
    %90 = vector.broadcast %cst_61 : f32 to vector<16x128xf32>
    %91 = arith.cmpf oge, %89, %90 : vector<16x128xf32>
    %cst_62 = arith.constant 2.000000e-01 : f32
    %92 = vector.broadcast %cst_62 : f32 to vector<16x128xf32>
    %93 = arith.mulf %92, %89 : vector<16x128xf32>
    %94 = arith.select %91, %89, %93 : vector<16x128xi1>, vector<16x128xf32>
    %95 = vector.broadcast %84 : vector<1x128xf32> to vector<16x128xf32>
    %96 = arith.mulf %82, %95 : vector<16x128xf32>
    %c0_63 = arith.constant 0 : index
    %c0_64 = arith.constant 0 : index
    %97 = vector.load %arg9[%c0_63, %c0_64] : memref<128x128xbf16, #tpu.memory_space<vmem>>, vector<128x128xbf16>
    %98 = arith.truncf %96 : vector<16x128xf32> to vector<16x128xbf16>
    %cst_65 = arith.constant dense<0.000000e+00> : vector<16x128xf32>
    %99 = tpu.matmul %98, %97, %cst_65 {dimension_numbers = #tpu.dot_dimension_numbers<[1], [0], [0], [1], [0, 0, 1, 1], [], []>} : vector<16x128xbf16>, vector<128x128xbf16>, vector<16x128xf32> -> vector<16x128xf32>
    %cst_66 = arith.constant 0.000000e+00 : f32
    %100 = vector.broadcast %cst_66 : f32 to vector<16x128xf32>
    %101 = arith.cmpf oge, %99, %100 : vector<16x128xf32>
    %cst_67 = arith.constant 2.000000e-01 : f32
    %102 = vector.broadcast %cst_67 : f32 to vector<16x128xf32>
    %103 = arith.mulf %102, %99 : vector<16x128xf32>
    %104 = arith.select %101, %99, %103 : vector<16x128xi1>, vector<16x128xf32>
    %105 = arith.maximumf %94, %104 : vector<16x128xf32>
    %106 = arith.subf %94, %105 : vector<16x128xf32>
    %107 = math.exp %106 : vector<16x128xf32>
    %108 = arith.subf %104, %105 : vector<16x128xf32>
    %109 = math.exp %108 : vector<16x128xf32>
    %110 = arith.addf %107, %109 : vector<16x128xf32>
    %111 = tpu.reciprocal %110 {approx = true} : vector<16x128xf32> -> vector<16x128xf32>
    %112 = arith.mulf %107, %81 : vector<16x128xf32>
    %113 = arith.mulf %109, %82 : vector<16x128xf32>
    %114 = arith.addf %112, %113 : vector<16x128xf32>
    %115 = arith.mulf %114, %111 : vector<16x128xf32>
    %c0_68 = arith.constant 0 : index
    %c0_69 = arith.constant 0 : index
    %c0_70 = arith.constant 0 : index
    %116 = vector.load %arg20[%c0_68, %c0_69, %c0_70] : memref<1x128x128xbf16, #tpu.memory_space<vmem>>, vector<1x128x128xbf16>
    %117 = vector.shape_cast %116 : vector<1x128x128xbf16> to vector<128x128xbf16>
    %118 = arith.truncf %4 : vector<1x128xf32> to vector<1x128xbf16>
    %cst_71 = arith.constant dense<0.000000e+00> : vector<1x128xf32>
    %119 = tpu.matmul %118, %117, %cst_71 {dimension_numbers = #tpu.dot_dimension_numbers<[1], [0], [0], [1], [0, 0, 1, 1], [], []>} : vector<1x128xbf16>, vector<128x128xbf16>, vector<1x128xf32> -> vector<1x128xf32>
    %c0_72 = arith.constant 0 : index
    %c0_73 = arith.constant 0 : index
    %c0_74 = arith.constant 0 : index
    %120 = vector.load %arg21[%c0_72, %c0_73, %c0_74] : memref<1x1x128xf32, #tpu.memory_space<vmem>>, vector<1x1x128xf32>
    %121 = vector.shape_cast %120 : vector<1x1x128xf32> to vector<1x128xf32>
    %122 = arith.addf %119, %121 : vector<1x128xf32>
    %c0_75 = arith.constant 0 : index
    %c0_76 = arith.constant 0 : index
    %123 = vector.load %arg33[%c0_75, %c0_76] : memref<1x128xf32, #tpu.memory_space<vmem>>, vector<1x128xf32>
    tpu.vector_store %arg33[%c0_75, %c0_76], %122 {strides = array<i32>} : memref<1x128xf32, #tpu.memory_space<vmem>>, vector<1x128xf32>,
    %c0_77 = arith.constant 0 : index
    %c0_78 = arith.constant 0 : index
    %c0_79 = arith.constant 0 : index
    %124 = vector.load %arg23[%c0_77, %c0_78, %c0_79] : memref<1x64x128xbf16, #tpu.memory_space<vmem>>, vector<1x64x128xbf16>
    %125 = vector.shape_cast %124 : vector<1x64x128xbf16> to vector<64x128xbf16>
    %126 = arith.truncf %13 : vector<16x64xf32> to vector<16x64xbf16>
    %cst_80 = arith.constant dense<0.000000e+00> : vector<16x128xf32>
    %127 = tpu.matmul %126, %125, %cst_80 {dimension_numbers = #tpu.dot_dimension_numbers<[1], [0], [0], [1], [0, 0, 1, 1], [], []>} : vector<16x64xbf16>, vector<64x128xbf16>, vector<16x128xf32> -> vector<16x128xf32>
    %c0_81 = arith.constant 0 : index
    %c0_82 = arith.constant 0 : index
    %c0_83 = arith.constant 0 : index
    %128 = vector.load %arg24[%c0_81, %c0_82, %c0_83] : memref<1x1x128xf32, #tpu.memory_space<vmem>>, vector<1x1x128xf32>
    %129 = vector.shape_cast %128 : vector<1x1x128xf32> to vector<1x128xf32>
    %130 = vector.broadcast %129 : vector<1x128xf32> to vector<16x128xf32>
    %131 = arith.addf %127, %130 : vector<16x128xf32>
    %c0_84 = arith.constant 0 : index
    %c0_85 = arith.constant 0 : index
    %c0_86 = arith.constant 0 : index
    %132 = vector.load %arg25[%c0_84, %c0_85, %c0_86] : memref<1x128x128xbf16, #tpu.memory_space<vmem>>, vector<1x128x128xbf16>
    %133 = vector.shape_cast %132 : vector<1x128x128xbf16> to vector<128x128xbf16>
    %134 = arith.truncf %115 : vector<16x128xf32> to vector<16x128xbf16>
    %cst_87 = arith.constant dense<0.000000e+00> : vector<16x128xf32>
    %135 = tpu.matmul %134, %133, %cst_87 {dimension_numbers = #tpu.dot_dimension_numbers<[1], [0], [0], [1], [0, 0, 1, 1], [], []>} : vector<16x128xbf16>, vector<128x128xbf16>, vector<16x128xf32> -> vector<16x128xf32>
    %c0_88 = arith.constant 0 : index
    %c0_89 = arith.constant 0 : index
    %c0_90 = arith.constant 0 : index
    %136 = vector.load %arg26[%c0_88, %c0_89, %c0_90] : memref<1x1x128xf32, #tpu.memory_space<vmem>>, vector<1x1x128xf32>
    %137 = vector.shape_cast %136 : vector<1x1x128xf32> to vector<1x128xf32>
    %138 = vector.broadcast %137 : vector<1x128xf32> to vector<16x128xf32>
    %139 = arith.addf %135, %138 : vector<16x128xf32>
    %c0_91 = arith.constant 0 : index
    %c0_92 = arith.constant 0 : index
    %c0_93 = arith.constant 0 : index
    %140 = vector.load %arg27[%c0_91, %c0_92, %c0_93] : memref<1x128x128xbf16, #tpu.memory_space<vmem>>, vector<1x128x128xbf16>
    %141 = vector.shape_cast %140 : vector<1x128x128xbf16> to vector<128x128xbf16>
    %142 = arith.truncf %115 : vector<16x128xf32> to vector<16x128xbf16>
    %cst_94 = arith.constant dense<0.000000e+00> : vector<16x128xf32>
    %143 = tpu.matmul %142, %141, %cst_94 {dimension_numbers = #tpu.dot_dimension_numbers<[1], [0], [0], [1], [0, 0, 1, 1], [], []>} : vector<16x128xbf16>, vector<128x128xbf16>, vector<16x128xf32> -> vector<16x128xf32>
    %c0_95 = arith.constant 0 : index
    %c0_96 = arith.constant 0 : index
    %c0_97 = arith.constant 0 : index
    %144 = vector.load %arg28[%c0_95, %c0_96, %c0_97] : memref<1x1x128xf32, #tpu.memory_space<vmem>>, vector<1x1x128xf32>
    %145 = vector.shape_cast %144 : vector<1x1x128xf32> to vector<1x128xf32>
    %146 = vector.broadcast %145 : vector<1x128xf32> to vector<16x128xf32>
    %147 = arith.addf %143, %146 : vector<16x128xf32>
    %c0_98 = arith.constant 0 : index
    %c0_99 = arith.constant 0 : index
    %c0_100 = arith.constant 0 : index
    %148 = vector.load %arg29[%c0_98, %c0_99, %c0_100] : memref<1x128x128xbf16, #tpu.memory_space<vmem>>, vector<1x128x128xbf16>
    %149 = vector.shape_cast %148 : vector<1x128x128xbf16> to vector<128x128xbf16>
    %150 = arith.truncf %122 : vector<1x128xf32> to vector<1x128xbf16>
    %cst_101 = arith.constant dense<0.000000e+00> : vector<1x128xf32>
    %151 = tpu.matmul %150, %149, %cst_101 {dimension_numbers = #tpu.dot_dimension_numbers<[1], [0], [0], [1], [0, 0, 1, 1], [], []>} : vector<1x128xbf16>, vector<128x128xbf16>, vector<1x128xf32> -> vector<1x128xf32>
    %152 = vector.broadcast %151 : vector<1x128xf32> to vector<16x128xf32>
    %153 = arith.addf %139, %152 : vector<16x128xf32>
    %154 = arith.mulf %131, %153 : vector<16x128xf32>
    %c0_102 = arith.constant 0 : index
    %c0_103 = arith.constant 0 : index
    %155 = vector.load %arg9[%c0_102, %c0_103] : memref<128x128xbf16, #tpu.memory_space<vmem>>, vector<128x128xbf16>
    %156 = arith.truncf %154 : vector<16x128xf32> to vector<16x128xbf16>
    %cst_104 = arith.constant dense<0.000000e+00> : vector<16x128xf32>
    %157 = tpu.matmul %156, %155, %cst_104 {dimension_numbers = #tpu.dot_dimension_numbers<[1], [0], [0], [1], [0, 0, 1, 1], [], []>} : vector<16x128xbf16>, vector<128x128xbf16>, vector<16x128xf32> -> vector<16x128xf32>
    %cst_105 = arith.constant 0.353553385 : f32
    %158 = vector.broadcast %cst_105 : f32 to vector<16x128xf32>
    %159 = arith.mulf %157, %158 : vector<16x128xf32>
    %cst_106 = arith.constant 0.000000e+00 : f32
    %160 = vector.broadcast %cst_106 : f32 to vector<16x128xf32>
    %161 = arith.cmpf oge, %159, %160 : vector<16x128xf32>
    %cst_107 = arith.constant 2.000000e-01 : f32
    %162 = vector.broadcast %cst_107 : f32 to vector<16x128xf32>
    %163 = arith.mulf %162, %159 : vector<16x128xf32>
    %164 = arith.select %161, %159, %163 : vector<16x128xi1>, vector<16x128xf32>
    %c64_i32_108 = arith.constant 64 : i32
    %165 = tpu.dynamic_rotate %164 by %c64_i32_108 dim 1 : vector<16x128xf32>, i32 -> vector<16x128xf32>
    %166 = arith.maximumf %164, %165 : vector<16x128xf32>
    %167 = arith.subf %164, %166 : vector<16x128xf32>
    %168 = math.exp %167 : vector<16x128xf32>
    %c64_i32_109 = arith.constant 64 : i32
    %169 = tpu.dynamic_rotate %168 by %c64_i32_109 dim 1 : vector<16x128xf32>, i32 -> vector<16x128xf32>
    %170 = arith.addf %168, %169 : vector<16x128xf32>
    %171 = tpu.reciprocal %170 {approx = true} : vector<16x128xf32> -> vector<16x128xf32>
    %172 = arith.mulf %168, %171 : vector<16x128xf32>
    %173 = arith.mulf %172, %147 : vector<16x128xf32>
    %c0_110 = arith.constant 0 : index
    %c0_111 = arith.constant 0 : index
    %174 = vector.load %arg11[%c0_110, %c0_111] : memref<128x64xbf16, #tpu.memory_space<vmem>>, vector<128x64xbf16>
    %175 = arith.truncf %173 : vector<16x128xf32> to vector<16x128xbf16>
    %cst_112 = arith.constant dense<0.000000e+00> : vector<16x64xf32>
    %176 = tpu.matmul %175, %174, %cst_112 {dimension_numbers = #tpu.dot_dimension_numbers<[1], [0], [0], [1], [0, 0, 1, 1], [], []>} : vector<16x128xbf16>, vector<128x64xbf16>, vector<16x64xf32> -> vector<16x64xf32>
    %c0_113 = arith.constant 0 : index
    %c0_114 = arith.constant 0 : index
    %c0_115 = arith.constant 0 : index
    %177 = vector.load %arg30[%c0_113, %c0_114, %c0_115] : memref<1x1x64xf32, #tpu.memory_space<vmem>>, vector<1x1x64xf32>
    %178 = vector.shape_cast %177 : vector<1x1x64xf32> to vector<1x64xf32>
    %179 = vector.broadcast %178 : vector<1x64xf32> to vector<16x64xf32>
    %180 = arith.mulf %179, %176 : vector<16x64xf32>
    %cst_116 = arith.constant 1.000000e+00 : f32
    %181 = vector.broadcast %cst_116 : f32 to vector<1x64xf32>
    %182 = arith.subf %181, %178 : vector<1x64xf32>
    %183 = vector.broadcast %182 : vector<1x64xf32> to vector<16x64xf32>
    %184 = arith.mulf %183, %13 : vector<16x64xf32>
    %185 = arith.addf %180, %184 : vector<16x64xf32>
    %c0_117 = arith.constant 0 : index
    %c0_118 = arith.constant 0 : index
    %186 = vector.load %arg32[%c0_117, %c0_118] : memref<16x64xf32, #tpu.memory_space<vmem>>, vector<16x64xf32>
    tpu.vector_store %arg32[%c0_117, %c0_118], %185 {strides = array<i32>} : memref<16x64xf32, #tpu.memory_space<vmem>>, vector<16x64xf32>,
    %cst_119 = arith.constant 0.000000e+00 : f32
    %187 = vector.broadcast %cst_119 : f32 to vector<16x64xf32>
    %188 = tpu.concatenate %185, %187 in 1 : vector<16x64xf32>, vector<16x64xf32> -> vector<16x128xf32>
    %c0_120 = arith.constant 0 : index
    %c0_121 = arith.constant 0 : index
    %189 = vector.load %arg31[%c0_120, %c0_121] : memref<16x128xf32, #tpu.memory_space<vmem>>, vector<16x128xf32>
    tpu.vector_store %arg31[%c0_120, %c0_121], %188 {strides = array<i32>} : memref<16x128xf32, #tpu.memory_space<vmem>>, vector<16x128xf32>,
    return
  }
  func.func @transform_0(%arg0: i32) -> (i32, i32) {
    %c0_i32 = arith.constant 0 : i32
    %c0_i32_0 = arith.constant 0 : i32
    %c0_i32_1 = arith.constant 0 : i32
    return %c0_i32, %c0_i32_0 : i32, i32
  }
  func.func @transform_1(%arg0: i32) -> (i32, i32) {
    %c0_i32 = arith.constant 0 : i32
    %c0_i32_0 = arith.constant 0 : i32
    %c0_i32_1 = arith.constant 0 : i32
    return %c0_i32, %c0_i32_0 : i32, i32
  }
  func.func @transform_2(%arg0: i32) -> (i32, i32) {
    %c0_i32 = arith.constant 0 : i32
    %c0_i32_0 = arith.constant 0 : i32
    %c0_i32_1 = arith.constant 0 : i32
    return %c0_i32, %c0_i32_0 : i32, i32
  }
  func.func @transform_3(%arg0: i32) -> (i32, i32) {
    %c0_i32 = arith.constant 0 : i32
    %c0_i32_0 = arith.constant 0 : i32
    %c0_i32_1 = arith.constant 0 : i32
    return %c0_i32, %c0_i32_0 : i32, i32
  }
  func.func @transform_4(%arg0: i32) -> (i32, i32) {
    %c0_i32 = arith.constant 0 : i32
    %c0_i32_0 = arith.constant 0 : i32
    %c0_i32_1 = arith.constant 0 : i32
    return %c0_i32, %c0_i32_0 : i32, i32
  }
  func.func @transform_5(%arg0: i32) -> (i32, i32) {
    %c0_i32 = arith.constant 0 : i32
    %c0_i32_0 = arith.constant 0 : i32
    %c0_i32_1 = arith.constant 0 : i32
    return %c0_i32, %c0_i32_0 : i32, i32
  }
  func.func @transform_6(%arg0: i32) -> (i32, i32) {
    %c0_i32 = arith.constant 0 : i32
    %c0_i32_0 = arith.constant 0 : i32
    %c0_i32_1 = arith.constant 0 : i32
    return %c0_i32, %c0_i32_0 : i32, i32
  }
  func.func @transform_7(%arg0: i32) -> (i32, i32) {
    %c0_i32 = arith.constant 0 : i32
    %c0_i32_0 = arith.constant 0 : i32
    %c0_i32_1 = arith.constant 0 : i32
    return %c0_i32, %c0_i32_0 : i32, i32
  }
  func.func @transform_8(%arg0: i32) -> (i32, i32) {
    %c0_i32 = arith.constant 0 : i32
    %c0_i32_0 = arith.constant 0 : i32
    %c0_i32_1 = arith.constant 0 : i32
    return %c0_i32, %c0_i32_0 : i32, i32
  }
  func.func @transform_9(%arg0: i32) -> (i32, i32) {
    %c0_i32 = arith.constant 0 : i32
    %c0_i32_0 = arith.constant 0 : i32
    %c0_i32_1 = arith.constant 0 : i32
    return %c0_i32, %c0_i32_0 : i32, i32
  }
  func.func @transform_10(%arg0: i32) -> (i32, i32) {
    %c0_i32 = arith.constant 0 : i32
    %c0_i32_0 = arith.constant 0 : i32
    %c0_i32_1 = arith.constant 0 : i32
    return %c0_i32, %c0_i32_0 : i32, i32
  }
  func.func @transform_11(%arg0: i32) -> (i32, i32) {
    %c0_i32 = arith.constant 0 : i32
    %c0_i32_0 = arith.constant 0 : i32
    %c0_i32_1 = arith.constant 0 : i32
    return %c0_i32, %c0_i32_0 : i32, i32
  }
  func.func @transform_12(%arg0: i32) -> (i32, i32) {
    %c0_i32 = arith.constant 0 : i32
    %c0_i32_0 = arith.constant 0 : i32
    %c0_i32_1 = arith.constant 0 : i32
    return %c0_i32, %c0_i32_0 : i32, i32
  }
  func.func @transform_13(%arg0: i32) -> (i32, i32, i32) {
    %c0_i32 = arith.constant 0 : i32
    %c0_i32_0 = arith.constant 0 : i32
    %c0_i32_1 = arith.constant 0 : i32
    return %arg0, %c0_i32, %c0_i32_0 : i32, i32, i32
  }
  func.func @transform_14(%arg0: i32) -> (i32, i32, i32) {
    %c0_i32 = arith.constant 0 : i32
    %c0_i32_0 = arith.constant 0 : i32
    %c0_i32_1 = arith.constant 0 : i32
    return %arg0, %c0_i32, %c0_i32_0 : i32, i32, i32
  }
  func.func @transform_15(%arg0: i32) -> (i32, i32, i32) {
    %c0_i32 = arith.constant 0 : i32
    %c0_i32_0 = arith.constant 0 : i32
    %c0_i32_1 = arith.constant 0 : i32
    return %arg0, %c0_i32, %c0_i32_0 : i32, i32, i32
  }
  func.func @transform_16(%arg0: i32) -> (i32, i32, i32) {
    %c0_i32 = arith.constant 0 : i32
    %c0_i32_0 = arith.constant 0 : i32
    %c0_i32_1 = arith.constant 0 : i32
    return %arg0, %c0_i32, %c0_i32_0 : i32, i32, i32
  }
  func.func @transform_17(%arg0: i32) -> (i32, i32, i32) {
    %c0_i32 = arith.constant 0 : i32
    %c0_i32_0 = arith.constant 0 : i32
    %c0_i32_1 = arith.constant 0 : i32
    return %arg0, %c0_i32, %c0_i32_0 : i32, i32, i32
  }
  func.func @transform_18(%arg0: i32) -> (i32, i32, i32) {
    %c0_i32 = arith.constant 0 : i32
    %c0_i32_0 = arith.constant 0 : i32
    %c0_i32_1 = arith.constant 0 : i32
    return %arg0, %c0_i32, %c0_i32_0 : i32, i32, i32
  }
  func.func @transform_19(%arg0: i32) -> (i32, i32, i32) {
    %c0_i32 = arith.constant 0 : i32
    %c0_i32_0 = arith.constant 0 : i32
    %c0_i32_1 = arith.constant 0 : i32
    return %arg0, %c0_i32, %c0_i32_0 : i32, i32, i32
  }
  func.func @transform_20(%arg0: i32) -> (i32, i32, i32) {
    %c0_i32 = arith.constant 0 : i32
    %c0_i32_0 = arith.constant 0 : i32
    %c0_i32_1 = arith.constant 0 : i32
    return %arg0, %c0_i32, %c0_i32_0 : i32, i32, i32
  }
  func.func @transform_21(%arg0: i32) -> (i32, i32, i32) {
    %c0_i32 = arith.constant 0 : i32
    %c0_i32_0 = arith.constant 0 : i32
    %c0_i32_1 = arith.constant 0 : i32
    return %arg0, %c0_i32, %c0_i32_0 : i32, i32, i32
  }
  func.func @transform_22(%arg0: i32) -> (i32, i32, i32) {
    %c0_i32 = arith.constant 0 : i32
    %c0_i32_0 = arith.constant 0 : i32
    %c0_i32_1 = arith.constant 0 : i32
    return %arg0, %c0_i32, %c0_i32_0 : i32, i32, i32
  }
  func.func @transform_23(%arg0: i32) -> (i32, i32, i32) {
    %c0_i32 = arith.constant 0 : i32
    %c0_i32_0 = arith.constant 0 : i32
    %c0_i32_1 = arith.constant 0 : i32
    return %arg0, %c0_i32, %c0_i32_0 : i32, i32, i32
  }
  func.func @transform_24(%arg0: i32) -> (i32, i32, i32) {
    %c0_i32 = arith.constant 0 : i32
    %c0_i32_0 = arith.constant 0 : i32
    %c0_i32_1 = arith.constant 0 : i32
    return %arg0, %c0_i32, %c0_i32_0 : i32, i32, i32
  }
  func.func @transform_25(%arg0: i32) -> (i32, i32, i32) {
    %c0_i32 = arith.constant 0 : i32
    %c0_i32_0 = arith.constant 0 : i32
    %c0_i32_1 = arith.constant 0 : i32
    return %arg0, %c0_i32, %c0_i32_0 : i32, i32, i32
  }
  func.func @transform_26(%arg0: i32) -> (i32, i32, i32) {
    %c0_i32 = arith.constant 0 : i32
    %c0_i32_0 = arith.constant 0 : i32
    %c0_i32_1 = arith.constant 0 : i32
    return %arg0, %c0_i32, %c0_i32_0 : i32, i32, i32
  }
  func.func @transform_27(%arg0: i32) -> (i32, i32, i32) {
    %c0_i32 = arith.constant 0 : i32
    %c0_i32_0 = arith.constant 0 : i32
    %c0_i32_1 = arith.constant 0 : i32
    return %arg0, %c0_i32, %c0_i32_0 : i32, i32, i32
  }
  func.func @transform_28(%arg0: i32) -> (i32, i32, i32) {
    %c0_i32 = arith.constant 0 : i32
    %c0_i32_0 = arith.constant 0 : i32
    %c0_i32_1 = arith.constant 0 : i32
    return %arg0, %c0_i32, %c0_i32_0 : i32, i32, i32
  }
  func.func @transform_29(%arg0: i32) -> (i32, i32, i32) {
    %c0_i32 = arith.constant 0 : i32
    %c0_i32_0 = arith.constant 0 : i32
    %c0_i32_1 = arith.constant 0 : i32
    return %arg0, %c0_i32, %c0_i32_0 : i32, i32, i32
  }
  func.func @transform_30(%arg0: i32) -> (i32, i32) {
    %c0_i32 = arith.constant 0 : i32
    %c0_i32_0 = arith.constant 0 : i32
    %c0_i32_1 = arith.constant 0 : i32
    return %c0_i32, %c0_i32_0 : i32, i32
  }
}

</mosaic_0001>

<bundles_post_ra>
// kernel: cr_hgn_forward.1
= control target key start
LH: loop header
LB: loop body
LE: loop exit
PB: predicated region body
PF: predicated region fallthrough
CT: control target
= control target key end

     0   :  { %s5973_s6 = smov 1   ;;  %s5974_s10 = smov 2   ;;  %s7183_s0 = inlined_call_operand.smem [shape: u32[31], index: -1, kind: input, shape index: {}] }
   0x1   :  { %s6048_s5 = sld [smem:[%s7183_s0]]   ;;  %s5975_s14 = smov 3  }
   0x2   :  { %s6053_s9 = sld [smem:[%s7183_s0 + %s5973_s6]]   ;;  %s5976_s18 = smov 4  }
   0x3   :  { %s6058_s13 = sld [smem:[%s7183_s0 + %s5974_s10]]   ;;  %s5977_s22 = smov 5  }
   0x4   :  { %s6063_s17 = sld [smem:[%s7183_s0 + %s5975_s14]]   ;;  %s5978_s26 = smov 6  }
   0x5   :  { %s6068_s21 = sld [smem:[%s7183_s0 + %s5976_s18]]   ;;  %s5979_s30 = smov 7  }
   0x6   :  { %s6073_s25 = sld [smem:[%s7183_s0 + %s5977_s22]]   ;;  %s5980_s4 = smov 8  }
   0x7   :  { %7231 = sst [smem:[#allocation51_spill]] %s6048_s5  ;;  %s5981_s10 = smov 9  }
   0x8   :  { %7232 = sst [smem:[#allocation52_spill]] %s6053_s9  ;;  %s5982_s15 = smov 10  }
   0x9   :  { %7233 = sst [smem:[#allocation53_spill]] %s6058_s13  ;;  %s5983_s20 = smov 11  }
   0xa   :  { %7234 = sst [smem:[#allocation54_spill]] %s6063_s17  ;;  %s5985_s1 = smov 13  }
   0xb   :  { %s6078_s29 = sld [smem:[%s7183_s0 + %s5978_s26]]   ;;  %s5984_s26 = smov 12  }
   0xc   :  { %7235 = sst [smem:[#allocation55_spill]] %s6073_s25  ;;  %s5986_s7 = smov 14  }
   0xd   :  { %s6083_s3 = sld [smem:[%s7183_s0 + %s5979_s30]]   ;;  %s5988_s22 = smov 16  }
   0xe   :  { %s6088_s8 = sld [smem:[%s7183_s0 + %s5980_s4]]   ;;  %s5989_s28 = smov 17  }
   0xf   :  { %s6093_s14 = sld [smem:[%s7183_s0 + %s5981_s10]]  }
  0x10   :  { %s6098_s19 = sld [smem:[%s7183_s0 + %s5982_s15]]   ;;  %s5987_s15 = smov 15  }
  0x11   :  { %7236 = sst [smem:[#allocation56_spill]] %s6078_s29 }
  0x12   :  { %s6103_s24 = sld [smem:[%s7183_s0 + %s5983_s20]]  }
  0x13   :  { %7237 = sst [smem:[#allocation57_spill]] %s6083_s3 }
  0x14   :  { %7238 = sst [smem:[#allocation58_spill]] %s6088_s8 }
  0x15   :  { %7239 = sst [smem:[#allocation59_spill]] %s6093_s14 }
  0x16   :  { %7240 = sst [smem:[#allocation60_spill]] %s6098_s19 }
  0x17   :  { %s6108_s30 = sld [smem:[%s7183_s0 + %s5984_s26]]  }
  0x18   :  { %s6113_s6 = sld [smem:[%s7183_s0 + %s5985_s1]]  }
  0x19   :  { %s6118_s12 = sld [smem:[%s7183_s0 + %s5986_s7]]   ;;  %s5990_s7 = smov 18  }
  0x1a   :  { %s6123_s20 = sld [smem:[%s7183_s0 + %s5987_s15]]   ;;  %s5991_s15 = smov 19  }
  0x1b   :  { %s6128_s27 = sld [smem:[%s7183_s0 + %s5988_s22]]   ;;  %s5992_s22 = smov 20  }
  0x1c   :  { %s6133_s4 = sld [smem:[%s7183_s0 + %s5989_s28]]   ;;  %s5993_s28 = smov 21  }
  0x1d   :  { %s6138_s19 = sld [smem:[%s7183_s0 + %s5990_s7]]   ;;  %s5994_s7 = smov 22  }
  0x1e   :  { %7241 = sst [smem:[#allocation61_spill]] %s6113_s6 }
  0x1f   :  { %7242 = sst [smem:[#allocation62_spill]] %s6118_s12 }
  0x20   :  { %7243 = sst [smem:[#allocation63_spill]] %s6123_s20 }
  0x21   :  { %s6143_s13 = sld [smem:[%s7183_s0 + %s5991_s15]]   ;;  %s5995_s15 = smov 23  }
  0x22   :  { %7244 = sst [smem:[#allocation64_spill]] %s6133_s4 }
  0x23   :  { %7245 = sst [smem:[#allocation65_spill]] %s6138_s19 }
  0x24   :  { %s6148_s25 = sld [smem:[%s7183_s0 + %s5992_s22]]   ;;  %s5996_s22 = smov 24  }
  0x25   :  { %s6153_s29 = sld [smem:[%s7183_s0 + %s5993_s28]]   ;;  %s5997_s28 = smov 25  }
  0x26   :  { %s6158_s17 = sld [smem:[%s7183_s0 + %s5994_s7]]   ;;  %s5998_s7 = smov 26  }
  0x27   :  { %7246 = sst [smem:[#allocation66_spill]] %s6143_s13 }
  0x28   :  { %s6163_s9 = sld [smem:[%s7183_s0 + %s5995_s15]]   ;;  %s5999_s15 = smov 27  }
  0x29   :  { %s6168_s12 = sld [smem:[%s7183_s0 + %s5996_s22]]   ;;  %s6000_s22 = smov 28  }
  0x2a   :  { %s6178_s13 = sld [smem:[%s7183_s0 + %s5998_s7]]   ;;  %s6002_s7 = smov 30  }
  0x2b   :  { %7247 = sst [smem:[#allocation67_spill]] %s6153_s29 }
  0x2c   :  { %s6173_s29 = sld [smem:[%s7183_s0 + %s5997_s28]]   ;;  %s6001_s28 = smov 29  }
  0x2d   :  { %s6188_s4 = sld [smem:[%s7183_s0 + %s6000_s22]]  }
  0x2e   :  { %7248 = sst [smem:[#allocation68_spill]] %s6163_s9 }
  0x2f   :  { %7249 = sst [smem:[#allocation69_spill]] %s6168_s12 }
  0x30   :  { %s6183_s9 = sld [smem:[%s7183_s0 + %s5999_s15]]  }
  0x31   :  { %s6198_s20 = sld [smem:[%s7183_s0 + %s6002_s7]]  }
  0x32   :  { %7250 = sst [smem:[#allocation70_spill]] %s6173_s29 }
  0x33   :  { %7252 = sst [smem:[#allocation72_spill]] %s6188_s4 }
  0x34   :  { %s6193_s29 = sld [smem:[%s7183_s0 + %s6001_s28]]  }
  0x36   :  { %7251 = sst [smem:[#allocation71_spill]] %s6183_s9 }
  0x37   :  { %7253 = sst [smem:[#allocation73_spill]] %s6198_s20 }
  0x38   :  { %66 = vsyncpa [#allocation5], 0 }
  0x39   :  { %67 = vsyncpa [#allocation7], 0 }
  0x3a   :  { %68 = vsyncpa [#allocation10], 0 }
  0x3b   :  { %69 = vsyncpa [#allocation13], 0 }
  0x3c   :  { %70 = vsyncpa [#allocation16], 0 }
  0x3d   :  { %72 = vsyncpa [#allocation16 + $0x1], 0 }
  0x3e   :  { %73 = vsyncpa [#allocation19], 0 }
  0x3f   :  { %75 = vsyncpa [#allocation19 + $0x1], 0 }
  0x40   :  { %76 = vsyncpa [#allocation22], 0 }
  0x41   :  { %78 = vsyncpa [#allocation22 + $0x1], 0 }
  0x42   :  { %79 = vsyncpa [#allocation25], 0 }
  0x43   :  { %81 = vsyncpa [#allocation25 + $0x1], 0 }
  0x44   :  { %82 = vsyncpa [#allocation28], 0 }
  0x45   :  { %84 = vsyncpa [#allocation28 + $0x1], 0 }
  0x46   :  { %85 = vsyncpa [#allocation31], 0 }
  0x47   :  { %87 = vsyncpa [#allocation31 + $0x1], 0 }
  0x48   :  { %88 = vsyncpa [#allocation34], 0 }
  0x49   :  { %90 = vsyncpa [#allocation34 + $0x1], 0 }
  0x4a   :  { %91 = vsyncpa [#allocation37], 0 }
  0x4b   :  { %93 = vsyncpa [#allocation37 + $0x1], 0  ;;  %s6200_s0 = smov 0   ;;  %s6202_s15 = smov 0  }
  0x4c   :  { %s6204_s16 = smov 0   ;;  %s6206_s18 = smov 0  }
  0x4d LB: > { %s7254_s12 = sld [smem:[#allocation69_spill]]  ;;  %s6219_s22 = sadd.s32 4294967295, %s5971_s18   ;;  %s5959_s0 = sphi %s6200_s0, %s7326_s0   ;;  %s5971_s18 = sphi %s6206_s18, %s7325_s18   ;;  %s5967_s16 = sphi %s6204_s16, %s7329_s16   ;;  %s5963_s15 = sphi %s6202_s15, %s7328_s15  }
  0x4e   : > { %s7255_s9 = sld [smem:[#allocation71_spill]]  ;;  %s6222_s23 = sadd.s32 1, %s5971_s18  }
  0x4f   : > { %s7256_s4 = sld [smem:[#allocation72_spill]]  ;;  %s376_s26 = ssub.s32 %s5971_s18, %s6222_s23 }
  0x50   : > { %s7257_s19 = sld [smem:[#allocation65_spill]]  ;;  %s379_s28 = sadd.s32 1, %s5967_s16 }
  0x51   : > { %s7258_s6 = sld [smem:[#allocation61_spill]]  ;;  %p377_p0 = scmp.eq.s32.totalorder %s376_s26, 0 }
  0x52   : > { %7259 = sst [smem:[#allocation74_spill]] %s5963_s15  ;;  %p386_p1 = scmp.ne.s32.totalorder %s5967_s16, %s5963_s15 }
  0x53   : > { %7260 = sst [smem:[#allocation75_spill]] %s6219_s22  ;;  %p387_p2 = scmp.eq.s32.totalorder %s5971_s18, 0 }
  0x54   : > { %7261 = sst [smem:[#allocation76_spill]] %s6222_s23  ;;  %p392_p3 = scmp.ne.s32.totalorder %s5963_s15, %s5959_s0 }
  0x55   : > { %s6232_s1 = scalar_select %p377_p0, %s5967_s16, %s379_s28  }
  0x56   : > { %p6234_p4 = por %p387_p2, %p386_p1  ;;  %p7203_p5 = scmp.eq.s32.totalorder %s6219_s22, 0 }
  0x57   : > { %7262 = sst [smem:[#allocation77_spill]] %s6232_s1  ;;  %p4278_p6 = scmp.ge.s32.totalorder %s5971_s18, 1 }
  0x58   : > { %s7263_s2 = scalar_select %p6234_p4, 1, 0 }
  0x59   : > { %p840_p7 = scmp.lt.s32.totalorder %s5971_s18, 3  ;;  %p6243_p8 = por %p7203_p5, %p392_p3 }
  0x5a   : > { %s6003_s11 = smov [#allocation6]   ;;  %s6004_s28 = smov [#allocation9]  }
  0x5b   : > { %s7264_s7 = scalar_select %p6243_p8, 1, 0 }
  0x5c   : > { %p6248_p10 = pnand %p4278_p6, %p840_p7  ;;  %s874_s0 = sshll.u32 %s6003_s11, 4  ;;  %s875_s0 = int_to_ptr.vmem [resolvable:$true] %s874_s0 }
  0x5d   : > { %7265 = sst [smem:[#allocation78_spill]] %s7264_s7  ;;  %s906_s1 = sshll.u32 %s6004_s28, 4  ;;  %s907_s1 = int_to_ptr.vmem [resolvable:$true] %s906_s1 }
  0x5e   : > { %s7266_s10 = scalar_select %p6248_p10, 1, 0 }
  0x5f   : > { %p4991_p11 = pneg %p6248_p10  ;;  %s5306_s20 = scalar_lea.vmem %s875_s0, 512 }
  0x60   : > { %7267 = sst [smem:[#allocation79_spill]] %s7266_s10  ;;  %p5307_p0 = scmp.ne.s32.totalorder %s875_s0, %s5306_s20 }
  0x61   : > { %p6256_p12 = pnand %p4991_p11, %p7203_p5  ;;  %p5314_p3 = scmp.lt.s32.totalorder %s875_s0, %s875_s0 }
  0x62   : > { %p5315_p6 = scmp.lt.s32.totalorder %s5306_s20, %s5306_s20 }
  0x63   : > { %p6262_p13 = pneg %p6256_p12 }
  0x64   : > { %p5316_p7 = por %p5315_p6, %p5314_p3 }
  0x65   : > { %p5309_p1 = pnand %p5307_p0, %p6262_p13 }
  0x67   : > { %p5310_p2 = pneg %p5309_p1 }
  0x69   : > { %p5317_p11 = pnand %p5316_p7, %p5310_p2 }
  0x6b   : > { %5320 = shalt.err (!%p5317_p11)
}
  0x6c   : > { %s6005_s11 = smov 256   ;;  %s6006_s28 = smov 16  }
  0x6d   : > { %4997 = dma.hbm_to_vmem [thread:$0]  (!%p6256_p12), %s6068_s21, 512, %s875_s0, [#allocation7], %s6005_s11, %s6005_s11, %s6006_s28  }
  0x6e   : > { %s6007_s7 = smov [#allocation12]   ;;  %s5332_s22 = scalar_lea.vmem %s907_s1, 1024 }
  0x6f   : > { %s935_s15 = sshll.u32 %s6007_s7, 4  ;;  %p5333_p9 = scmp.ne.s32.totalorder %s907_s1, %s5332_s22  ;;  %s936_s15 = int_to_ptr.vmem [resolvable:$true] %s935_s15 }
  0x70   : > { %p5340_p5 = scmp.lt.s32.totalorder %s907_s1, %s907_s1  ;;  %p5341_p8 = scmp.lt.s32.totalorder %s5332_s22, %s5332_s22 }
  0x71   : > { %p5335_p0 = pnand %p5333_p9, %p6262_p13 }
  0x72   : > { %p5342_p3 = por %p5341_p8, %p5340_p5 }
  0x73   : > { %p5336_p1 = pneg %p5335_p0 }
  0x75   : > { %p5343_p2 = pnand %p5342_p3, %p5336_p1 }
  0x77   : > { %5346 = shalt.err (!%p5343_p2)
}
  0x78   : > { %s7206_s20 = smov 64   ;;  %s7270_s8 = sld [smem:[#allocation58_spill]] }
  0x79   : > { %s7208_s10 = smov 4   ;;  %s5358_s7 = scalar_lea.vmem %s936_s15, 512 }
  0x7a   : > { %p5359_p6 = scmp.ne.s32.totalorder %s936_s15, %s5358_s7  ;;  %p5366_p11 = scmp.lt.s32.totalorder %s936_s15, %s936_s15 }
  0x7b   : > { %p5367_p5 = scmp.lt.s32.totalorder %s5358_s7, %s5358_s7 }
  0x7c   : > { %p5361_p9 = pnand %p5359_p6, %p6262_p13 }
  0x7d   : > { %p5368_p8 = por %p5367_p5, %p5366_p11 }
  0x7e   : > { %5003 = dma.hbm_to_vmem [thread:$0]  (!%p6256_p12), %s7270_s8, 1024, %s907_s1, [#allocation10], %s7206_s20, %s7206_s20, %s7208_s10  }
  0x7f   : > { %p5362_p7 = pneg %p5361_p9 }
  0x81   : > { %p5369_p0 = pnand %p5368_p8, %p5362_p7 }
  0x83   : > { %5372 = shalt.err (!%p5369_p0)
}
  0x84   : > { %5009 = dma.hbm_to_vmem [thread:$0]  (!%p6256_p12), %s6103_s24, 512, %s936_s15, [#allocation13], %s7206_s20, %s7206_s20, %s7208_s10  }
  0x85   : > { %s6010_s22 = smov [#allocation4]  }
  0x86   : > { %s852_s1 = sshll.u32 %s6010_s22, 4  ;;  %s853_s1 = int_to_ptr.vmem [resolvable:$true] %s852_s1 }
  0x87   : > { %s5384_s0 = scalar_lea.vmem %s853_s1, 256  ;;  %p5392_p6 = scmp.lt.s32.totalorder %s853_s1, %s853_s1 }
  0x88   : > { %p5385_p1 = scmp.ne.s32.totalorder %s853_s1, %s5384_s0  ;;  %p5393_p9 = scmp.lt.s32.totalorder %s5384_s0, %s5384_s0 }
  0x8a   : > { %p5387_p3 = pnand %p5385_p1, %p6262_p13  ;;  %p5394_p7 = por %p5393_p9, %p5392_p6 }
  0x8c   : > { %p5388_p2 = pneg %p5387_p3 }
  0x8e   : > { %p5395_p11 = pnand %p5394_p7, %p5388_p2 }
  0x90   : > { %5398 = shalt.err (!%p5395_p11)
}
  0x91   : > { %s6011_s11 = smov 128   ;;  %s7271_s5 = sld [smem:[#allocation51_spill]] }
  0x92   : > { %s6012_s28 = smov 8   ;;  %s6013_s15 = smov [#allocation8]  }
  0x93   : > { %s893_s7 = sshll.u32 %s6013_s15, 4  ;;  %s6014_s22 = smov [#allocation11]   ;;  %s894_s7 = int_to_ptr.vmem [resolvable:$true] %s893_s7 }
  0x94   : > { %s919_s20 = sshll.u32 %s6014_s22, 4  ;;  %s5410_s10 = scalar_lea.vmem %s894_s7, 128  ;;  %s920_s20 = int_to_ptr.vmem [resolvable:$true] %s919_s20 }
  0x95   : > { %p5411_p5 = scmp.ne.s32.totalorder %s894_s7, %s5410_s10  ;;  %p5418_p1 = scmp.lt.s32.totalorder %s894_s7, %s894_s7 }
  0x96   : > { %p5419_p3 = scmp.lt.s32.totalorder %s5410_s10, %s5410_s10 }
  0x97   : > { %4994 = dma.hbm_to_vmem [thread:$0]  (!%p6256_p12), %s7271_s5, 256, %s853_s1, [#allocation5], %s6011_s11, %s6011_s11, %s6012_s28  }
  0x98   : > { %p5413_p8 = pnand %p5411_p5, %p6262_p13  ;;  %p5420_p2 = por %p5419_p3, %p5418_p1 }
  0x9a   : > { %p5414_p0 = pneg %p5413_p8 }
  0x9c   : > { %p5421_p6 = pnand %p5420_p2, %p5414_p0 }
  0x9e   : > { %5424 = shalt.err (!%p5421_p6)
}
  0x9f   : > { %s7272_s0 = smov 4   ;;  %s7273_s1 = smov 64  }
  0xa0   : > { %s7274_s3 = sld [smem:[#allocation57_spill]]  ;;  %s5436_s11 = scalar_lea.vmem %s920_s20, 512 }
  0xa1   : > { %p5437_p9 = scmp.ne.s32.totalorder %s920_s20, %s5436_s11  ;;  %p5444_p5 = scmp.lt.s32.totalorder %s920_s20, %s920_s20 }
  0xa2   : > { %p5445_p8 = scmp.lt.s32.totalorder %s5436_s11, %s5436_s11 }
  0xa3   : > { %p5439_p7 = pnand %p5437_p9, %p6262_p13 }
  0xa4   : > { %p5446_p10 = por %p5445_p8, %p5444_p5 }
  0xa5   : > { %p5440_p11 = pneg %p5439_p7 }
  0xa6   : > { %5000 = dma.hbm_to_vmem [thread:$0]  (!%p6256_p12), %s7274_s3, 128, %s894_s7, [#allocation7], %s7273_s1, %s7273_s1, %s7272_s0  }
  0xa7   : > { %p5447_p4 = pnand %p5446_p10, %p5440_p11 }
  0xa9   : > { %5450 = shalt.err (!%p5447_p4)
}
  0xaa   : > { %s7275_s14 = sld [smem:[#allocation59_spill]]  ;;  %s6015_s10 = smov [#allocation14]  }
  0xab   : > { %s949_s28 = sshll.u32 %s6015_s10, 4  ;;  %s950_s28 = int_to_ptr.vmem [resolvable:$true] %s949_s28 }
  0xac   : > { %s5462_s15 = scalar_lea.vmem %s950_s28, 16  ;;  %s5469_s7 = scalar_lea.vmem %s950_s28, 32 }
  0xad   : > { %p5463_p0 = scmp.ne.s32.totalorder %s950_s28, %s5462_s15  ;;  %p5470_p2 = scmp.lt.s32.totalorder %s950_s28, %s950_s28 }
  0xae   : > { %p5471_p10 = scmp.lt.s32.totalorder %s5469_s7, %s5462_s15 }
  0xaf   : > { %p5465_p1 = pnand %p5463_p0, %p6262_p13 }
  0xb0   : > { %5006 = dma.hbm_to_vmem [thread:$0]  (!%p6256_p12), %s7275_s14, 512, %s920_s20, [#allocation10], %s7273_s1, %s7273_s1, %s7272_s0  }
  0xb1   : > { %p5466_p3 = pneg %p5465_p1  ;;  %p5472_p4 = por %p5471_p10, %p5470_p2 }
  0xb3   : > { %p5473_p6 = pnand %p5472_p4, %p5466_p3 }
  0xb5   : > { %5476 = shalt.err (!%p5473_p6)
}
  0xb6   : > { %5012 = dma.hbm_to_vmem [thread:$0]  (!%p6256_p12), %s6108_s30, 16, %s950_s28, [#allocation13]  }
  0xb7   : > { %p4286_p9 = scmp.ge.s32.totalorder %s5971_s18, 2 }
  0xb8   : > { %s6315_s23 = sand.u32 (!%p4286_p9), 1, %s5971_s18   ;;  %s6318_s20 = sand.u32 (!%p4286_p9), 1, %s5967_s16  }
  0xb9   : > { %956 = sbr.rel (%p4286_p9) target bundleno = 579 (0x243), region = 68  ;;  %s6321_s22 = sshll.u32 (!%p4286_p9), %s6318_s20, 5 }
  0xba   : > { %s6324_s26 = sshll.u32 (!%p4286_p9), %s5971_s18, 9  ;;  %s964_s1 = scalar_lea.vmem (!%p4286_p9), [#allocation15], %s6321_s22 }
  0xbb   : > { %s6328_s0 = scalar_lea.hbm (!%p4286_p9), %s7258_s6, %s6324_s26  ;;  %s971_s11 = sshll.u32 (!%p4286_p9), %s964_s1, 4  ;;  %s6331_s11 = int_to_ptr.vmem [resolvable:$true] %s971_s11 }
  0xbc   : > { %s5477_s28 = scalar_lea.hbm (!%p4286_p9), %s6328_s0, 512  ;;  %p7276_p13 = scmp.ne.s32.totalorder (!%p4286_p9), %s7263_s2, 0 }
  0xbd   : > { %p5478_p12 = scmp.ne.s32.totalorder (!%p4286_p9), %s6328_s0, %s5477_s28  ;;  %s5481_s15 = scalar_lea.hbm (!%p4286_p9), %s7258_s6, 1024 }
  0xbe   : > { %p5482_p5 = scmp.lt.s32.totalorder %s6328_s0, %s7258_s6  ;;  %p5483_p8 = scmp.lt.s32.totalorder %s5481_s15, %s5477_s28 }
  0xbf   : > { %p5479_p7 = pnand %p5478_p12, %p7276_p13 }
  0xc0   : > { %p5484_p0 = por %p5483_p8, %p5482_p5 }
  0xc1   : > { %p5480_p11 = pneg %p5479_p7 }
  0xc3   : > { %p5485_p1 = pnand %p5484_p0, %p5480_p11 }
  0xc5   : > { %5488 = shalt.err (!%p5485_p1)
}
  0xc6   : > { %s5489_s7 = scalar_lea.vmem %s6331_s11, 512  ;;  %s6016_s1 = smov [#allocation15]  }
  0xc7   : > { %p5490_p3 = scmp.ne.s32.totalorder %s6331_s11, %s5489_s7  ;;  %s5493_s10 = sshll.u32 %s6016_s1, 4  ;;  %s5494_s10 = int_to_ptr.vmem [resolvable:$false] %s5493_s10 }
  0xc8   : > { %s5495_s3 = scalar_lea.vmem %s5494_s10, 1024  ;;  %p5496_p4 = scmp.lt.s32.totalorder %s6331_s11, %s5494_s10 }
  0xc9   : > { %p5491_p2 = pnand %p5490_p3, %p7276_p13  ;;  %p5497_p6 = scmp.lt.s32.totalorder %s5495_s3, %s5489_s7 }
  0xcb   : > { %p5492_p10 = pneg %p5491_p2  ;;  %p5498_p9 = por %p5497_p6, %p5496_p4 }
  0xcd   : > { %p5499_p12 = pnand %p5498_p9, %p5492_p10 }
  0xcf   : > { %5502 = shalt.err (!%p5499_p12)
}
  0xd0   : > { %s7213_s28 = smov 64   ;;  %s7215_s15 = smov 4  }
  0xd1   : > { %s7277_s3 = scalar_lea.sflag [#allocation16], %s6315_s23  ;;  %s6356_s10 = sshll.u32 %s5971_s18, 4 }
  0xd2   : > { %4945 = dma.hbm_to_vmem [thread:$0]  (%p7276_p13), %s6328_s0, 512, %s6331_s11, %s7277_s3, %s7213_s28, %s7213_s28, %s7215_s15  }
  0xd3   : > { %s6360_s7 = scalar_lea.hbm %s6128_s27, %s6356_s10  ;;  %s1011_s1 = scalar_lea.vmem [#allocation18], %s6318_s20 }
  0xd4   : > { %s1018_s5 = sshll.u32 %s1011_s1, 4  ;;  %s6364_s6 = sshll.u32 %s6318_s20, 6  ;;  %s1019_s5 = int_to_ptr.vmem [resolvable:$true] %s1018_s5 }
  0xd5   : > { %s7217_s8 = scalar_lea.sflag [#allocation19], %s6315_s23  ;;  %s5503_s14 = scalar_lea.hbm %s6360_s7, 16 }
  0xd6   : > { %p5504_p7 = scmp.ne.s32.totalorder %s6360_s7, %s5503_s14  ;;  %s5507_s0 = scalar_lea.hbm %s6128_s27, 32 }
  0xd7   : > { %p5508_p8 = scmp.lt.s32.totalorder %s6360_s7, %s6128_s27  ;;  %p5509_p0 = scmp.lt.s32.totalorder %s5507_s0, %s5503_s14 }
  0xd8   : > { %p5505_p11 = pnand %p5504_p7, %p7276_p13 }
  0xd9   : > { %p5510_p1 = por %p5509_p0, %p5508_p8 }
  0xda   : > { %p5506_p5 = pneg %p5505_p11 }
  0xdc   : > { %p5511_p3 = pnand %p5510_p1, %p5506_p5 }
  0xde   : > { %5514 = shalt.err (!%p5511_p3)
}
  0xdf   : > { %s5515_s11 = scalar_lea.vmem %s1019_s5, 16  ;;  %s6019_s3 = smov [#allocation18]  }
  0xe0   : > { %p5516_p2 = scmp.ne.s32.totalorder %s1019_s5, %s5515_s11  ;;  %s5519_s1 = sshll.u32 %s6019_s3, 4  ;;  %s5520_s1 = int_to_ptr.vmem [resolvable:$false] %s5519_s1 }
  0xe1   : > { %s5521_s28 = scalar_lea.vmem %s5520_s1, 32  ;;  %p5522_p6 = scmp.lt.s32.totalorder %s1019_s5, %s5520_s1 }
  0xe2   : > { %p5517_p10 = pnand %p5516_p2, %p7276_p13  ;;  %p5523_p9 = scmp.lt.s32.totalorder %s5521_s28, %s5515_s11 }
  0xe4   : > { %p5518_p4 = pneg %p5517_p10  ;;  %p5524_p12 = por %p5523_p9, %p5522_p6 }
  0xe6   : > { %p5525_p7 = pnand %p5524_p12, %p5518_p4 }
  0xe8   : > { %5528 = shalt.err (!%p5525_p7)
}
  0xe9   : > { %4947 = dma.hbm_to_vmem [thread:$0]  (%p7276_p13), %s6360_s7, 16, %s1019_s5, %s7217_s8  }
  0xea   : > { %s6382_s14 = sshll.u32 %s5971_s18, 10  ;;  %s1050_s0 = scalar_lea.vmem [#allocation21], %s6364_s6 }
  0xeb   : > { %s6386_s28 = scalar_lea.hbm %s7257_s19, %s6382_s14  ;;  %s1057_s11 = sshll.u32 %s1050_s0, 4  ;;  %s6389_s11 = int_to_ptr.vmem [resolvable:$true] %s1057_s11 }
  0xec   : > { %s7219_s3 = scalar_lea.sflag [#allocation22], %s6315_s23  ;;  %s5529_s1 = scalar_lea.hbm %s6386_s28, 1024 }
  0xed   : > { %p5530_p11 = scmp.ne.s32.totalorder %s6386_s28, %s5529_s1  ;;  %s5533_s15 = scalar_lea.hbm %s7257_s19, 2048 }
  0xee   : > { %p5534_p0 = scmp.lt.s32.totalorder %s6386_s28, %s7257_s19  ;;  %p5535_p1 = scmp.lt.s32.totalorder %s5533_s15, %s5529_s1 }
  0xef   : > { %p5531_p5 = pnand %p5530_p11, %p7276_p13 }
  0xf0   : > { %p5536_p3 = por %p5535_p1, %p5534_p0 }
  0xf1   : > { %p5532_p8 = pneg %p5531_p5 }
  0xf3   : > { %p5537_p2 = pnand %p5536_p3, %p5532_p8 }
  0xf5   : > { %5540 = shalt.err (!%p5537_p2)
}
  0xf6   : > { %s5541_s5 = scalar_lea.vmem %s6389_s11, 1024  ;;  %s6020_s18 = smov [#allocation21]  }
  0xf7   : > { %p5542_p10 = scmp.ne.s32.totalorder %s6389_s11, %s5541_s5  ;;  %s5545_s7 = sshll.u32 %s6020_s18, 4  ;;  %s5546_s7 = int_to_ptr.vmem [resolvable:$false] %s5545_s7 }
  0xf8   : > { %s5547_s0 = scalar_lea.vmem %s5546_s7, 2048  ;;  %p5548_p9 = scmp.lt.s32.totalorder %s6389_s11, %s5546_s7 }
  0xf9   : > { %p5543_p4 = pnand %p5542_p10, %p7276_p13  ;;  %p5549_p12 = scmp.lt.s32.totalorder %s5547_s0, %s5541_s5 }
  0xfb   : > { %p5544_p6 = pneg %p5543_p4  ;;  %p5550_p7 = por %p5549_p12, %p5548_p9 }
  0xfd   : > { %p5551_p11 = pnand %p5550_p7, %p5544_p6 }
  0xff   : > { %5554 = shalt.err (!%p5551_p11)
}
 0x100   : > { %s7278_s15 = smov 4   ;;  %s7279_s1 = smov 64  }
 0x101   : > { %4949 = dma.hbm_to_vmem [thread:$0]  (%p7276_p13), %s6386_s28, 1024, %s6389_s11, %s7219_s3, %s7279_s1, %s7279_s1, %s7278_s15  }
 0x102   : > { %s6415_s5 = scalar_lea.hbm %s6148_s25, %s6356_s10  ;;  %s1091_s18 = scalar_lea.vmem [#allocation24], %s6318_s20 }
 0x103   : > { %s1098_s7 = sshll.u32 %s1091_s18, 4  ;;  %s7220_s0 = scalar_lea.sflag [#allocation25], %s6315_s23  ;;  %s1099_s7 = int_to_ptr.vmem [resolvable:$true] %s1098_s7 }
 0x104   : > { %s5555_s8 = scalar_lea.hbm %s6415_s5, 16  ;;  %s5559_s19 = scalar_lea.hbm %s6148_s25, 32 }
 0x105   : > { %p5556_p5 = scmp.ne.s32.totalorder %s6415_s5, %s5555_s8  ;;  %p5560_p1 = scmp.lt.s32.totalorder %s6415_s5, %s6148_s25 }
 0x106   : > { %p5561_p3 = scmp.lt.s32.totalorder %s5559_s19, %s5555_s8 }
 0x107   : > { %p5557_p8 = pnand %p5556_p5, %p7276_p13 }
 0x108   : > { %p5562_p2 = por %p5561_p3, %p5560_p1 }
 0x109   : > { %p5558_p0 = pneg %p5557_p8 }
 0x10b   : > { %p5563_p10 = pnand %p5562_p2, %p5558_p0 }
 0x10d   : > { %5566 = shalt.err (!%p5563_p10)
}
 0x10e   : > { %s5567_s28 = scalar_lea.vmem %s1099_s7, 16  ;;  %s6021_s11 = smov [#allocation24]  }
 0x10f   : > { %p5568_p4 = scmp.ne.s32.totalorder %s1099_s7, %s5567_s28  ;;  %s5571_s18 = sshll.u32 %s6021_s11, 4  ;;  %s5572_s18 = int_to_ptr.vmem [resolvable:$false] %s5571_s18 }
 0x110   : > { %s5573_s3 = scalar_lea.vmem %s5572_s18, 32  ;;  %p5574_p12 = scmp.lt.s32.totalorder %s1099_s7, %s5572_s18 }
 0x111   : > { %p5569_p6 = pnand %p5568_p4, %p7276_p13  ;;  %p5575_p7 = scmp.lt.s32.totalorder %s5573_s3, %s5567_s28 }
 0x113   : > { %p5570_p9 = pneg %p5569_p6  ;;  %p5576_p11 = por %p5575_p7, %p5574_p12 }
 0x115   : > { %p5577_p5 = pnand %p5576_p11, %p5570_p9 }
 0x117   : > { %5580 = shalt.err (!%p5577_p5)
}
 0x118   : > { %4951 = dma.hbm_to_vmem [thread:$0]  (%p7276_p13), %s6415_s5, 16, %s1099_s7, %s7220_s0  }
 0x119   : > { %s6435_s8 = scalar_lea.hbm %s6158_s17, %s6324_s26  ;;  %s1126_s19 = scalar_lea.vmem [#allocation27], %s6321_s22 }
 0x11a   : > { %s1133_s3 = sshll.u32 %s1126_s19, 4  ;;  %s7221_s28 = scalar_lea.sflag [#allocation28], %s6315_s23  ;;  %s6438_s3 = int_to_ptr.vmem [resolvable:$true] %s1133_s3 }
 0x11b   : > { %s5581_s11 = scalar_lea.hbm %s6435_s8, 512  ;;  %s5585_s18 = scalar_lea.hbm %s6158_s17, 1024 }
 0x11c   : > { %p5582_p8 = scmp.ne.s32.totalorder %s6435_s8, %s5581_s11  ;;  %p5586_p3 = scmp.lt.s32.totalorder %s6435_s8, %s6158_s17 }
 0x11d   : > { %p5587_p2 = scmp.lt.s32.totalorder %s5585_s18, %s5581_s11 }
 0x11e   : > { %p5583_p0 = pnand %p5582_p8, %p7276_p13 }
 0x11f   : > { %p5588_p10 = por %p5587_p2, %p5586_p3 }
 0x120   : > { %p5584_p1 = pneg %p5583_p0 }
 0x122   : > { %p5589_p4 = pnand %p5588_p10, %p5584_p1 }
 0x124   : > { %5592 = shalt.err (!%p5589_p4)
}
 0x125   : > { %s5593_s5 = scalar_lea.vmem %s6438_s3, 512  ;;  %s6022_s7 = smov [#allocation27]  }
 0x126   : > { %p5594_p6 = scmp.ne.s32.totalorder %s6438_s3, %s5593_s5  ;;  %s5597_s19 = sshll.u32 %s6022_s7, 4  ;;  %s5598_s19 = int_to_ptr.vmem [resolvable:$false] %s5597_s19 }
 0x127   : > { %s5599_s0 = scalar_lea.vmem %s5598_s19, 1024  ;;  %p5600_p7 = scmp.lt.s32.totalorder %s6438_s3, %s5598_s19 }
 0x128   : > { %p5595_p9 = pnand %p5594_p6, %p7276_p13  ;;  %p5601_p11 = scmp.lt.s32.totalorder %s5599_s0, %s5593_s5 }
 0x12a   : > { %p5596_p12 = pneg %p5595_p9  ;;  %p5602_p5 = por %p5601_p11, %p5600_p7 }
 0x12c   : > { %p5603_p8 = pnand %p5602_p5, %p5596_p12 }
 0x12e   : > { %5606 = shalt.err (!%p5603_p8)
}
 0x12f   : > { %4953 = dma.hbm_to_vmem [thread:$0]  (%p7276_p13), %s6435_s8, 512, %s6438_s3, %s7221_s28, %s7279_s1, %s7279_s1, %s7278_s15  }
 0x130   : > { %s6464_s0 = scalar_lea.hbm %s7254_s12, %s6382_s14  ;;  %s1164_s11 = scalar_lea.vmem [#allocation30], %s6364_s6 }
 0x131   : > { %s1171_s18 = sshll.u32 %s1164_s11, 4  ;;  %s7222_s5 = scalar_lea.sflag [#allocation31], %s6315_s23  ;;  %s6467_s18 = int_to_ptr.vmem [resolvable:$true] %s1171_s18 }
 0x132   : > { %s5607_s7 = scalar_lea.hbm %s6464_s0, 1024  ;;  %s5611_s19 = scalar_lea.hbm %s7254_s12, 2048 }
 0x133   : > { %p5608_p0 = scmp.ne.s32.totalorder %s6464_s0, %s5607_s7  ;;  %p5612_p2 = scmp.lt.s32.totalorder %s6464_s0, %s7254_s12 }
 0x134   : > { %p5613_p10 = scmp.lt.s32.totalorder %s5611_s19, %s5607_s7 }
 0x135   : > { %p5609_p1 = pnand %p5608_p0, %p7276_p13 }
 0x136   : > { %p5614_p4 = por %p5613_p10, %p5612_p2 }
 0x137   : > { %p5610_p3 = pneg %p5609_p1 }
 0x139   : > { %p5615_p6 = pnand %p5614_p4, %p5610_p3 }
 0x13b   : > { %5618 = shalt.err (!%p5615_p6)
}
 0x13c   : > { %s5619_s8 = scalar_lea.vmem %s6467_s18, 1024  ;;  %s6023_s3 = smov [#allocation30]  }
 0x13d   : > { %p5620_p9 = scmp.ne.s32.totalorder %s6467_s18, %s5619_s8  ;;  %s5623_s11 = sshll.u32 %s6023_s3, 4  ;;  %s5624_s11 = int_to_ptr.vmem [resolvable:$false] %s5623_s11 }
 0x13e   : > { %s5625_s28 = scalar_lea.vmem %s5624_s11, 2048  ;;  %p5626_p11 = scmp.lt.s32.totalorder %s6467_s18, %s5624_s11 }
 0x13f   : > { %p5621_p12 = pnand %p5620_p9, %p7276_p13  ;;  %p5627_p5 = scmp.lt.s32.totalorder %s5625_s28, %s5619_s8 }
 0x141   : > { %p5622_p7 = pneg %p5621_p12  ;;  %p5628_p8 = por %p5627_p5, %p5626_p11 }
 0x143   : > { %p5629_p0 = pnand %p5628_p8, %p5622_p7 }
 0x145   : > { %5632 = shalt.err (!%p5629_p0)
}
 0x146   : > { %4955 = dma.hbm_to_vmem [thread:$0]  (%p7276_p13), %s6464_s0, 1024, %s6467_s18, %s7222_s5, %s7279_s1, %s7279_s1, %s7278_s15  }
 0x147   : > { %s6493_s28 = scalar_lea.hbm %s6178_s13, %s6382_s14  ;;  %s1202_s7 = scalar_lea.vmem [#allocation33], %s6364_s6 }
 0x148   : > { %s1209_s19 = sshll.u32 %s1202_s7, 4  ;;  %s7223_s8 = scalar_lea.sflag [#allocation34], %s6315_s23  ;;  %s6496_s19 = int_to_ptr.vmem [resolvable:$true] %s1209_s19 }
 0x149   : > { %s5633_s3 = scalar_lea.hbm %s6493_s28, 1024  ;;  %s5637_s11 = scalar_lea.hbm %s6178_s13, 2048 }
 0x14a   : > { %p5634_p1 = scmp.ne.s32.totalorder %s6493_s28, %s5633_s3  ;;  %p5638_p10 = scmp.lt.s32.totalorder %s6493_s28, %s6178_s13 }
 0x14b   : > { %p5639_p4 = scmp.lt.s32.totalorder %s5637_s11, %s5633_s3 }
 0x14c   : > { %p5635_p3 = pnand %p5634_p1, %p7276_p13 }
 0x14d   : > { %p5640_p6 = por %p5639_p4, %p5638_p10 }
 0x14e   : > { %p5636_p2 = pneg %p5635_p3 }
 0x150   : > { %p5641_p9 = pnand %p5640_p6, %p5636_p2 }
 0x152   : > { %5644 = shalt.err (!%p5641_p9)
}
 0x153   : > { %s5645_s0 = scalar_lea.vmem %s6496_s19, 1024  ;;  %s6024_s18 = smov [#allocation33]  }
 0x154   : > { %p5646_p12 = scmp.ne.s32.totalorder %s6496_s19, %s5645_s0  ;;  %s5649_s7 = sshll.u32 %s6024_s18, 4  ;;  %s5650_s7 = int_to_ptr.vmem [resolvable:$false] %s5649_s7 }
 0x155   : > { %s5651_s5 = scalar_lea.vmem %s5650_s7, 2048  ;;  %p5652_p5 = scmp.lt.s32.totalorder %s6496_s19, %s5650_s7 }
 0x156   : > { %p5647_p7 = pnand %p5646_p12, %p7276_p13  ;;  %p5653_p8 = scmp.lt.s32.totalorder %s5651_s5, %s5645_s0 }
 0x158   : > { %p5648_p11 = pneg %p5647_p7  ;;  %p5654_p0 = por %p5653_p8, %p5652_p5 }
 0x15a   : > { %p5655_p1 = pnand %p5654_p0, %p5648_p11 }
 0x15c   : > { %5658 = shalt.err (!%p5655_p1)
}
 0x15d   : > { %4957 = dma.hbm_to_vmem [thread:$0]  (%p7276_p13), %s6493_s28, 1024, %s6496_s19, %s7223_s8, %s7279_s1, %s7279_s1, %s7278_s15  }
 0x15e   : > { %s6522_s5 = scalar_lea.hbm %s7256_s4, %s6382_s14  ;;  %s1240_s3 = scalar_lea.vmem [#allocation36], %s6364_s6 }
 0x15f   : > { %s1247_s11 = sshll.u32 %s1240_s3, 4  ;;  %s1237_s0 = scalar_lea.sflag [#allocation37], %s6315_s23  ;;  %s6525_s11 = int_to_ptr.vmem [resolvable:$true] %s1247_s11 }
 0x160   : > { %s5659_s18 = scalar_lea.hbm %s6522_s5, 1024  ;;  %s5663_s7 = scalar_lea.hbm %s7256_s4, 2048 }
 0x161   : > { %p5660_p3 = scmp.ne.s32.totalorder %s6522_s5, %s5659_s18  ;;  %p5664_p4 = scmp.lt.s32.totalorder %s6522_s5, %s7256_s4 }
 0x162   : > { %p5665_p6 = scmp.lt.s32.totalorder %s5663_s7, %s5659_s18 }
 0x163   : > { %p5661_p2 = pnand %p5660_p3, %p7276_p13 }
 0x164   : > { %p5666_p9 = por %p5665_p6, %p5664_p4 }
 0x165   : > { %p5662_p10 = pneg %p5661_p2 }
 0x167   : > { %p5667_p12 = pnand %p5666_p9, %p5662_p10 }
 0x169   : > { %5670 = shalt.err (!%p5667_p12)
}
 0x16a   : > { %s5671_s28 = scalar_lea.vmem %s6525_s11, 1024  ;;  %s6025_s19 = smov [#allocation36]  }
 0x16b   : > { %p5672_p7 = scmp.ne.s32.totalorder %s6525_s11, %s5671_s28  ;;  %s5675_s3 = sshll.u32 %s6025_s19, 4  ;;  %s5676_s3 = int_to_ptr.vmem [resolvable:$false] %s5675_s3 }
 0x16c   : > { %s5677_s8 = scalar_lea.vmem %s5676_s3, 2048  ;;  %p5678_p8 = scmp.lt.s32.totalorder %s6525_s11, %s5676_s3 }
 0x16d   : > { %p5673_p11 = pnand %p5672_p7, %p7276_p13  ;;  %p5679_p0 = scmp.lt.s32.totalorder %s5677_s8, %s5671_s28 }
 0x16f   : > { %p5674_p5 = pneg %p5673_p11  ;;  %p5680_p1 = por %p5679_p0, %p5678_p8 }
 0x171   : > { %p5681_p3 = pnand %p5680_p1, %p5674_p5 }
 0x173   : > { %5684 = shalt.err (!%p5681_p3)
}
 0x174   : > { %s7280_s18 = sld [smem:[#allocation63_spill]]  ;;  %s991_s28 = scalar_lea.vmem [#allocation17], %s6321_s22 }
 0x175   : > { %4959 = dma.hbm_to_vmem [thread:$0]  (%p7276_p13), %s6522_s5, 1024, %s6525_s11, %s1237_s0, %s7279_s1, %s7279_s1, %s7278_s15  }
 0x176   : > { %s998_s19 = sshll.u32 %s991_s28, 4  ;;  %s999_s19 = int_to_ptr.vmem [resolvable:$true] %s998_s19 }
 0x17a   : > { %s7281_s7 = smov %s7280_s18  ;;  %s6551_s8 = scalar_lea.hbm %s7280_s18, %s6324_s26 }
 0x17b   : > { %s5685_s3 = scalar_lea.hbm %s6551_s8, 512  ;;  %s5689_s4 = scalar_lea.hbm %s7281_s7, 1024 }
 0x17c   : > { %p5686_p2 = scmp.ne.s32.totalorder %s6551_s8, %s5685_s3  ;;  %p5690_p6 = scmp.lt.s32.totalorder %s6551_s8, %s7281_s7 }
 0x17d   : > { %p5691_p9 = scmp.lt.s32.totalorder %s5689_s4, %s5685_s3 }
 0x17e   : > { %p5687_p10 = pnand %p5686_p2, %p7276_p13 }
 0x17f   : > { %p5692_p12 = por %p5691_p9, %p5690_p6 }
 0x180   : > { %p5688_p4 = pneg %p5687_p10 }
 0x182   : > { %p5693_p7 = pnand %p5692_p12, %p5688_p4 }
 0x184   : > { %5696 = shalt.err (!%p5693_p7)
}
 0x185   : > { %s5697_s5 = scalar_lea.vmem %s999_s19, 512  ;;  %s6026_s22 = smov [#allocation17]  }
 0x186   : > { %p5698_p11 = scmp.ne.s32.totalorder %s999_s19, %s5697_s5  ;;  %s5701_s26 = sshll.u32 %s6026_s22, 4  ;;  %s5702_s26 = int_to_ptr.vmem [resolvable:$false] %s5701_s26 }
 0x187   : > { %s5703_s11 = scalar_lea.vmem %s5702_s26, 1024  ;;  %p5704_p0 = scmp.lt.s32.totalorder %s999_s19, %s5702_s26 }
 0x188   : > { %p5699_p5 = pnand %p5698_p11, %p7276_p13  ;;  %p5705_p1 = scmp.lt.s32.totalorder %s5703_s11, %s5697_s5 }
 0x18a   : > { %p5700_p8 = pneg %p5699_p5  ;;  %p5706_p3 = por %p5705_p1, %p5704_p0 }
 0x18c   : > { %p5707_p2 = pnand %p5706_p3, %p5700_p8 }
 0x18e   : > { %5710 = shalt.err (!%p5707_p2)
}
 0x18f   : > { %s7282_s4 = scalar_lea.sflag [#allocation16], %s6315_s23  ;;  %s7283_s18 = sld [smem:[#allocation64_spill]] }
 0x190   : > { %4946 = dma.hbm_to_vmem [thread:$0]  (%p7276_p13), %s6551_s8, 512, %s999_s19, %s7282_s4, %s7279_s1, %s7279_s1, %s7278_s15  }
 0x191   : > { %s1029_s5 = scalar_lea.vmem [#allocation20], %s6364_s6 }
 0x192   : > { %s1036_s22 = sshll.u32 %s1029_s5, 4  ;;  %s1037_s22 = int_to_ptr.vmem [resolvable:$true] %s1036_s22 }
 0x195   : > { %s7284_s28 = smov %s7283_s18  ;;  %s6573_s3 = scalar_lea.hbm %s7283_s18, %s6382_s14 }
 0x196   : > { %s5711_s26 = scalar_lea.hbm %s6573_s3, 1024  ;;  %s5715_s11 = scalar_lea.hbm %s7284_s28, 2048 }
 0x197   : > { %p5712_p10 = scmp.ne.s32.totalorder %s6573_s3, %s5711_s26  ;;  %p5716_p9 = scmp.lt.s32.totalorder %s6573_s3, %s7284_s28 }
 0x198   : > { %p5717_p12 = scmp.lt.s32.totalorder %s5715_s11, %s5711_s26 }
 0x199   : > { %p5713_p4 = pnand %p5712_p10, %p7276_p13 }
 0x19a   : > { %p5718_p7 = por %p5717_p12, %p5716_p9 }
 0x19b   : > { %p5714_p6 = pneg %p5713_p4 }
 0x19d   : > { %p5719_p11 = pnand %p5718_p7, %p5714_p6 }
 0x19f   : > { %5722 = shalt.err (!%p5719_p11)
}
 0x1a0   : > { %s5723_s8 = scalar_lea.vmem %s1037_s22, 1024  ;;  %s6027_s19 = smov [#allocation20]  }
 0x1a1   : > { %p5724_p5 = scmp.ne.s32.totalorder %s1037_s22, %s5723_s8  ;;  %s5727_s4 = sshll.u32 %s6027_s19, 4  ;;  %s5728_s4 = int_to_ptr.vmem [resolvable:$false] %s5727_s4 }
 0x1a2   : > { %s5729_s18 = scalar_lea.vmem %s5728_s4, 2048  ;;  %p5730_p1 = scmp.lt.s32.totalorder %s1037_s22, %s5728_s4 }
 0x1a3   : > { %p5725_p8 = pnand %p5724_p5, %p7276_p13  ;;  %p5731_p3 = scmp.lt.s32.totalorder %s5729_s18, %s5723_s8 }
 0x1a5   : > { %p5726_p0 = pneg %p5725_p8  ;;  %p5732_p2 = por %p5731_p3, %p5730_p1 }
 0x1a7   : > { %p5733_p10 = pnand %p5732_p2, %p5726_p0 }
 0x1a9   : > { %5736 = shalt.err (!%p5733_p10)
}
 0x1aa   : > { %s7285_s5 = scalar_lea.sflag [#allocation19], %s6315_s23  ;;  %s7286_s26 = sld [smem:[#allocation66_spill]] }
 0x1ab   : > { %4948 = dma.hbm_to_vmem [thread:$0]  (%p7276_p13), %s6573_s3, 1024, %s1037_s22, %s7285_s5, %s7279_s1, %s7279_s1, %s7278_s15  }
 0x1ac   : > { %s1071_s8 = scalar_lea.vmem [#allocation23], %s6364_s6 }
 0x1ad   : > { %s1078_s19 = sshll.u32 %s1071_s8, 4  ;;  %s1079_s19 = int_to_ptr.vmem [resolvable:$true] %s1078_s19 }
 0x1b0   : > { %s6595_s11 = scalar_lea.hbm %s7286_s26, %s6382_s14  ;;  %s5741_s18 = scalar_lea.hbm %s7286_s26, 2048 }
 0x1b1   : > { %s5737_s4 = scalar_lea.hbm %s6595_s11, 1024  ;;  %p5742_p12 = scmp.lt.s32.totalorder %s6595_s11, %s7286_s26 }
 0x1b2   : > { %p5738_p4 = scmp.ne.s32.totalorder %s6595_s11, %s5737_s4  ;;  %p5743_p7 = scmp.lt.s32.totalorder %s5741_s18, %s5737_s4 }
 0x1b4   : > { %p5739_p6 = pnand %p5738_p4, %p7276_p13  ;;  %p5744_p11 = por %p5743_p7, %p5742_p12 }
 0x1b6   : > { %p5740_p9 = pneg %p5739_p6 }
 0x1b8   : > { %p5745_p5 = pnand %p5744_p11, %p5740_p9 }
 0x1ba   : > { %5748 = shalt.err (!%p5745_p5)
}
 0x1bb   : > { %s5749_s3 = scalar_lea.vmem %s1079_s19, 1024  ;;  %s6028_s6 = smov [#allocation23]  }
 0x1bc   : > { %p5750_p8 = scmp.ne.s32.totalorder %s1079_s19, %s5749_s3  ;;  %s5753_s14 = sshll.u32 %s6028_s6, 4  ;;  %s5754_s14 = int_to_ptr.vmem [resolvable:$false] %s5753_s14 }
 0x1bd   : > { %s5755_s22 = scalar_lea.vmem %s5754_s14, 2048  ;;  %p5756_p3 = scmp.lt.s32.totalorder %s1079_s19, %s5754_s14 }
 0x1be   : > { %p5751_p0 = pnand %p5750_p8, %p7276_p13  ;;  %p5757_p2 = scmp.lt.s32.totalorder %s5755_s22, %s5749_s3 }
 0x1c0   : > { %p5752_p1 = pneg %p5751_p0  ;;  %p5758_p10 = por %p5757_p2, %p5756_p3 }
 0x1c2   : > { %p5759_p4 = pnand %p5758_p10, %p5752_p1 }
 0x1c4   : > { %5762 = shalt.err (!%p5759_p4)
}
 0x1c5   : > { %s7287_s5 = scalar_lea.sflag [#allocation22], %s6315_s23  ;;  %s7288_s8 = sld [smem:[#allocation67_spill]] }
 0x1c6   : > { %4950 = dma.hbm_to_vmem [thread:$0]  (%p7276_p13), %s6595_s11, 1024, %s1079_s19, %s7287_s5, %s7279_s1, %s7279_s1, %s7278_s15  }
 0x1c7   : > { %s1108_s18 = scalar_lea.vmem [#allocation26], %s6318_s20 }
 0x1c8   : > { %s1115_s3 = sshll.u32 %s1108_s18, 4  ;;  %s1116_s3 = int_to_ptr.vmem [resolvable:$true] %s1115_s3 }
 0x1cb   : > { %s1113_s4 = scalar_lea.hbm %s7288_s8, %s6356_s10  ;;  %s5767_s14 = scalar_lea.hbm %s7288_s8, 32 }
 0x1cc   : > { %s5763_s6 = scalar_lea.hbm %s1113_s4, 16  ;;  %p5768_p7 = scmp.lt.s32.totalorder %s1113_s4, %s7288_s8 }
 0x1cd   : > { %p5764_p6 = scmp.ne.s32.totalorder %s1113_s4, %s5763_s6  ;;  %p5769_p11 = scmp.lt.s32.totalorder %s5767_s14, %s5763_s6 }
 0x1cf   : > { %p5765_p9 = pnand %p5764_p6, %p7276_p13  ;;  %p5770_p5 = por %p5769_p11, %p5768_p7 }
 0x1d1   : > { %p5766_p12 = pneg %p5765_p9 }
 0x1d3   : > { %p5771_p8 = pnand %p5770_p5, %p5766_p12 }
 0x1d5   : > { %5774 = shalt.err (!%p5771_p8)
}
 0x1d6   : > { %s5775_s22 = scalar_lea.vmem %s1116_s3, 16  ;;  %s6029_s15 = smov [#allocation26]  }
 0x1d7   : > { %p5776_p0 = scmp.ne.s32.totalorder %s1116_s3, %s5775_s22  ;;  %s5779_s1 = sshll.u32 %s6029_s15, 4  ;;  %s5780_s1 = int_to_ptr.vmem [resolvable:$false] %s5779_s1 }
 0x1d8   : > { %s5781_s11 = scalar_lea.vmem %s5780_s1, 32  ;;  %p5782_p2 = scmp.lt.s32.totalorder %s1116_s3, %s5780_s1 }
 0x1d9   : > { %p5777_p1 = pnand %p5776_p0, %p7276_p13  ;;  %p5783_p10 = scmp.lt.s32.totalorder %s5781_s11, %s5775_s22 }
 0x1db   : > { %p5778_p3 = pneg %p5777_p1  ;;  %p5784_p4 = por %p5783_p10, %p5782_p2 }
 0x1dd   : > { %p5785_p6 = pnand %p5784_p4, %p5778_p3 }
 0x1df   : > { %5788 = shalt.err (!%p5785_p6)
}
 0x1e0   : > { %s7289_s19 = scalar_lea.sflag [#allocation25], %s6315_s23  ;;  %s7290_s5 = sld [smem:[#allocation68_spill]] }
 0x1e1   : > { %4952 = dma.hbm_to_vmem [thread:$0]  (%p7276_p13), %s1113_s4, 16, %s1116_s3, %s7289_s19  }
 0x1e2   : > { %s1146_s6 = scalar_lea.vmem [#allocation29], %s6318_s20 }
 0x1e3   : > { %s1153_s14 = sshll.u32 %s1146_s6, 4  ;;  %s1154_s14 = int_to_ptr.vmem [resolvable:$true] %s1153_s14 }
 0x1e6   : > { %s1151_s18 = scalar_lea.hbm %s7290_s5, %s6356_s10  ;;  %s5793_s22 = scalar_lea.hbm %s7290_s5, 32 }
 0x1e7   : > { %s5789_s15 = scalar_lea.hbm %s1151_s18, 16  ;;  %p5794_p11 = scmp.lt.s32.totalorder %s1151_s18, %s7290_s5 }
 0x1e8   : > { %p5790_p9 = scmp.ne.s32.totalorder %s1151_s18, %s5789_s15  ;;  %p5795_p5 = scmp.lt.s32.totalorder %s5793_s22, %s5789_s15 }
 0x1ea   : > { %p5791_p12 = pnand %p5790_p9, %p7276_p13  ;;  %p5796_p8 = por %p5795_p5, %p5794_p11 }
 0x1ec   : > { %p5792_p7 = pneg %p5791_p12 }
 0x1ee   : > { %p5797_p0 = pnand %p5796_p8, %p5792_p7 }
 0x1f0   : > { %5800 = shalt.err (!%p5797_p0)
}
 0x1f1   : > { %s5801_s1 = scalar_lea.vmem %s1154_s14, 16  ;;  %s6030_s4 = smov [#allocation29]  }
 0x1f2   : > { %p5802_p1 = scmp.ne.s32.totalorder %s1154_s14, %s5801_s1  ;;  %s5805_s3 = sshll.u32 %s6030_s4, 4  ;;  %s5806_s3 = int_to_ptr.vmem [resolvable:$false] %s5805_s3 }
 0x1f3   : > { %s5807_s11 = scalar_lea.vmem %s5806_s3, 32  ;;  %p5808_p10 = scmp.lt.s32.totalorder %s1154_s14, %s5806_s3 }
 0x1f4   : > { %p5803_p3 = pnand %p5802_p1, %p7276_p13  ;;  %p5809_p4 = scmp.lt.s32.totalorder %s5807_s11, %s5801_s1 }
 0x1f6   : > { %p5804_p2 = pneg %p5803_p3  ;;  %p5810_p6 = por %p5809_p4, %p5808_p10 }
 0x1f8   : > { %p5811_p9 = pnand %p5810_p6, %p5804_p2 }
 0x1fa   : > { %5814 = shalt.err (!%p5811_p9)
}
 0x1fb   : > { %s7291_s19 = scalar_lea.sflag [#allocation28], %s6315_s23  ;;  %s7292_s6 = sld [smem:[#allocation70_spill]] }
 0x1fc   : > { %4954 = dma.hbm_to_vmem [thread:$0]  (%p7276_p13), %s1151_s18, 16, %s1154_s14, %s7291_s19  }
 0x1fd   : > { %s1184_s22 = scalar_lea.vmem [#allocation32], %s6318_s20 }
 0x1fe   : > { %s1191_s4 = sshll.u32 %s1184_s22, 4  ;;  %s1192_s4 = int_to_ptr.vmem [resolvable:$true] %s1191_s4 }
 0x201   : > { %s1189_s15 = scalar_lea.hbm %s7292_s6, %s6356_s10  ;;  %s5819_s1 = scalar_lea.hbm %s7292_s6, 32 }
 0x202   : > { %s5815_s3 = scalar_lea.hbm %s1189_s15, 16  ;;  %p5820_p5 = scmp.lt.s32.totalorder %s1189_s15, %s7292_s6 }
 0x203   : > { %p5816_p12 = scmp.ne.s32.totalorder %s1189_s15, %s5815_s3  ;;  %p5821_p8 = scmp.lt.s32.totalorder %s5819_s1, %s5815_s3 }
 0x205   : > { %p5817_p7 = pnand %p5816_p12, %p7276_p13  ;;  %p5822_p0 = por %p5821_p8, %p5820_p5 }
 0x207   : > { %p5818_p11 = pneg %p5817_p7 }
 0x209   : > { %p5823_p1 = pnand %p5822_p0, %p5818_p11 }
 0x20b   : > { %5826 = shalt.err (!%p5823_p1)
}
 0x20c   : > { %s5827_s11 = scalar_lea.vmem %s1192_s4, 16  ;;  %s6031_s18 = smov [#allocation32]  }
 0x20d   : > { %p5828_p3 = scmp.ne.s32.totalorder %s1192_s4, %s5827_s11  ;;  %s5831_s14 = sshll.u32 %s6031_s18, 4  ;;  %s5832_s14 = int_to_ptr.vmem [resolvable:$false] %s5831_s14 }
 0x20e   : > { %s5833_s19 = scalar_lea.vmem %s5832_s14, 32  ;;  %p5834_p4 = scmp.lt.s32.totalorder %s1192_s4, %s5832_s14 }
 0x20f   : > { %p5829_p2 = pnand %p5828_p3, %p7276_p13  ;;  %p5835_p6 = scmp.lt.s32.totalorder %s5833_s19, %s5827_s11 }
 0x211   : > { %p5830_p10 = pneg %p5829_p2  ;;  %p5836_p9 = por %p5835_p6, %p5834_p4 }
 0x213   : > { %p5837_p12 = pnand %p5836_p9, %p5830_p10 }
 0x215   : > { %5840 = shalt.err (!%p5837_p12)
}
 0x216   : > { %s7293_s22 = scalar_lea.sflag [#allocation31], %s6315_s23  ;;  %s1227_s3 = scalar_lea.hbm %s7255_s9, %s6356_s10 }
 0x217   : > { %4956 = dma.hbm_to_vmem [thread:$0]  (%p7276_p13), %s1189_s15, 16, %s1192_s4, %s7293_s22  }
 0x218   : > { %s1222_s1 = scalar_lea.vmem [#allocation35], %s6318_s20  ;;  %s5841_s14 = scalar_lea.hbm %s1227_s3, 16 }
 0x219   : > { %s1229_s18 = sshll.u32 %s1222_s1, 4  ;;  %p5842_p7 = scmp.ne.s32.totalorder %s1227_s3, %s5841_s14  ;;  %s1230_s18 = int_to_ptr.vmem [resolvable:$true] %s1229_s18 }
 0x21a   : > { %s5845_s11 = scalar_lea.hbm %s7255_s9, 32  ;;  %p5846_p8 = scmp.lt.s32.totalorder %s1227_s3, %s7255_s9 }
 0x21b   : > { %p5843_p11 = pnand %p5842_p7, %p7276_p13  ;;  %p5847_p0 = scmp.lt.s32.totalorder %s5845_s11, %s5841_s14 }
 0x21d   : > { %p5844_p5 = pneg %p5843_p11  ;;  %p5848_p1 = por %p5847_p0, %p5846_p8 }
 0x21f   : > { %p5849_p3 = pnand %p5848_p1, %p5844_p5 }
 0x221   : > { %5852 = shalt.err (!%p5849_p3)
}
 0x222   : > { %s5853_s19 = scalar_lea.vmem %s1230_s18, 16  ;;  %s6032_s15 = smov [#allocation35]  }
 0x223   : > { %p5854_p2 = scmp.ne.s32.totalorder %s1230_s18, %s5853_s19  ;;  %s5857_s4 = sshll.u32 %s6032_s15, 4  ;;  %s5858_s4 = int_to_ptr.vmem [resolvable:$false] %s5857_s4 }
 0x224   : > { %s5859_s22 = scalar_lea.vmem %s5858_s4, 32  ;;  %p5860_p6 = scmp.lt.s32.totalorder %s1230_s18, %s5858_s4 }
 0x225   : > { %p5855_p10 = pnand %p5854_p2, %p7276_p13  ;;  %p5861_p9 = scmp.lt.s32.totalorder %s5859_s22, %s5853_s19 }
 0x227   : > { %p5856_p4 = pneg %p5855_p10  ;;  %p5862_p12 = por %p5861_p9, %p5860_p6 }
 0x229   : > { %p5863_p7 = pnand %p5862_p12, %p5856_p4 }
 0x22b   : > { %5866 = shalt.err (!%p5863_p7)
}
 0x22c   : > { %s7294_s1 = scalar_lea.sflag [#allocation34], %s6315_s23  ;;  %s1265_s14 = scalar_lea.hbm %s6193_s29, %s6356_s10 }
 0x22d   : > { %4958 = dma.hbm_to_vmem [thread:$0]  (%p7276_p13), %s1227_s3, 16, %s1230_s18, %s7294_s1  }
 0x22e   : > { %s1260_s11 = scalar_lea.vmem [#allocation38], %s6318_s20  ;;  %s5867_s4 = scalar_lea.hbm %s1265_s14, 16 }
 0x22f   : > { %s1267_s15 = sshll.u32 %s1260_s11, 4  ;;  %p5868_p11 = scmp.ne.s32.totalorder %s1265_s14, %s5867_s4  ;;  %s1268_s15 = int_to_ptr.vmem [resolvable:$true] %s1267_s15 }
 0x230   : > { %s5871_s19 = scalar_lea.hbm %s6193_s29, 32  ;;  %p5872_p0 = scmp.lt.s32.totalorder %s1265_s14, %s6193_s29 }
 0x231   : > { %p5869_p5 = pnand %p5868_p11, %p7276_p13  ;;  %p5873_p1 = scmp.lt.s32.totalorder %s5871_s19, %s5867_s4 }
 0x233   : > { %p5870_p8 = pneg %p5869_p5  ;;  %p5874_p3 = por %p5873_p1, %p5872_p0 }
 0x235   : > { %p5875_p2 = pnand %p5874_p3, %p5870_p8 }
 0x237   : > { %5878 = shalt.err (!%p5875_p2)
}
 0x238   : > { %s5879_s22 = scalar_lea.vmem %s1268_s15, 16  ;;  %s6033_s20 = smov [#allocation38]  }
 0x239   : > { %p5880_p10 = scmp.ne.s32.totalorder %s1268_s15, %s5879_s22  ;;  %s5883_s10 = sshll.u32 %s6033_s20, 4  ;;  %s5884_s10 = int_to_ptr.vmem [resolvable:$false] %s5883_s10 }
 0x23a   : > { %s5885_s3 = scalar_lea.vmem %s5884_s10, 32  ;;  %p5886_p9 = scmp.lt.s32.totalorder %s1268_s15, %s5884_s10 }
 0x23b   : > { %p5881_p4 = pnand %p5880_p10, %p7276_p13  ;;  %p5887_p12 = scmp.lt.s32.totalorder %s5885_s3, %s5879_s22 }
 0x23d   : > { %p5882_p6 = pneg %p5881_p4  ;;  %p5888_p7 = por %p5887_p12, %p5886_p9 }
 0x23f   : > { %p5889_p11 = pnand %p5888_p7, %p5882_p6 }
 0x241   : > { %5892 = shalt.err (!%p5889_p11)
}
 0x242   : > { %4960 = dma.hbm_to_vmem [thread:$0]  (%p7276_p13), %s1265_s14, 16, %s1268_s15, %s1237_s0  }
 0x243 PF: > { %s7295_s18 = sld [smem:[#allocation79_spill]] }
 0x249   : > { %p7296_p5 = scmp.ne.s32.totalorder %s7295_s18, 0 }
 0x24a   : > { %s7297_s1 = sld [smem:[#allocation75_spill]] (!%p7296_p5) }
 0x24b   : > { %1276 = sbr.rel (%p7296_p5) target bundleno = 3410 (0xd52), region = 140 }
 0x250   : > { %p7298_p8 = scmp.eq.s32.totalorder %s7297_s1, 0 }
 0x252   : > { %5910 = dma.done.wait (%p7298_p8), [#allocation5], 256   ;;  %p7299_p0 = pmov %p7298_p8 }
 0x254   : > { %5912 = vsyncadd (%p7299_p0), [#allocation5], 4294967040  ;;  %p7300_p1 = pmov %p7299_p0 }
 0x255   : > { %p7301_p3 = pmov %p7299_p0 }
 0x256   : > { %5914 = dma.done.wait (%p7300_p1), [#allocation7], 640  }
 0x257   : > { %5916 = vsyncadd (%p7301_p3), [#allocation7], 4294966656  ;;  %p7302_p2 = pmov %p7299_p0 }
 0x258   : > { %p7303_p13 = pmov %p7299_p0 }
 0x259   : > { %5918 = dma.done.wait (%p7302_p2), [#allocation10], 1536  }
 0x25a   : > { %5920 = vsyncadd (%p7303_p13), [#allocation10], 4294965760  ;;  %p7304_p10 = pmov %p7299_p0 }
 0x25b   : > { %p7305_p4 = pmov %p7299_p0 }
 0x25c   : > { %5922 = dma.done.wait (%p7304_p10), [#allocation13], 528  }
 0x25d   : > { %5924 = vsyncadd (%p7305_p4), [#allocation13], 4294966768  ;;  %s7306_s2 = sld [smem:[#allocation74_spill]]  ;;  %s6699_s0 = sand.u32 1, %s7297_s1  }
 0x25e   : > { %s7307_s23 = sld [smem:[#allocation78_spill]]  ;;  %s1307_s15 = scalar_lea.sflag [#allocation16], %s6699_s0 }
 0x263   : > { %s6702_s14 = sand.u32 1, %s7306_s2  }
 0x264   : > { %s4329_s11 = sshll.u32 %s6702_s14, 5  ;;  %p7308_p6 = scmp.ne.s32.totalorder %s7307_s23, 0 }
 0x265   : > { %s6706_s4 = scalar_lea.vmem [#allocation15], %s4329_s11 }
 0x266   : > { %5926 = dma.done.wait (%p7308_p6), %s1307_s15, 1024  }
 0x267   : > { %5928 = vsyncadd (%p7308_p6), %s1307_s15, 4294966272  ;;  %s6712_s19 = scalar_lea.vmem [#allocation17], %s4329_s11  ;;  %s1325_s22 = scalar_lea.sflag [#allocation19], %s6699_s0 }
 0x268   : > { %5930 = dma.done.wait (%p7308_p6), %s1325_s22, 1040  }
 0x269   : > { %5932 = vsyncadd (%p7308_p6), %s1325_s22, 4294966256  ;;  %s4331_s10 = sshll.u32 %s6702_s14, 6  ;;  %s1342_s18 = scalar_lea.sflag [#allocation22], %s6699_s0 }
 0x26a   : > { %s6721_s3 = scalar_lea.vmem [#allocation20], %s4331_s10  ;;  %s6724_s2 = scalar_lea.vmem [#allocation21], %s4331_s10 }
 0x26b   : > { %5934 = dma.done.wait (%p7308_p6), %s1342_s18, 2048  }
 0x26c   : > { %5936 = vsyncadd (%p7308_p6), %s1342_s18, 4294965248  ;;  %s6730_s15 = scalar_lea.vmem [#allocation23], %s4331_s10  ;;  %s1360_s22 = scalar_lea.sflag [#allocation25], %s6699_s0 }
 0x26d   : > { %5938 = dma.done.wait (%p7308_p6), %s1360_s22, 32  }
 0x26e   : > { %5940 = vsyncadd (%p7308_p6), %s1360_s22, 4294967264  ;;  %s1376_s6 = scalar_lea.sflag [#allocation28], %s6699_s0  ;;  %s6740_s7 = scalar_lea.vmem [#allocation27], %s4329_s11 }
 0x26f   : > { %5942 = dma.done.wait (%p7308_p6), %s1376_s6, 528  }
 0x270   : > { %5944 = vsyncadd (%p7308_p6), %s1376_s6, 4294966768  ;;  %s1393_s20 = scalar_lea.sflag [#allocation31], %s6699_s0  ;;  %s6748_s8 = scalar_lea.vmem [#allocation30], %s4331_s10 }
 0x271   : > { %5946 = dma.done.wait (%p7308_p6), %s1393_s20, 1040  }
 0x272   : > { %5948 = vsyncadd (%p7308_p6), %s1393_s20, 4294966256  ;;  %s1410_s22 = scalar_lea.sflag [#allocation34], %s6699_s0  ;;  %s6756_s5 = scalar_lea.vmem [#allocation33], %s4331_s10 }
 0x273   : > { %5950 = dma.done.wait (%p7308_p6), %s1410_s22, 1040  }
 0x274   : > { %5952 = vsyncadd (%p7308_p6), %s1410_s22, 4294966256  ;;  %s1421_s6 = scalar_lea.vmem [#allocation35], %s6702_s14  ;;  %s1427_s18 = scalar_lea.sflag [#allocation37], %s6699_s0 }
 0x275   : > { %s6764_s9 = scalar_lea.vmem [#allocation36], %s4331_s10 }
 0x276   : > { %5954 = dma.done.wait (%p7308_p6), %s1427_s18, 1040  }
 0x277   : > { %5956 = vsyncadd (%p7308_p6), %s1427_s18, 4294966256  ;;  %s7309_s20 = sld [smem:[#allocation62_spill]]  ;;  %p1581_p9 = scmp.lt.s32.totalorder %s7297_s1, 1 }
 0x278   : > { %s1438_s12 = scalar_lea.vmem [#allocation38], %s6702_s14  ;;  %p7310_p12 = scmp.ne.s32.totalorder %s7297_s1, 0 }
 0x279   : > { %s6772_s11 = scalar_select %p1581_p9, %s7297_s1, 1 }
 0x27a   : > { %1588 = sbr.rel (%p7310_p12) target bundleno = 884 (0x374), region = 236  ;;  %s7311_s23 = sld [smem:[#allocation52_spill]] (!%p7310_p12) }
 0x27d   : > { %s1583_s22 = scalar_lea.vmem %s7309_s20, %s6772_s11 }
 0x27f   : > { %v5110_v0 = vld [vmem:[#allocation12 + $0x18] sm:$0xff]   ;;  %v6034_v1 = vmov 0.0   ;;  %v5111_v2 = vld [vmem:[#allocation12 + $0x10] sm:$0xff]   ;;  %vm6035_vm0 = vmmov 0   ;;  %v5112_v3 = vld [vmem:[#allocation12 + $0x8] sm:$0xff]   ;;  %vm1631_vm1 = vcmask 523264  }
 0x280   : > { %4665 = vmatprep.subr.bf16.mxu0 %v6034_v1  ;;  %4673 = vmatprep.mubr.msk.bf16.mxu0 %vm6035_vm0, %v6034_v1  ;;  %v5113_v4 = vld [vmem:[#allocation12] sm:$0xff]   ;;  %v1589_v5 = vld [vmem:[#allocation4] sm:$0xff]  ;;  %v1590_v6 = vld [vmem:[#allocation4 + $0x8] sm:$0xff] }
 0x281   : > { %4666 = vmatpush3.bf16.msra.mxu0 %v5110_v0  ;;  %v1599_v7 = vpack.c.bf16 %v1590_v6, %v1589_v5  ;;  %v1696_v8 = vld [vmem:[%s7311_s23] sm:$0x1]  ;;  %v4339_v9 = vld [vmem:[#allocation14] ss:$0 sm:$0xff] }
 0x282   : > { %4667 = vmatprep.subr.bf16.mxu0 %v6034_v1  ;;  %1697 = vst [vmem:[#allocation3] sm:$0x1] %v1696_v8 }
 0x285   : > { %4668 = vmatpush3.bf16.msra.mxu0 %v5111_v2 }
 0x286   : > { %4669 = vmatprep.subr.bf16.mxu0 %v6034_v1 }
 0x289   : > { %4670 = vmatpush3.bf16.msra.mxu0 %v5112_v3 }
 0x28a   : > { %4671 = vmatprep.subr.bf16.mxu0 %v6034_v1 }
 0x28d   : > { %4672 = vmatpush3.bf16.msra.mxu0 %v5113_v4 }
 0x290   : > { %4674 = vmatmul.mubr.msk.bf16.vlgmr.msra.gmra.mxu0 %vm1631_vm1, %v1599_v7 }
 0x350   : > { %v1669_v10 = vpop.f32.mrf.mxu0 }
 0x351   : > { %v1670_v11 = vadd.f32 %v4339_v9, %v1669_v10 }
 0x352   : > { %v4675_v12 = vpop.f32.mrf.mxu0 }
 0x353   : > { %v1678_v13 = vmul.f32 0.044715, %v1670_v11  ;;  %v1676_v27 = vmul.f32 0.5, %v1670_v11 }
 0x354   : > { %v1672_v14 = vpop.f32.mrf.mxu0 }
 0x355   : > { %v1680_v15 = vmul.f32 %v1678_v13, %v1670_v11  ;;  %v1673_v16 = vadd.f32 %v4339_v9, %v1672_v14 }
 0x356   : > { %v4676_v17 = vpop.f32.mrf.mxu0 }
 0x357   : > { %v1682_v18 = vmul.f32 %v1680_v15, %v1670_v11  ;;  %v1679_v19 = vmul.f32 0.044715, %v1673_v16  ;;  %v1677_v31 = vmul.f32 0.5, %v1673_v16 }
 0x359   : > { %v1684_v20 = vadd.f32 %v1682_v18, %v1670_v11  ;;  %v1681_v21 = vmul.f32 %v1679_v19, %v1673_v16 }
 0x35b   : > { %v1686_v22 = vmul.f32 0.7978846, %v1684_v20  ;;  %v1683_v23 = vmul.f32 %v1681_v21, %v1673_v16 }
 0x35d   : > { %5114 = vtanh.f32 %v1686_v22  ;;  %v1685_v24 = vadd.f32 %v1683_v23, %v1673_v16 }
 0x35f   : > { %v1687_v25 = vmul.f32 0.7978846, %v1685_v24 }
 0x361   : > { %5116 = vtanh.f32 %v1687_v25 }
 0x36a   : > { %v5115_v26 = vpop.eup %5114 }
 0x36b   : > { %v1690_v28 = vadd.f32 1.0, %v5115_v26 }
 0x36d   : > { %v1692_v29 = vmul.f32 %v1690_v28, %v1676_v27 }
 0x36e   : > { %v5117_v30 = vpop.eup %5116 }
 0x36f   : > { %1694 = vst.msk [vmem:[#allocation2] sm:$0xff] %vm1631_vm1, %v1692_v29  ;;  %v1691_v32 = vadd.f32 1.0, %v5117_v30 }
 0x371   : > { %v1693_v33 = vmul.f32 %v1691_v32, %v1677_v31 }
 0x373   : > { %1695 = vst.msk [vmem:[#allocation2 + $0x8] sm:$0xff] %vm1631_vm1, %v1693_v33 }
 0x374 PF: > { %v5118_v34 = vld [vmem:[%s6706_s4 + $0x18] sm:$0xff]   ;;  %v6036_v35 = vmov 0.0   ;;  %v5119_v36 = vld [vmem:[%s6706_s4 + $0x10] sm:$0xff]   ;;  %vm6037_vm2 = vmmov 0   ;;  %v5120_v37 = vld [vmem:[%s6706_s4 + $0x8] sm:$0xff]   ;;  %vm1745_vm3 = vcmask 523264  }
 0x375   : > { %4677 = vmatprep.subr.bf16.mxu1 %v6036_v35  ;;  %4701 = vmatprep.subr.bf16.mxu0 %v6036_v35  ;;  %v5121_v38 = vld [vmem:[%s6706_s4] sm:$0xff]   ;;  %v5122_v42 = vld [vmem:[%s6712_s19 + $0x18] sm:$0xff]   ;;  %v5123_v44 = vld [vmem:[%s6712_s19 + $0x10] sm:$0xff]   ;;  %s7312_s1 = sld [smem:[#allocation54_spill]]  ;;  %s7314_s4 = scalar_lea.vmem [#allocation18], %s6702_s14  ;;  %vm2786_vm12 = vcmask 130048  }
 0x376   : > { %4678 = vmatpush3.bf16.msra.mxu1 %v5118_v34  ;;  %4685 = vmatprep.mubr.msk.bf16.mxu1 %vm6037_vm2, %v6036_v35  ;;  %v1698_v39 = vld [vmem:[#allocation2] sm:$0xff]  ;;  %v5124_v46 = vld [vmem:[%s6712_s19 + $0x8] sm:$0xff]   ;;  %v5125_v47 = vld [vmem:[%s6712_s19] sm:$0xff]   ;;  %s7315_s19 = sld [smem:[#allocation56_spill]]  ;;  %s7318_s18 = scalar_lea.vmem [#allocation26], %s6702_s14 }
 0x377   : > { %4679 = vmatprep.subr.bf16.mxu1 %v6036_v35  ;;  %4709 = vmatprep.mubr.msk.bf16.mxu0 %vm6037_vm2, %v6036_v35  ;;  %v5131_v43 = vld [vmem:[#allocation11 + $0x18] sm:$0xff]   ;;  %v5133_v45 = vld [vmem:[#allocation11 + $0x10] sm:$0xff]   ;;  %v5129_v51 = vld [vmem:[%s6721_s3 + $0x20] sm:$0xff]   ;;  %s7316_s10 = sld [smem:[#allocation55_spill]] }
 0x378   : > { %4702 = vmatpush3.bf16.msra.mxu0 %v5131_v43  ;;  %v5126_v48 = vld [vmem:[%s6721_s3 + $0x38] sm:$0xff]   ;;  %v5127_v49 = vld [vmem:[%s6721_s3 + $0x30] sm:$0xff]   ;;  %v5128_v50 = vld [vmem:[%s6721_s3 + $0x28] sm:$0xff]   ;;  %v6038_v43 = vmov 0  }
 0x379   : > { %4703 = vmatprep.subr.bf16.mxu0 %v6036_v35  ;;  %v5130_v52 = vld [vmem:[%s6721_s3 + $0x18] sm:$0xff]   ;;  %v5132_v53 = vld [vmem:[%s6721_s3 + $0x10] sm:$0xff]   ;;  %v5134_v54 = vld [vmem:[%s6721_s3 + $0x8] sm:$0xff]  }
 0x37a   : > { %4680 = vmatpush3.bf16.msra.mxu1 %v5119_v36  ;;  %v1699_v40 = vld [vmem:[#allocation2 + $0x8] sm:$0xff]  ;;  %v5135_v55 = vld [vmem:[#allocation11 + $0x8] sm:$0xff]   ;;  %v1700_v58 = vld [vmem:[#allocation3] sm:$0x1] }
 0x37b   : > { %4681 = vmatprep.subr.bf16.mxu1 %v6036_v35  ;;  %v1713_v41 = vpack.c.bf16 %v1699_v40, %v1698_v39  ;;  %v5136_v56 = vld [vmem:[%s6721_s3] sm:$0xff]   ;;  %v6829_v59 = vpack.c.bf16 %v1700_v58, %v1700_v58  ;;  %v5149_v63 = vld [vmem:[%s7312_s1 + $0x60] ss:$8 sps:$4 sm:$0xff]   ;;  %v5140_v18 = vld [vmem:[%s6724_s2 + $0x28] sm:$0xff]   ;;  %s7317_s3 = sld [smem:[#allocation53_spill]] }
 0x37c   : > { %4704 = vmatpush3.bf16.msra.mxu0 %v5133_v45  ;;  %v5137_v57 = vld [vmem:[#allocation11] sm:$0xff]   ;;  %v5148_v60 = vld [vmem:[%s7312_s1 + $0x74] ss:$8 sps:$4 sm:$0xff]   ;;  %v4345_v9 = vld [vmem:[%s1583_s22] ss:$0 sm:$0xff] }
 0x37d   : > { %4705 = vmatprep.subr.bf16.mxu0 %v6036_v35  ;;  %v5146_v61 = vld [vmem:[%s7312_s1 + $0x70] ss:$8 sps:$4 sm:$0xff]   ;;  %v5151_v62 = vld [vmem:[%s7312_s1 + $0x64] ss:$8 sps:$4 sm:$0xff]   ;;  %v5154_v0 = vld [vmem:[%s7312_s1 + $0x54] ss:$8 sps:$4 sm:$0xff]  }
 0x37e   : > { %4682 = vmatpush3.bf16.msra.mxu1 %v5120_v37  ;;  %v5152_v1 = vld [vmem:[%s7312_s1 + $0x50] ss:$8 sps:$4 sm:$0xff]   ;;  %v5157_v2 = vld [vmem:[%s7312_s1 + $0x44] ss:$8 sps:$4 sm:$0xff]   ;;  %v5155_v3 = vld [vmem:[%s7312_s1 + $0x40] ss:$8 sps:$4 sm:$0xff]  }
 0x37f   : > { %4683 = vmatprep.subr.bf16.mxu1 %v6036_v35  ;;  %v5160_v4 = vld [vmem:[%s7312_s1 + $0x34] ss:$8 sps:$4 sm:$0xff]   ;;  %v5158_v5 = vld [vmem:[%s7312_s1 + $0x30] ss:$8 sps:$4 sm:$0xff]   ;;  %v5163_v6 = vld [vmem:[%s7312_s1 + $0x24] ss:$8 sps:$4 sm:$0xff]  }
 0x380   : > { %4706 = vmatpush3.bf16.msra.mxu0 %v5135_v55  ;;  %v5161_v7 = vld [vmem:[%s7312_s1 + $0x20] ss:$8 sps:$4 sm:$0xff]   ;;  %v5141_v20 = vld [vmem:[%s6724_s2 + $0x20] sm:$0xff]   ;;  %v5144_v26 = vld [vmem:[%s6724_s2 + $0x8] sm:$0xff]  }
 0x381   : > { %4707 = vmatprep.subr.bf16.mxu0 %v6036_v35  ;;  %v5138_v15 = vld [vmem:[%s6724_s2 + $0x38] sm:$0xff]   ;;  %v5139_v17 = vld [vmem:[%s6724_s2 + $0x30] sm:$0xff]   ;;  %v5145_v27 = vld [vmem:[%s6724_s2] sm:$0xff]  }
 0x382   : > { %4684 = vmatpush3.bf16.msra.mxu1 %v5121_v38  ;;  %v5142_v23 = vld [vmem:[%s6724_s2 + $0x18] sm:$0xff]   ;;  %v5143_v25 = vld [vmem:[%s6724_s2 + $0x10] sm:$0xff]   ;;  %v5164_v33 = vld [vmem:[%s7312_s1 + $0x10] ss:$8 sps:$4 sm:$0xff]   ;;  %s6039_s2 = smov 64  }
 0x383   : > { %4689 = vmatprep.subr.bf16.mxu1 %v6036_v35  ;;  %v4351_v28 = vld [vmem:[%s7314_s4] ss:$0 sm:$0xff]  ;;  %v5166_v32 = vld [vmem:[%s7312_s1 + $0x14] ss:$8 sps:$4 sm:$0xff]   ;;  %v5169_v38 = vld [vmem:[%s7312_s1 + $0x4] ss:$8 sps:$4 sm:$0xff]  }
 0x384   : > { %4708 = vmatpush3.bf16.msra.mxu0 %v5137_v57  ;;  %v5167_v39 = vld [vmem:[%s7312_s1] ss:$8 sps:$4 sm:$0xff]   ;;  %v5173_v57 = vld [vmem:[%s7315_s19 + $0x30] sm:$0xff]  }
 0x385   : > { %4686 = vmatmul.mubr.msk.bf16.vlgmr.msra.gmra.mxu1 %vm1745_vm3, %v1713_v41  ;;  %4733 = vmatprep.subr.bf16.mxu0 %v6036_v35 }
 0x386   : > { %4690 = vmatpush3.bf16.msra.mxu1 %v5122_v42  ;;  %4697 = vmatprep.mubr.msk.bf16.mxu1 %vm6037_vm2, %v6036_v35 }
 0x387   : > { %4691 = vmatprep.subr.bf16.mxu1 %v6036_v35 }
 0x38a   : > { %4692 = vmatpush3.bf16.msra.mxu1 %v5123_v44  ;;  %v2156_v44 = vlaneseq }
 0x38b   : > { %4693 = vmatprep.subr.bf16.mxu1 %v6036_v35 }
 0x38c   : > { %v2157_v45 = vshrl.u32 %v2156_v44, 7  ;;  %v2312_v44 = vld [vmem:[#allocation6 + $0x18] sm:$0xff] }
 0x38e   : > { %4694 = vmatpush3.bf16.msra.mxu1 %v5124_v46  ;;  %v6892_v46 = vsub.s32 0, %v2157_v45 }
 0x38f   : > { %4695 = vmatprep.subr.bf16.mxu1 %v6036_v35 }
 0x392   : > { %4696 = vmatpush3.bf16.msra.mxu1 %v5125_v47 }
 0x393   : > { %4713 = vmatprep.subr.bf16.mxu1 %v6036_v35 }
 0x395   : > { %4698 = vmatmul.mubr.msk.bf16.vlgmr.msra.gmra.mxu1 %vm1745_vm3, %v1713_v41  ;;  %v5170_v41 = vld [vmem:[%s7315_s19 + $0x78] sm:$0xff]  }
 0x396   : > { %4714 = vmatpush3.bf16.msra.mxu1 %v5126_v48  ;;  %4729 = vmatprep.mubr.msk.bf16.mxu1 %vm6037_vm2, %v6036_v35 }
 0x397   : > { %4715 = vmatprep.subr.bf16.mxu1 %v6036_v35 }
 0x39a   : > { %4716 = vmatpush3.bf16.msra.mxu1 %v5127_v49 }
 0x39b   : > { %4717 = vmatprep.subr.bf16.mxu1 %v6036_v35 }
 0x39e   : > { %4718 = vmatpush3.bf16.msra.mxu1 %v5128_v50  ;;  %v5171_v50 = vld [vmem:[%s7315_s19 + $0x38] sm:$0xff]  }
 0x39f   : > { %4719 = vmatprep.subr.bf16.mxu1 %v6036_v35 }
 0x3a2   : > { %4720 = vmatpush3.bf16.msra.mxu1 %v5129_v51  ;;  %v5172_v51 = vld [vmem:[%s7315_s19 + $0x70] sm:$0xff]  }
 0x3a3   : > { %4721 = vmatprep.subr.bf16.mxu1 %v6036_v35 }
 0x3a6   : > { %4722 = vmatpush3.bf16.msra.mxu1 %v5130_v52 }
 0x3a7   : > { %4723 = vmatprep.subr.bf16.mxu1 %v6036_v35 }
 0x3aa   : > { %4724 = vmatpush3.bf16.msra.mxu1 %v5132_v53 }
 0x3ab   : > { %4725 = vmatprep.subr.bf16.mxu1 %v6036_v35 }
 0x3ae   : > { %4726 = vmatpush3.bf16.msra.mxu1 %v5134_v54 }
 0x3af   : > { %4727 = vmatprep.subr.bf16.mxu1 %v6036_v35 }
 0x3b2   : > { %4728 = vmatpush3.bf16.msra.mxu1 %v5136_v56 }
 0x3b3   : > { %2266 = vmatprep.subr.bf16.mxu1 %v5148_v60 }
 0x3b5   : > { %4730 = vmatmul.mubr.bf16.vlgmr.msra.gmra.mxu1 %v6829_v59 }
 0x3b6   : > { %2267 = vmatpush1.bf16.msra.mxu1 %v5146_v61  ;;  %2298 = vmatprep.mubr.bf16.mxu1 %v6038_v43 }
 0x3b7   : > { %2268 = vmatprep.subr.bf16.mxu1 %v5151_v62 }
 0x3ba   : > { %2269 = vmatpush1.bf16.msra.mxu1 %v5149_v63 }
 0x3bb   : > { %2270 = vmatprep.subr.bf16.mxu1 %v5154_v0 }
 0x3be   : > { %2271 = vmatpush1.bf16.msra.mxu1 %v5152_v1 }
 0x3bf   : > { %2272 = vmatprep.subr.bf16.mxu1 %v5157_v2 }
 0x3c2   : > { %2273 = vmatpush1.bf16.msra.mxu1 %v5155_v3 }
 0x3c3   : > { %2274 = vmatprep.subr.bf16.mxu1 %v5160_v4 }
 0x3c6   : > { %2275 = vmatpush1.bf16.msra.mxu1 %v5158_v5 }
 0x3c7   : > { %2276 = vmatprep.subr.bf16.mxu1 %v5163_v6 }
 0x3ca   : > { %2277 = vmatpush1.bf16.msra.mxu1 %v5161_v7 }
 0x3cb   : > { %2278 = vmatprep.subr.bf16.mxu1 %v5166_v32 }
 0x3ce   : > { %2279 = vmatpush1.bf16.msra.mxu1 %v5164_v33 }
 0x3cf   : > { %2280 = vmatprep.subr.bf16.mxu1 %v5169_v38 }
 0x3d2   : > { %2281 = vmatpush1.bf16.msra.mxu1 %v5167_v39 }
 0x445   : > { %v1783_v8 = vpop.f32.mrf.mxu1 }
 0x446   : > { %v6848_v12 = vadd.f32 %v4345_v9, %v1783_v8 }
 0x447   : > { %v4687_v10 = vpop.f32.mrf.mxu1 }
 0x449   : > { %v1786_v11 = vpop.f32.mrf.mxu1 }
 0x44a   : > { %v6850_v13 = vadd.f32 %v4345_v9, %v1786_v11  ;;  %v5180_v9 = vld [vmem:[%s7315_s19 + $0x50] sm:$0xff]  }
 0x44b   : > { %v4688_v14 = vpop.f32.mrf.mxu1 }
 0x44c   : > { %v6855_v16 = vpack.c.bf16 %v6850_v13, %v6848_v12  ;;  %v5181_v14 = vld [vmem:[%s7315_s19 + $0x10] sm:$0xff]  }
 0x44e   : > { %4710 = vmatmul.mubr.msk.bf16.vlgmr.msra.gmra.mxu0 %vm1745_vm3, %v6855_v16 }
 0x44f   : > { %4734 = vmatpush3.bf16.msra.mxu0 %v5138_v15  ;;  %4749 = vmatprep.mubr.msk.bf16.mxu0 %vm6037_vm2, %v6036_v35  ;;  %v5182_v15 = vld [vmem:[%s7315_s19 + $0x48] sm:$0xff]  }
 0x450   : > { %4735 = vmatprep.subr.bf16.mxu0 %v6036_v35 }
 0x453   : > { %4736 = vmatpush3.bf16.msra.mxu0 %v5139_v17 }
 0x454   : > { %4737 = vmatprep.subr.bf16.mxu0 %v6036_v35 }
 0x455   : > { %v1863_v19 = vpop.f32.mrf.mxu1 }
 0x456   : > { %v6878_v30 = vadd.f32 %v4351_v28, %v1863_v19 }
 0x457   : > { %4738 = vmatpush3.bf16.msra.mxu0 %v5140_v18  ;;  %v4699_v21 = vpop.f32.mrf.mxu1  ;;  %v5183_v18 = vld [vmem:[%s7315_s19 + $0x8] sm:$0xff]  }
 0x458   : > { %4739 = vmatprep.subr.bf16.mxu0 %v6036_v35 }
 0x459   : > { %v1866_v22 = vpop.f32.mrf.mxu1 }
 0x45a   : > { %v6880_v31 = vadd.f32 %v4351_v28, %v1866_v22 }
 0x45b   : > { %4740 = vmatpush3.bf16.msra.mxu0 %v5141_v20  ;;  %v4700_v24 = vpop.f32.mrf.mxu1  ;;  %v5184_v20 = vld [vmem:[%s7315_s19 + $0x40] sm:$0xff]  }
 0x45c   : > { %4741 = vmatprep.subr.bf16.mxu0 %v6036_v35  ;;  %v6886_v37 = vpack.c.bf16 %v6880_v31, %v6878_v30 }
 0x45e   : > { %v2735_v42 = vmul.bf16 %v5170_v41, %v6886_v37  ;;  %v2727_v56 = vmul.bf16 %v5171_v50, %v6886_v37  ;;  %v2730_v11 = vmul.bf16 %v5180_v9, %v6886_v37  ;;  %v2722_v17 = vmul.bf16 %v5181_v14, %v6886_v37  ;;  %v6941_v14 = vld [vmem:[%s7317_s3 + $0x18] sm:$0xff] }
 0x45f   : > { %4742 = vmatpush3.bf16.msra.mxu0 %v5142_v23  ;;  %v2729_v19 = vmul.bf16 %v5182_v15, %v6886_v37  ;;  %v2721_v22 = vmul.bf16 %v5183_v18, %v6886_v37  ;;  %v5185_v23 = vld [vmem:[%s7315_s19] sm:$0xff]   ;;  %vm2389_vm10 = vcmp.gt.f32.partialorder %v6941_v14, 0.0 }
 0x460   : > { %4743 = vmatprep.subr.bf16.mxu0 %v6036_v35 }
 0x463   : > { %4744 = vmatpush3.bf16.msra.mxu0 %v5143_v25  ;;  %v2728_v25 = vmul.bf16 %v5184_v20, %v6886_v37 }
 0x464   : > { %4745 = vmatprep.subr.bf16.mxu0 %v6036_v35 }
 0x467   : > { %4746 = vmatpush3.bf16.msra.mxu0 %v5144_v26 }
 0x468   : > { %4747 = vmatprep.subr.bf16.mxu0 %v6036_v35 }
 0x46b   : > { %4748 = vmatpush3.bf16.msra.mxu0 %v5145_v27 }
 0x46c   : > { %2331 = vmatprep.subr.bf16.mxu0 %v5148_v60  ;;  %v2734_v60 = vmul.bf16 %v5172_v51, %v6886_v37 }
 0x46e   : > { %4750 = vmatmul.mubr.bf16.vlgmr.msra.gmra.mxu0 %v6829_v59 }
 0x46f   : > { %2332 = vmatpush1.bf16.msra.mxu0 %v5146_v61  ;;  %2363 = vmatprep.mubr.bf16.mxu0 %v6038_v43  ;;  %v5174_v61 = vld [vmem:[%s7315_s19 + $0x68] sm:$0xff]  }
 0x470   : > { %2333 = vmatprep.subr.bf16.mxu0 %v5151_v62  ;;  %v2726_v62 = vmul.bf16 %v5173_v57, %v6886_v37 }
 0x473   : > { %2334 = vmatpush1.bf16.msra.mxu0 %v5149_v63  ;;  %v5175_v63 = vld [vmem:[%s7315_s19 + $0x28] sm:$0xff]  }
 0x474   : > { %2335 = vmatprep.subr.bf16.mxu0 %v5154_v0  ;;  %v2733_v0 = vmul.bf16 %v5174_v61, %v6886_v37 }
 0x475   : > { %v2046_v29 = vpop.f32.mrf.mxu1 }
 0x476   : > { %v2159_v48 = vrot.slane %v2046_v29, %v6892_v46 }
 0x477   : > { %2336 = vmatpush1.bf16.msra.mxu0 %v5152_v1  ;;  %v4731_v34 = vpop.f32.mrf.mxu1  ;;  %v5176_v1 = vld [vmem:[%s7315_s19 + $0x60] sm:$0xff]  }
 0x478   : > { %2337 = vmatprep.subr.bf16.mxu0 %v5157_v2  ;;  %v2725_v2 = vmul.bf16 %v5175_v63, %v6886_v37 }
 0x479   : > { %v2049_v36 = vpop.f32.mrf.mxu1 }
 0x47a   : > { %v5186_v36 = vld [vmem:[%s7316_s10 + $0x78] sm:$0xff]  }
 0x47b   : > { %2338 = vmatpush1.bf16.msra.mxu0 %v5155_v3  ;;  %v4732_v40 = vpop.f32.mrf.mxu1  ;;  %v5177_v3 = vld [vmem:[%s7315_s19 + $0x20] sm:$0xff]   ;;  %4542 = vmatprep.subr.bf16.mxu1 %v5186_v36 }
 0x47c   : > { %2339 = vmatprep.subr.bf16.mxu0 %v5160_v4  ;;  %v2732_v4 = vmul.bf16 %v5176_v1, %v6886_v37  ;;  %v5192_v36 = vld [vmem:[%s7316_s10 + $0x60] sm:$0xff]  }
 0x47f   : > { %2340 = vmatpush1.bf16.msra.mxu0 %v5158_v5  ;;  %v5178_v5 = vld [vmem:[%s7315_s19 + $0x58] sm:$0xff]  }
 0x480   : > { %2341 = vmatprep.subr.bf16.mxu0 %v5163_v6  ;;  %v2724_v6 = vmul.bf16 %v5177_v3, %v6886_v37  ;;  %v2731_v8 = vmul.bf16 %v5178_v5, %v6886_v37  ;;  %v6933_v3 = vld [vmem:[%s7317_s3] sm:$0xff] }
 0x481   : > { %vm2386_vm5 = vcmp.gt.f32.partialorder %v6933_v3, 0.0 }
 0x483   : > { %2342 = vmatpush1.bf16.msra.mxu0 %v5161_v7  ;;  %v5179_v7 = vld [vmem:[%s7315_s19 + $0x18] sm:$0xff]  }
 0x484   : > { %2343 = vmatprep.subr.bf16.mxu0 %v5166_v32  ;;  %v2723_v10 = vmul.bf16 %v5179_v7, %v6886_v37  ;;  %v2720_v32 = vmul.bf16 %v5185_v23, %v6886_v37 }
 0x487   : > { %2344 = vmatpush1.bf16.msra.mxu0 %v5164_v33 }
 0x488   : > { %2345 = vmatprep.subr.bf16.mxu0 %v5169_v38  ;;  %v5187_v38 = vld [vmem:[%s7316_s10 + $0x38] sm:$0xff]  }
 0x48b   : > { %2346 = vmatpush1.bf16.msra.mxu0 %v5167_v39  ;;  %v5188_v39 = vld [vmem:[%s7316_s10 + $0x70] sm:$0xff]  }
 0x48c   : > { %4564 = vmatprep.subr.bf16.mxu0 %v2735_v42  ;;  %v2310_v42 = vld [vmem:[#allocation6 + $0x8] sm:$0xff] }
 0x50e   : > { %v1940_v47 = vpop.f32.mrf.mxu0 }
 0x50f   : > { %v2160_v53 = vmul.f32 %v2159_v48, %v1940_v47 }
 0x510   : > { %v4711_v49 = vpop.f32.mrf.mxu0 }
 0x512   : > { %v1943_v52 = vpop.f32.mrf.mxu0 }
 0x513   : > { %v2161_v54 = vmul.f32 %v2159_v48, %v1943_v52 }
 0x514   : > { %v4712_v55 = vpop.f32.mrf.mxu0 }
 0x515   : > { %v2178_v58 = vpack.c.bf16 %v2161_v54, %v2160_v53 }
 0x517   : > { %2364 = vmatmul.mubr.bf16.vlgmr.msra.gmra.mxu0 %v2178_v58 }
 0x518   : > { %4565 = vmatpush3.bf16.msra.mxu0 %v2727_v56 }
 0x519   : > { %4566 = vmatprep.subr.bf16.mxu0 %v2734_v60 }
 0x51c   : > { %4567 = vmatpush3.bf16.msra.mxu0 %v2726_v62 }
 0x51d   : > { %4568 = vmatprep.subr.bf16.mxu0 %v2733_v0 }
 0x520   : > { %4569 = vmatpush3.bf16.msra.mxu0 %v2725_v2 }
 0x521   : > { %4570 = vmatprep.subr.bf16.mxu0 %v2732_v4  ;;  %v6936_v4 = vld [vmem:[%s7317_s3 + $0x8] sm:$0xff] }
 0x522   : > { %vm2387_vm6 = vcmp.gt.f32.partialorder %v6936_v4, 0.0 }
 0x524   : > { %4571 = vmatpush3.bf16.msra.mxu0 %v2724_v6 }
 0x525   : > { %4572 = vmatprep.subr.bf16.mxu0 %v2731_v8 }
 0x528   : > { %4573 = vmatpush3.bf16.msra.mxu0 %v2723_v10 }
 0x529   : > { %4574 = vmatprep.subr.bf16.mxu0 %v2730_v11 }
 0x52c   : > { %4575 = vmatpush3.bf16.msra.mxu0 %v2722_v17 }
 0x52d   : > { %4576 = vmatprep.subr.bf16.mxu0 %v2729_v19  ;;  %v1703_v19 = vld [vmem:[%s7317_s3 + $0x10] sm:$0xff] }
 0x52e   : > { %v2150_v21 = vpop.f32.mrf.mxu0  ;;  %vm2388_vm11 = vcmp.gt.f32.partialorder %v1703_v19, 0.0 }
 0x52f   : > { %v2182_v24 = vrot.slane %v2150_v21, %v6892_v46 }
 0x530   : > { %v4751_v26 = vpop.f32.mrf.mxu0  ;;  %4577 = vmatpush3.bf16.msra.mxu0 %v2721_v22 }
 0x531   : > { %v2183_v27 = vmul.f32 %v2182_v24, %v6878_v30  ;;  %v2184_v28 = vmul.f32 %v2182_v24, %v6880_v31  ;;  %4578 = vmatprep.subr.bf16.mxu0 %v2728_v25  ;;  %v2309_v30 = vld [vmem:[#allocation6] sm:$0xff]  ;;  %v2311_v31 = vld [vmem:[#allocation6 + $0x10] sm:$0xff] }
 0x532   : > { %v2153_v29 = vpop.f32.mrf.mxu0 }
 0x533   : > { %v2185_v33 = vpack.c.bf16 %v2184_v28, %v2183_v27 }
 0x534   : > { %v4752_v34 = vpop.f32.mrf.mxu0  ;;  %4579 = vmatpush3.bf16.msra.mxu0 %v2720_v32  ;;  %v5189_v32 = vld [vmem:[%s7316_s10 + $0x30] sm:$0xff]  }
 0x535   : > { %2299 = vmatmul.mubr.bf16.vlgmr.msra.gmra.mxu1 %v2185_v33  ;;  %4779 = vmatprep.subr.bf16.mxu0 %v6036_v35  ;;  %v5190_v33 = vld [vmem:[%s7316_s10 + $0x68] sm:$0xff]  }
 0x536   : > { %4543 = vmatpush3.bf16.msra.mxu1 %v5187_v38  ;;  %v5191_v34 = vld [vmem:[%s7316_s10 + $0x28] sm:$0xff]   ;;  %v5193_v38 = vld [vmem:[%s7316_s10 + $0x20] sm:$0xff]  }
 0x537   : > { %4544 = vmatprep.subr.bf16.mxu1 %v5188_v39  ;;  %v5194_v39 = vld [vmem:[%s7316_s10 + $0x58] sm:$0xff]  }
 0x53a   : > { %4545 = vmatpush3.bf16.msra.mxu1 %v5189_v32 }
 0x53b   : > { %4546 = vmatprep.subr.bf16.mxu1 %v5190_v33 }
 0x53e   : > { %4547 = vmatpush3.bf16.msra.mxu1 %v5191_v34 }
 0x53f   : > { %4548 = vmatprep.subr.bf16.mxu1 %v5192_v36 }
 0x542   : > { %4549 = vmatpush3.bf16.msra.mxu1 %v5193_v38 }
 0x543   : > { %4550 = vmatprep.subr.bf16.mxu1 %v5194_v39 }
 0x5d7   : > { %v2365_v53 = vpop.f32.mrf.mxu0 }
 0x5d9   : > { %v2367_v58 = vpop.f32.mrf.mxu0 }
 0x5db   : > { %v2369_v0 = vpop.f32.mrf.mxu0 }
 0x5dd   : > { %v2371_v8 = vpop.f32.mrf.mxu0 }
 0x5f5   : > { %v2300_v40 = vpop.f32.mrf.mxu1 }
 0x5f6   : > { %v2313_v37 = vmul.f32 %v2309_v30, %v2300_v40  ;;  %v5195_v40 = vld [vmem:[%s7316_s10 + $0x18] sm:$0xff]   ;;  %v5196_v30 = vld [vmem:[%s7316_s10 + $0x50] sm:$0xff]  }
 0x5f7   : > { %v2302_v41 = vpop.f32.mrf.mxu1  ;;  %4551 = vmatpush3.bf16.msra.mxu1 %v5195_v40  ;;  %v4428_v40 = vld [vmem:[%s7318_s18] ss:$0 sm:$0xff] }
 0x5f8   : > { %v2314_v48 = vmul.f32 %v2310_v42, %v2302_v41  ;;  %v5197_v41 = vld [vmem:[%s7316_s10 + $0x10] sm:$0xff]   ;;  %4552 = vmatprep.subr.bf16.mxu1 %v5196_v30  ;;  %v5199_v42 = vld [vmem:[%s7316_s10 + $0x8] sm:$0xff]  }
 0x5f9   : > { %v2304_v43 = vpop.f32.mrf.mxu1 }
 0x5fa   : > { %v2315_v45 = vmul.f32 %v2311_v31, %v2304_v43  ;;  %v5198_v31 = vld [vmem:[%s7316_s10 + $0x48] sm:$0xff]   ;;  %v5200_v43 = vld [vmem:[%s7316_s10 + $0x40] sm:$0xff]  }
 0x5fb   : > { %v2306_v47 = vpop.f32.mrf.mxu1  ;;  %4553 = vmatpush3.bf16.msra.mxu1 %v5197_v41 }
 0x5fc   : > { %v2317_v49 = vadd.f32 %v2315_v45, %v2313_v37  ;;  %v2316_v50 = vmul.f32 %v2312_v44, %v2306_v47  ;;  %4554 = vmatprep.subr.bf16.mxu1 %v5198_v31  ;;  %v5201_v44 = vld [vmem:[%s7316_s10] sm:$0xff]  }
 0x5fe   : > { %v2318_v51 = vrot.slane %v2317_v49, 4  ;;  %v2324_v52 = vadd.f32 %v2316_v50, %v2314_v48 }
 0x5ff   : > { %4555 = vmatpush3.bf16.msra.mxu1 %v5199_v42 }
 0x600   : > { %v2319_v54 = vadd.f32 %v2318_v51, %v2317_v49  ;;  %v2325_v55 = vrot.slane %v2324_v52, 4  ;;  %4556 = vmatprep.subr.bf16.mxu1 %v5200_v43 }
 0x602   : > { %v2320_v56 = vrot.slane %v2319_v54, 2  ;;  %v2326_v57 = vadd.f32 %v2325_v55, %v2324_v52 }
 0x603   : > { %4557 = vmatpush3.bf16.msra.mxu1 %v5201_v44 }
 0x604   : > { %v2321_v60 = vadd.f32 %v2320_v56, %v2319_v54  ;;  %v2327_v61 = vrot.slane %v2326_v57, 2  ;;  %4753 = vmatprep.subr.bf16.mxu1 %v6036_v35 }
 0x606   : > { %v2322_v62 = vrot.slane %v2321_v60, 1  ;;  %v2328_v63 = vadd.f32 %v2327_v61, %v2326_v57 }
 0x608   : > { %v2329_v1 = vrot.slane %v2328_v63, 1  ;;  %v2323_v2 = vadd.f32 %v2322_v62, %v2321_v60 }
 0x60a   : > { %v2330_v5 = vadd.f32 %v2329_v1, %v2328_v63  ;;  %v2366_v6 = vadd.f32 %v2365_v53, %v2323_v2  ;;  %v2370_v7 = vadd.f32 %v2369_v0, %v2323_v2  ;;  %v5202_v2 = vld [vmem:[#allocation8] sm:$0xff]  }
 0x60c   : > { %v2368_v9 = vadd.f32 %v2367_v58, %v2330_v5  ;;  %vm2374_vm4 = vcmp.ge.f32.partialorder %v2366_v6, 0.0  ;;  %v2378_v10 = vmul.f32 0.2, %v2366_v6  ;;  %v2372_v11 = vadd.f32 %v2371_v8, %v2330_v5  ;;  %v5205_v5 = vld [vmem:[#allocation9 + $0x28] sm:$0xff]  }
 0x60d   : > { %v2380_v15 = vmul.f32 0.2, %v2370_v7  ;;  %vm2376_vm9 = vcmp.ge.f32.partialorder %v2370_v7, 0.0 }
 0x60e   : > { %vm2375_vm7 = vcmp.ge.f32.partialorder %v2368_v9, 0.0  ;;  %v2379_v17 = vmul.f32 0.2, %v2368_v9  ;;  %v2382_v18 = vsel %vm2374_vm4, %v2366_v6, %v2378_v10  ;;  %vm2377_vm8 = vcmp.ge.f32.partialorder %v2372_v11, 0.0  ;;  %v5206_v6 = vld [vmem:[#allocation9 + $0x20] sm:$0xff]  }
 0x60f   : > { %v2381_v20 = vmul.f32 0.2, %v2372_v11  ;;  %v2390_v22 = vsel %vm2386_vm5, %v2382_v18, -1e+30  ;;  %v2384_v26 = vsel %vm2376_vm9, %v2370_v7, %v2380_v15  ;;  %v5207_v7 = vld [vmem:[#allocation9 + $0x18] sm:$0xff]  }
 0x610   : > { %v2383_v21 = vsel %vm2375_vm7, %v2368_v9, %v2379_v17  ;;  %v2392_v28 = vsel %vm2388_vm11, %v2384_v26, -1e+30 }
 0x611   : > { %v2391_v23 = vsel %vm2387_vm6, %v2383_v21, -1e+30  ;;  %v2385_v24 = vsel %vm2377_vm8, %v2372_v11, %v2381_v20 }
 0x612   : > { %v2394_v25 = vmax.f32 %v2390_v22, %v2391_v23  ;;  %v2393_v27 = vsel %vm2389_vm10, %v2385_v24, -1e+30  ;;  %v5210_v24 = vld [vmem:[#allocation9] sm:$0xff]  }
 0x613   : > { %v2397_v29 = vmax.f32 %v2392_v28, %v2393_v27 }
 0x614   : > { %2395 = vmax.xlane.f32.xlu0 %v2394_v25 }
 0x618   : > { %2398 = vmax.xlane.f32.xlu0 %v2397_v29 }
 0x69d   : > { %v2396_v37 = vpop.xlane.xlu0 %2395 }
 0x69e   : > { %v2400_v45 = vsub.f32 %v2390_v22, %v2396_v37  ;;  %v2401_v47 = vsub.f32 %v2391_v23, %v2396_v37  ;;  %v5208_v22 = vld [vmem:[#allocation9 + $0x10] sm:$0xff]   ;;  %v5209_v23 = vld [vmem:[#allocation9 + $0x8] sm:$0xff]   ;;  %v5215_v37 = vld [vmem:[%s6730_s15 + $0x38] sm:$0xff]  }
 0x6a0   : > { %v2404_v48 = vmul.f32 1.442695, %v2400_v45  ;;  %v2406_v49 = vmul.f32 1.442695, %v2401_v47  ;;  %v5216_v45 = vld [vmem:[%s6730_s15 + $0x30] sm:$0xff]   ;;  %v5217_v47 = vld [vmem:[%s6730_s15 + $0x28] sm:$0xff]  }
 0x6a1   : > { %v2399_v50 = vpop.xlane.xlu0 %2398 }
 0x6a2   : > { %v2402_v51 = vsub.f32 %v2392_v28, %v2399_v50  ;;  %v2403_v52 = vsub.f32 %v2393_v27, %v2399_v50  ;;  %5263 = vpow2.f32 %v2404_v48  ;;  %v5218_v48 = vld [vmem:[%s6730_s15 + $0x20] sm:$0xff]   ;;  %v5220_v50 = vld [vmem:[%s6730_s15 + $0x10] sm:$0xff]  }
 0x6a3   : > { %5265 = vpow2.f32 %v2406_v49  ;;  %v5219_v49 = vld [vmem:[%s6730_s15 + $0x18] sm:$0xff]  }
 0x6a4   : > { %v2408_v53 = vmul.f32 1.442695, %v2402_v51  ;;  %v2410_v54 = vmul.f32 1.442695, %v2403_v52  ;;  %v5221_v51 = vld [vmem:[%s6730_s15 + $0x8] sm:$0xff]   ;;  %v5222_v52 = vld [vmem:[%s6730_s15] sm:$0xff]  }
 0x6a5   : > { %s7323_s15 = sld [smem:[#allocation73_spill]] }
 0x6a6   : > { %5267 = vpow2.f32 %v2408_v53 }
 0x6a7   : > { %5269 = vpow2.f32 %v2410_v54 }
 0x6ab   : > { %s7324_s11 = smov %s7323_s15 }
 0x6af   : > { %v5264_v55 = vpop.eup %5263 }
 0x6b0   : > { %v5266_v56 = vpop.eup %5265  ;;  %v2412_v60 = vmul.f32 %v5264_v55, %v6933_v3  ;;  %v5203_v3 = vld [vmem:[#allocation9 + $0x38] sm:$0xff]  }
 0x6b1   : > { %v2413_v62 = vmul.f32 %v5266_v56, %v6936_v4  ;;  %v5204_v4 = vld [vmem:[#allocation9 + $0x30] sm:$0xff]  }
 0x6b3   : > { %v5268_v57 = vpop.eup %5267 }
 0x6b4   : > { %v5270_v58 = vpop.eup %5269  ;;  %v2414_v61 = vmul.f32 %v5268_v57, %v1703_v19  ;;  %v5211_v57 = vld [vmem:[%s6740_s7 + $0x18] sm:$0xff]  }
 0x6b5   : > { %v2415_v63 = vmul.f32 %v5270_v58, %v6941_v14 }
 0x6b6   : > { %v2448_v0 = vpack.c.bf16 %v2414_v61, %v2412_v60  ;;  %v5212_v60 = vld [vmem:[%s6740_s7 + $0x10] sm:$0xff]   ;;  %v5214_v61 = vld [vmem:[%s6740_s7] sm:$0xff]  }
 0x6b7   : > { %v2449_v1 = vpack.c.bf16 %v2415_v63, %v2413_v62 }
 0x6b9   : > { %2578 = vmatprep.mubr.bf16.mxu1 %v2449_v1  ;;  %2768 = vmatprep.mubr.bf16.mxu0 %v2449_v1  ;;  %v5224_v1 = vld [vmem:[%s6756_s5 + $0x38] sm:$0xff]  }
 0x6ba   : > { %2579 = vmatmul.mubr.bf16.vlgmr.msra.gmra.mxu1 %v2448_v0  ;;  %2769 = vmatmul.mubr.bf16.vlgmr.msra.gmra.mxu0 %v2448_v0  ;;  %v5223_v0 = vld [vmem:[%s6748_s8 + $0x38] sm:$0xff]  }
 0x6bb   : > { %4755 = vmatprep.mubr.msk.bf16.mxu1 %vm6037_vm2, %v6036_v35  ;;  %4795 = vmatprep.mubr.msk.bf16.mxu0 %vm6037_vm2, %v6036_v35 }
 0x6bc   : > { %4754 = vmatpush3.bf16.msra.mxu1 %v5202_v2  ;;  %4780 = vmatpush3.bf16.msra.mxu0 %v5203_v3 }
 0x6bd   : > { %4759 = vmatprep.subr.bf16.mxu1 %v6036_v35  ;;  %4781 = vmatprep.subr.bf16.mxu0 %v6036_v35 }
 0x6c0   : > { %4782 = vmatpush3.bf16.msra.mxu0 %v5204_v4 }
 0x6c1   : > { %4783 = vmatprep.subr.bf16.mxu0 %v6036_v35 }
 0x6c4   : > { %4784 = vmatpush3.bf16.msra.mxu0 %v5205_v5 }
 0x6c5   : > { %4785 = vmatprep.subr.bf16.mxu0 %v6036_v35 }
 0x6c8   : > { %4786 = vmatpush3.bf16.msra.mxu0 %v5206_v6 }
 0x6c9   : > { %4787 = vmatprep.subr.bf16.mxu0 %v6036_v35 }
 0x6cc   : > { %4788 = vmatpush3.bf16.msra.mxu0 %v5207_v7 }
 0x6cd   : > { %4789 = vmatprep.subr.bf16.mxu0 %v6036_v35 }
 0x6d0   : > { %4790 = vmatpush3.bf16.msra.mxu0 %v5208_v22 }
 0x6d1   : > { %4791 = vmatprep.subr.bf16.mxu0 %v6036_v35 }
 0x6d4   : > { %4792 = vmatpush3.bf16.msra.mxu0 %v5209_v23 }
 0x6d5   : > { %4793 = vmatprep.subr.bf16.mxu0 %v6036_v35 }
 0x6d8   : > { %4794 = vmatpush3.bf16.msra.mxu0 %v5210_v24 }
 0x6d9   : > { %4819 = vmatprep.subr.bf16.mxu0 %v6036_v35 }
 0x77a   : > { %v4558_v8 = vpop.f32.mrf.mxu1  ;;  %v4580_v25 = vpop.f32.mrf.mxu0 }
 0x77c   : > { %v4559_v9 = vpop.f32.mrf.mxu1  ;;  %v4581_v26 = vpop.f32.mrf.mxu0 }
 0x77d   : > { %v4560_v10 = vadd.f32 %v4559_v9, %v4558_v8  ;;  %v4582_v28 = vadd.f32 %v4581_v26, %v4580_v25  ;;  %v5230_v8 = vld [vmem:[%s6756_s5 + $0x20] sm:$0xff]   ;;  %v5231_v9 = vld [vmem:[%s6748_s8 + $0x18] sm:$0xff]  }
 0x77e   : > { %v4561_v11 = vpop.f32.mrf.mxu1  ;;  %v4583_v27 = vpop.f32.mrf.mxu0 }
 0x77f   : > { %v2587_v14 = vmax.f32 %v4560_v10, 1e-09  ;;  %v2831_v32 = vmax.f32 %v4582_v28, 0.0  ;;  %v5232_v10 = vld [vmem:[%s6756_s5 + $0x18] sm:$0xff]  }
 0x780   : > { %v4562_v15 = vpop.f32.mrf.mxu1  ;;  %v4584_v29 = vpop.f32.mrf.mxu0 }
 0x781   : > { %v4563_v17 = vadd.f32 %v4562_v15, %v4561_v11  ;;  %5271 = vrcp.f32 %v2587_v14  ;;  %v4585_v33 = vadd.f32 %v4584_v29, %v4583_v27  ;;  %v5233_v11 = vld [vmem:[%s6748_s8 + $0x10] sm:$0xff]   ;;  %v5235_v15 = vld [vmem:[%s6748_s8 + $0x8] sm:$0xff]  }
 0x782   : > { %v5234_v14 = vld [vmem:[%s6756_s5 + $0x10] sm:$0xff]  }
 0x783   : > { %v2588_v18 = vmax.f32 %v4563_v17, 1e-09  ;;  %v2832_v39 = vmax.f32 %v4585_v33, 0.0  ;;  %v5236_v17 = vld [vmem:[%s6756_s5 + $0x8] sm:$0xff]  }
 0x785   : > { %5273 = vrcp.f32 %v2588_v18  ;;  %v5237_v18 = vld [vmem:[%s6748_s8] sm:$0xff]  }
 0x78e   : > { %v5272_v19 = vpop.eup %5271 }
 0x792   : > { %v5274_v20 = vpop.eup %5273 }
 0x793   : > { %v2779_v21 = vpack.c.bf16 %v5274_v20, %v5272_v19  ;;  %v5238_v19 = vld [vmem:[%s6756_s5] sm:$0xff]  }
 0x795   : > { %4756 = vmatmul.mubr.msk.bf16.vlgmr.msra.gmra.mxu1 %vm2786_vm12, %v2779_v21 }
 0x796   : > { %4760 = vmatpush3.bf16.msra.mxu1 %v5203_v3  ;;  %4775 = vmatprep.mubr.msk.bf16.mxu1 %vm6037_vm2, %v6036_v35 }
 0x797   : > { %4761 = vmatprep.subr.bf16.mxu1 %v6036_v35 }
 0x79a   : > { %4762 = vmatpush3.bf16.msra.mxu1 %v5204_v4  ;;  %v5226_v4 = vld [vmem:[%s6756_s5 + $0x30] sm:$0xff]  }
 0x79b   : > { %4763 = vmatprep.subr.bf16.mxu1 %v6036_v35 }
 0x79e   : > { %4764 = vmatpush3.bf16.msra.mxu1 %v5205_v5  ;;  %v5227_v5 = vld [vmem:[%s6748_s8 + $0x28] sm:$0xff]  }
 0x79f   : > { %4765 = vmatprep.subr.bf16.mxu1 %v6036_v35 }
 0x7a2   : > { %4766 = vmatpush3.bf16.msra.mxu1 %v5206_v6  ;;  %v5228_v6 = vld [vmem:[%s6756_s5 + $0x28] sm:$0xff]   ;;  %s7322_s5 = sld [smem:[#allocation60_spill]] }
 0x7a3   : > { %4767 = vmatprep.subr.bf16.mxu1 %v6036_v35 }
 0x7a6   : > { %4768 = vmatpush3.bf16.msra.mxu1 %v5207_v7  ;;  %v5229_v7 = vld [vmem:[%s6748_s8 + $0x20] sm:$0xff]  }
 0x7a7   : > { %4769 = vmatprep.subr.bf16.mxu1 %v6036_v35 }
 0x7aa   : > { %4770 = vmatpush3.bf16.msra.mxu1 %v5208_v22 }
 0x7ab   : > { %4771 = vmatprep.subr.bf16.mxu1 %v6036_v35 }
 0x7ae   : > { %4772 = vmatpush3.bf16.msra.mxu1 %v5209_v23 }
 0x7af   : > { %4773 = vmatprep.subr.bf16.mxu1 %v6036_v35 }
 0x7b2   : > { %4774 = vmatpush3.bf16.msra.mxu1 %v5210_v24 }
 0x7b3   : > { %4799 = vmatprep.subr.bf16.mxu1 %v6036_v35 }
 0x855   : > { %v2824_v34 = vpop.f32.mrf.mxu1 }
 0x856   : > { %v6985_v36 = vmul.f32 %v2831_v32, %v2824_v34 }
 0x857   : > { %v4757_v38 = vpop.f32.mrf.mxu1 }
 0x858   : > { %2835 = vrot.lane.b32.xlu1 %v6985_v36, %s6039_s2  ;;  %v2846_v42 = vmul.f32 %v4428_v40, %v6985_v36 }
 0x859   : > { %v2827_v30 = vpop.f32.mrf.mxu1 }
 0x85a   : > { %v6991_v41 = vmul.f32 %v2832_v39, %v2827_v30 }
 0x85b   : > { %v4758_v31 = vpop.f32.mrf.mxu1 }
 0x85c   : > { %v2847_v43 = vmul.f32 %v4428_v40, %v6991_v41  ;;  %2837 = vrot.lane.b32.xlu1 %v6991_v41, %s6039_s2 }
 0x85e   : > { %v2864_v44 = vpack.c.bf16 %v2847_v43, %v2846_v42 }
 0x860   : > { %4776 = vmatmul.mubr.bf16.vlgmr.msra.gmra.mxu1 %v2864_v44 }
 0x861   : > { %4815 = vmatprep.mubr.msk.bf16.mxu1 %vm6037_vm2, %v6036_v35  ;;  %4800 = vmatpush3.bf16.msra.mxu1 %v5215_v37 }
 0x862   : > { %4801 = vmatprep.subr.bf16.mxu1 %v6036_v35 }
 0x865   : > { %4802 = vmatpush3.bf16.msra.mxu1 %v5216_v45 }
 0x866   : > { %4803 = vmatprep.subr.bf16.mxu1 %v6036_v35 }
 0x869   : > { %4804 = vmatpush3.bf16.msra.mxu1 %v5217_v47 }
 0x86a   : > { %4805 = vmatprep.subr.bf16.mxu1 %v6036_v35 }
 0x86d   : > { %4806 = vmatpush3.bf16.msra.mxu1 %v5218_v48 }
 0x86e   : > { %4807 = vmatprep.subr.bf16.mxu1 %v6036_v35 }
 0x871   : > { %4808 = vmatpush3.bf16.msra.mxu1 %v5219_v49 }
 0x872   : > { %4809 = vmatprep.subr.bf16.mxu1 %v6036_v35 }
 0x875   : > { %4810 = vmatpush3.bf16.msra.mxu1 %v5220_v50 }
 0x876   : > { %4811 = vmatprep.subr.bf16.mxu1 %v6036_v35 }
 0x879   : > { %4812 = vmatpush3.bf16.msra.mxu1 %v5221_v51 }
 0x87a   : > { %4813 = vmatprep.subr.bf16.mxu1 %v6036_v35 }
 0x87d   : > { %4814 = vmatpush3.bf16.msra.mxu1 %v5222_v52 }
 0x87e   : > { %4851 = vmatprep.subr.bf16.mxu1 %v6036_v35 }
 0x880   : > { %4816 = vmatmul.mubr.bf16.vlgmr.msra.gmra.mxu1 %v6829_v59  ;;  %v5213_v59 = vld [vmem:[%s6740_s7 + $0x8] sm:$0xff]   ;;  %s7319_s7 = scalar_lea.vmem [#allocation24], %s6702_s14 }
 0x881   : > { %4867 = vmatprep.mubr.msk.bf16.mxu1 %vm6037_vm2, %v6036_v35  ;;  %4852 = vmatpush3.bf16.msra.mxu1 %v5224_v1  ;;  %v3052_v20 = vld [vmem:[%s7319_s7] sm:$0x1] }
 0x882   : > { %4853 = vmatprep.subr.bf16.mxu1 %v6036_v35 }
 0x885   : > { %4854 = vmatpush3.bf16.msra.mxu1 %v5226_v4 }
 0x886   : > { %4855 = vmatprep.subr.bf16.mxu1 %v6036_v35 }
 0x889   : > { %4856 = vmatpush3.bf16.msra.mxu1 %v5228_v6 }
 0x88a   : > { %4857 = vmatprep.subr.bf16.mxu1 %v6036_v35 }
 0x88d   : > { %4858 = vmatpush3.bf16.msra.mxu1 %v5230_v8 }
 0x88e   : > { %4859 = vmatprep.subr.bf16.mxu1 %v6036_v35 }
 0x891   : > { %4860 = vmatpush3.bf16.msra.mxu1 %v5232_v10 }
 0x892   : > { %4861 = vmatprep.subr.bf16.mxu1 %v6036_v35 }
 0x895   : > { %4862 = vmatpush3.bf16.msra.mxu1 %v5234_v14  ;;  %v5245_v14 = vld [vmem:[%s6764_s9 + $0x8] sm:$0xff]  }
 0x896   : > { %4863 = vmatprep.subr.bf16.mxu1 %v6036_v35 }
 0x899   : > { %4864 = vmatpush3.bf16.msra.mxu1 %v5236_v17 }
 0x89a   : > { %4865 = vmatprep.subr.bf16.mxu1 %v6036_v35 }
 0x89d   : > { %4866 = vmatpush3.bf16.msra.mxu1 %v5238_v19  ;;  %v5248_v19 = vld [vmem:[#allocation9 + $0x30] sm:$0xff]  }
 0x89e   : > { %4891 = vmatprep.subr.bf16.mxu1 %v6036_v35 }
 0x8ca   : > { %v7018_v53 = vpop.permute.xlu1 %2835 }
 0x8cb   : > { %v2960_v55 = vmul.f32 %v4428_v40, %v7018_v53 }
 0x8ce   : > { %v7020_v54 = vpop.permute.xlu1 %2837 }
 0x8cf   : > { %v2961_v56 = vmul.f32 %v4428_v40, %v7020_v54 }
 0x8d1   : > { %v2962_v58 = vpack.c.bf16 %v2961_v56, %v2960_v55 }
 0x8d3   : > { %4796 = vmatmul.mubr.bf16.vlgmr.msra.gmra.mxu0 %v2962_v58 }
 0x8d4   : > { %4820 = vmatpush3.bf16.msra.mxu0 %v5211_v57  ;;  %4827 = vmatprep.mubr.msk.bf16.mxu0 %vm6037_vm2, %v6036_v35 }
 0x8d5   : > { %4821 = vmatprep.subr.bf16.mxu0 %v6036_v35 }
 0x8d8   : > { %4822 = vmatpush3.bf16.msra.mxu0 %v5212_v60 }
 0x8d9   : > { %4823 = vmatprep.subr.bf16.mxu0 %v6036_v35 }
 0x8dc   : > { %4824 = vmatpush3.bf16.msra.mxu0 %v5213_v59 }
 0x8dd   : > { %4825 = vmatprep.subr.bf16.mxu0 %v6036_v35 }
 0x8e0   : > { %4826 = vmatpush3.bf16.msra.mxu0 %v5214_v61 }
 0x8e1   : > { %4831 = vmatprep.subr.bf16.mxu0 %v6036_v35 }
 0x8e3   : > { %4828 = vmatmul.mubr.msk.bf16.vlgmr.msra.gmra.mxu0 %vm1745_vm3, %v6855_v16  ;;  %v5225_v16 = vld [vmem:[%s6748_s8 + $0x30] sm:$0xff]   ;;  %s7321_s8 = scalar_lea.vmem [#allocation29], %s6702_s14 }
 0x8e4   : > { %4847 = vmatprep.mubr.msk.bf16.mxu0 %vm6037_vm2, %v6036_v35  ;;  %4832 = vmatpush3.bf16.msra.mxu0 %v5223_v0 }
 0x8e5   : > { %4833 = vmatprep.subr.bf16.mxu0 %v6036_v35 }
 0x8e8   : > { %4834 = vmatpush3.bf16.msra.mxu0 %v5225_v16 }
 0x8e9   : > { %4835 = vmatprep.subr.bf16.mxu0 %v6036_v35 }
 0x8ec   : > { %4836 = vmatpush3.bf16.msra.mxu0 %v5227_v5 }
 0x8ed   : > { %4837 = vmatprep.subr.bf16.mxu0 %v6036_v35 }
 0x8f0   : > { %4838 = vmatpush3.bf16.msra.mxu0 %v5229_v7 }
 0x8f1   : > { %4839 = vmatprep.subr.bf16.mxu0 %v6036_v35 }
 0x8f4   : > { %4840 = vmatpush3.bf16.msra.mxu0 %v5231_v9  ;;  %v5239_v9 = vld [vmem:[%s6764_s9 + $0x38] sm:$0xff]  }
 0x8f5   : > { %4841 = vmatprep.subr.bf16.mxu0 %v6036_v35 }
 0x8f8   : > { %4842 = vmatpush3.bf16.msra.mxu0 %v5233_v11  ;;  %v5244_v11 = vld [vmem:[%s6764_s9 + $0x10] sm:$0xff]  }
 0x8f9   : > { %4843 = vmatprep.subr.bf16.mxu0 %v6036_v35 }
 0x8fc   : > { %4844 = vmatpush3.bf16.msra.mxu0 %v5235_v15  ;;  %v5246_v15 = vld [vmem:[%s6764_s9] sm:$0xff]  }
 0x8fd   : > { %4845 = vmatprep.subr.bf16.mxu0 %v6036_v35 }
 0x900   : > { %4846 = vmatpush3.bf16.msra.mxu0 %v5237_v18  ;;  %v5247_v18 = vld [vmem:[#allocation9 + $0x38] sm:$0xff]  }
 0x901   : > { %4871 = vmatprep.subr.bf16.mxu0 %v6036_v35 }
 0x920   : > { %v7038_v62 = vpop.f32.mrf.mxu1 }
 0x921   : > { %v2956_v26 = vmul.f32 0.2, %v7038_v62  ;;  %vm2954_vm13 = vcmp.ge.f32.partialorder %v7038_v62, 0.0 }
 0x922   : > { %v4777_v63 = vpop.f32.mrf.mxu1 }
 0x923   : > { %v2958_v32 = vsel %vm2954_vm13, %v7038_v62, %v2956_v26 }
 0x924   : > { %v7042_v2 = vpop.f32.mrf.mxu1 }
 0x925   : > { %v2957_v33 = vmul.f32 0.2, %v7042_v2  ;;  %vm2955_vm15 = vcmp.ge.f32.partialorder %v7042_v2, 0.0 }
 0x926   : > { %v4778_v3 = vpop.f32.mrf.mxu1 }
 0x927   : > { %v2959_v43 = vsel %vm2955_vm15, %v7042_v2, %v2957_v33 }
 0x940   : > { %v3135_v21 = vpop.f32.mrf.mxu1 }
 0x941   : > { %v7076_v22 = vadd.f32 %v3135_v21, %v3052_v20  ;;  %v5249_v20 = vld [vmem:[#allocation9 + $0x28] sm:$0xff]   ;;  %v5250_v21 = vld [vmem:[#allocation9 + $0x20] sm:$0xff]  }
 0x942   : > { %v4817_v23 = vpop.f32.mrf.mxu1 }
 0x943   : > { %3141 = vst [vmem:[#allocation3] sm:$0x1] %v7076_v22  ;;  %v3463_v17 = vpack.c.bf16 %v7076_v22, %v7076_v22  ;;  %v5251_v22 = vld [vmem:[#allocation9 + $0x18] sm:$0xff]   ;;  %v5252_v23 = vld [vmem:[#allocation9 + $0x10] sm:$0xff]  }
 0x944   : > { %v3138_v24 = vpop.f32.mrf.mxu1 }
 0x945   : > { %v5253_v24 = vld [vmem:[#allocation9 + $0x8] sm:$0xff]  }
 0x946   : > { %v4818_v25 = vpop.f32.mrf.mxu1 }
 0x947   : > { %v5254_v25 = vld [vmem:[#allocation9] sm:$0xff]  }
 0x993   : > { %v2997_v27 = vpop.f32.mrf.mxu0 }
 0x994   : > { %vm3004_vm14 = vcmp.ge.f32.partialorder %v2997_v27, 0.0  ;;  %v3006_v28 = vmul.f32 0.2, %v2997_v27 }
 0x995   : > { %v4797_v29 = vpop.f32.mrf.mxu0 }
 0x996   : > { %v3008_v34 = vsel %vm3004_vm14, %v2997_v27, %v3006_v28 }
 0x997   : > { %v3010_v38 = vmax.f32 %v2958_v32, %v3008_v34  ;;  %v3000_v39 = vpop.f32.mrf.mxu0 }
 0x998   : > { %vm3005_vm0 = vcmp.ge.f32.partialorder %v3000_v39, 0.0  ;;  %v3007_v40 = vmul.f32 0.2, %v3000_v39 }
 0x999   : > { %v3012_v30 = vsub.f32 %v2958_v32, %v3010_v38  ;;  %v3018_v31 = vsub.f32 %v3008_v34, %v3010_v38  ;;  %v4798_v42 = vpop.f32.mrf.mxu0 }
 0x99a   : > { %v3009_v44 = vsel %vm3005_vm0, %v3000_v39, %v3007_v40  ;;  %v4445_v40 = vld [vmem:[%s7321_s8] ss:$0 sm:$0xff] }
 0x99b   : > { %v3014_v37 = vmul.f32 1.442695, %v3012_v30  ;;  %v3020_v45 = vmul.f32 1.442695, %v3018_v31  ;;  %v3011_v47 = vmax.f32 %v2959_v43, %v3009_v44 }
 0x99d   : > { %5275 = vpow2.f32 %v3014_v37  ;;  %v3013_v48 = vsub.f32 %v2959_v43, %v3011_v47  ;;  %v3019_v49 = vsub.f32 %v3009_v44, %v3011_v47 }
 0x99e   : > { %5277 = vpow2.f32 %v3020_v45 }
 0x99f   : > { %v3016_v50 = vmul.f32 1.442695, %v3013_v48  ;;  %v3022_v51 = vmul.f32 1.442695, %v3019_v49 }
 0x9a1   : > { %5279 = vpow2.f32 %v3016_v50 }
 0x9a2   : > { %5281 = vpow2.f32 %v3022_v51 }
 0x9a3   : > { %v7085_v52 = vpop.f32.mrf.mxu0 }
 0x9a4   : > { %v3216_v37 = vadd.f32 %v4445_v40, %v7085_v52 }
 0x9a5   : > { %v4829_v55 = vpop.f32.mrf.mxu0 }
 0x9a7   : > { %v7087_v56 = vpop.f32.mrf.mxu0 }
 0x9a8   : > { %v3219_v45 = vadd.f32 %v4445_v40, %v7087_v56 }
 0x9a9   : > { %v4830_v57 = vpop.f32.mrf.mxu0 }
 0x9aa   : > { %v5276_v58 = vpop.eup %5275 }
 0x9ab   : > { %v5278_v60 = vpop.eup %5277  ;;  %v3028_v0 = vmul.f32 %v5276_v58, %v6985_v36  ;;  %v5240_v36 = vld [vmem:[%s6764_s9 + $0x30] sm:$0xff]  }
 0x9ac   : > { %v3024_v59 = vadd.f32 %v5278_v60, %v5276_v58  ;;  %v3030_v2 = vmul.f32 %v5278_v60, %v7018_v53  ;;  %v5242_v53 = vld [vmem:[%s6764_s9 + $0x20] sm:$0xff]  }
 0x9ae   : > { %v5280_v61 = vpop.eup %5279  ;;  %5283 = vrcp.f32 %v3024_v59  ;;  %v3032_v4 = vadd.f32 %v3030_v2, %v3028_v0  ;;  %v5255_v2 = vld [vmem:[%s7322_s5 + $0x38] sm:$0xff]  }
 0x9af   : > { %v5282_v62 = vpop.eup %5281  ;;  %v3029_v1 = vmul.f32 %v5280_v61, %v6991_v41  ;;  %v5241_v41 = vld [vmem:[%s6764_s9 + $0x28] sm:$0xff]  }
 0x9b0   : > { %v3025_v63 = vadd.f32 %v5282_v62, %v5280_v61  ;;  %v3031_v3 = vmul.f32 %v5282_v62, %v7020_v54  ;;  %v5243_v54 = vld [vmem:[%s6764_s9 + $0x18] sm:$0xff]   ;;  %s7320_s9 = scalar_lea.vmem [#allocation32], %s6702_s14 }
 0x9b1   : > { %v4451_v39 = vld [vmem:[%s7320_s9] ss:$0 sm:$0xff] }
 0x9b2   : > { %5285 = vrcp.f32 %v3025_v63  ;;  %v3033_v5 = vadd.f32 %v3031_v3, %v3029_v1  ;;  %v5256_v3 = vld [vmem:[%s7322_s5 + $0x30] sm:$0xff]  }
 0x9bb   : > { %v5284_v16 = vpop.eup %5283 }
 0x9bc   : > { %v3034_v7 = vmul.f32 %v5284_v16, %v3032_v4 }
 0x9bf   : > { %v5286_v6 = vpop.eup %5285 }
 0x9c0   : > { %v3035_v8 = vmul.f32 %v5286_v6, %v3033_v5 }
 0x9c2   : > { %v3238_v10 = vpack.c.bf16 %v3035_v8, %v3034_v7 }
 0x9c4   : > { %4848 = vmatmul.mubr.bf16.vlgmr.msra.gmra.mxu0 %v3238_v10  ;;  %4868 = vmatmul.mubr.bf16.vlgmr.msra.gmra.mxu1 %v3238_v10 }
 0x9c5   : > { %4872 = vmatpush3.bf16.msra.mxu0 %v5239_v9  ;;  %4887 = vmatprep.mubr.msk.bf16.mxu0 %vm6037_vm2, %v6036_v35 }
 0x9c6   : > { %4873 = vmatprep.subr.bf16.mxu0 %v6036_v35  ;;  %4907 = vmatprep.mubr.msk.bf16.mxu1 %vm6037_vm2, %v6036_v35 }
 0x9c7   : > { %4892 = vmatpush3.bf16.msra.mxu1 %v5247_v18 }
 0x9c8   : > { %4893 = vmatprep.subr.bf16.mxu1 %v6036_v35 }
 0x9c9   : > { %4874 = vmatpush3.bf16.msra.mxu0 %v5240_v36  ;;  %v5257_v36 = vld [vmem:[%s7322_s5 + $0x28] sm:$0xff]  }
 0x9ca   : > { %4875 = vmatprep.subr.bf16.mxu0 %v6036_v35 }
 0x9cb   : > { %4894 = vmatpush3.bf16.msra.mxu1 %v5248_v19 }
 0x9cc   : > { %4895 = vmatprep.subr.bf16.mxu1 %v6036_v35 }
 0x9cd   : > { %4876 = vmatpush3.bf16.msra.mxu0 %v5241_v41  ;;  %v5258_v41 = vld [vmem:[%s7322_s5 + $0x20] sm:$0xff]  }
 0x9ce   : > { %4877 = vmatprep.subr.bf16.mxu0 %v6036_v35 }
 0x9cf   : > { %4896 = vmatpush3.bf16.msra.mxu1 %v5249_v20 }
 0x9d0   : > { %4897 = vmatprep.subr.bf16.mxu1 %v6036_v35 }
 0x9d1   : > { %4878 = vmatpush3.bf16.msra.mxu0 %v5242_v53  ;;  %v5259_v53 = vld [vmem:[%s7322_s5 + $0x18] sm:$0xff]  }
 0x9d2   : > { %4879 = vmatprep.subr.bf16.mxu0 %v6036_v35 }
 0x9d3   : > { %4898 = vmatpush3.bf16.msra.mxu1 %v5250_v21 }
 0x9d4   : > { %4899 = vmatprep.subr.bf16.mxu1 %v6036_v35 }
 0x9d5   : > { %4880 = vmatpush3.bf16.msra.mxu0 %v5243_v54  ;;  %v5260_v54 = vld [vmem:[%s7322_s5 + $0x10] sm:$0xff]  }
 0x9d6   : > { %4881 = vmatprep.subr.bf16.mxu0 %v6036_v35 }
 0x9d7   : > { %4900 = vmatpush3.bf16.msra.mxu1 %v5251_v22 }
 0x9d8   : > { %4901 = vmatprep.subr.bf16.mxu1 %v6036_v35 }
 0x9d9   : > { %4882 = vmatpush3.bf16.msra.mxu0 %v5244_v11 }
 0x9da   : > { %4883 = vmatprep.subr.bf16.mxu0 %v6036_v35 }
 0x9db   : > { %4902 = vmatpush3.bf16.msra.mxu1 %v5252_v23  ;;  %v4460_v23 = vld [vmem:[%s1421_s6] ss:$0 sm:$0xff] }
 0x9dc   : > { %4903 = vmatprep.subr.bf16.mxu1 %v6036_v35 }
 0x9dd   : > { %4884 = vmatpush3.bf16.msra.mxu0 %v5245_v14  ;;  %v5261_v14 = vld [vmem:[%s7322_s5 + $0x8] sm:$0xff]  }
 0x9de   : > { %4885 = vmatprep.subr.bf16.mxu0 %v6036_v35 }
 0x9df   : > { %4904 = vmatpush3.bf16.msra.mxu1 %v5253_v24 }
 0x9e0   : > { %4905 = vmatprep.subr.bf16.mxu1 %v6036_v35 }
 0x9e1   : > { %4886 = vmatpush3.bf16.msra.mxu0 %v5246_v15 }
 0x9e2   : > { %4911 = vmatprep.subr.bf16.mxu0 %v6036_v35 }
 0x9e3   : > { %4906 = vmatpush3.bf16.msra.mxu1 %v5254_v25 }
 0x9e4   : > { %4888 = vmatmul.mubr.bf16.vlgmr.msra.gmra.mxu0 %v3463_v17  ;;  %v5262_v17 = vld [vmem:[%s7322_s5] sm:$0xff]  }
 0x9e5   : > { %4927 = vmatprep.mubr.msk.bf16.mxu0 %vm6037_vm2, %v6036_v35  ;;  %4912 = vmatpush3.bf16.msra.mxu0 %v5255_v2 }
 0x9e6   : > { %4913 = vmatprep.subr.bf16.mxu0 %v6036_v35 }
 0x9e9   : > { %4914 = vmatpush3.bf16.msra.mxu0 %v5256_v3 }
 0x9ea   : > { %4915 = vmatprep.subr.bf16.mxu0 %v6036_v35 }
 0x9ed   : > { %4916 = vmatpush3.bf16.msra.mxu0 %v5257_v36 }
 0x9ee   : > { %4917 = vmatprep.subr.bf16.mxu0 %v6036_v35 }
 0x9f1   : > { %4918 = vmatpush3.bf16.msra.mxu0 %v5258_v41 }
 0x9f2   : > { %4919 = vmatprep.subr.bf16.mxu0 %v6036_v35 }
 0x9f5   : > { %4920 = vmatpush3.bf16.msra.mxu0 %v5259_v53 }
 0x9f6   : > { %4921 = vmatprep.subr.bf16.mxu0 %v6036_v35 }
 0x9f9   : > { %4922 = vmatpush3.bf16.msra.mxu0 %v5260_v54 }
 0x9fa   : > { %4923 = vmatprep.subr.bf16.mxu0 %v6036_v35 }
 0x9fd   : > { %4924 = vmatpush3.bf16.msra.mxu0 %v5261_v14 }
 0x9fe   : > { %4925 = vmatprep.subr.bf16.mxu0 %v6036_v35 }
 0xa01   : > { %4926 = vmatpush3.bf16.msra.mxu0 %v5262_v17 }
 0xa84   : > { %v3328_v26 = vpop.f32.mrf.mxu0  ;;  %v7124_v27 = vpop.f32.mrf.mxu1 }
 0xa85   : > { %v3329_v31 = vadd.f32 %v4451_v39, %v3328_v26  ;;  %v3441_v26 = vadd.f32 %v4460_v23, %v7124_v27 }
 0xa86   : > { %v4849_v28 = vpop.f32.mrf.mxu0  ;;  %v4869_v29 = vpop.f32.mrf.mxu1 }
 0xa88   : > { %v3331_v32 = vpop.f32.mrf.mxu0  ;;  %v7126_v33 = vpop.f32.mrf.mxu1 }
 0xa89   : > { %v3332_v42 = vadd.f32 %v4451_v39, %v3331_v32  ;;  %v3444_v28 = vadd.f32 %v4460_v23, %v7126_v33 }
 0xa8a   : > { %v4850_v34 = vpop.f32.mrf.mxu0  ;;  %v4870_v38 = vpop.f32.mrf.mxu1 }
 0xa8b   : > { %v3804_v38 = vld [vmem:[%s1438_s12] sm:$0x1] }
 0xa8c   : > { %v3813_v39 = vsub.f32 1.0, %v3804_v38 }
 0xa8e   : > { %v3818_v40 = vrot.slane %v3813_v39, %v6892_v46 }
 0xaa4   : > { %v3546_v30 = vpop.f32.mrf.mxu0 }
 0xaa5   : > { %v3555_v43 = vrot.slane %v3546_v30, %v6892_v46  ;;  %v3809_v30 = vrot.slane %v3804_v38, %v6892_v46 }
 0xaa6   : > { %v4889_v44 = vpop.f32.mrf.mxu0 }
 0xaa7   : > { %v3556_v47 = vadd.f32 %v3555_v43, %v3329_v31  ;;  %v3557_v48 = vadd.f32 %v3555_v43, %v3332_v42  ;;  %v3820_v42 = vmul.f32 %v3818_v40, %v6848_v12 }
 0xaa8   : > { %v3549_v49 = vpop.f32.mrf.mxu0 }
 0xaa9   : > { %v3558_v50 = vmul.f32 %v3556_v47, %v3216_v37  ;;  %v3559_v51 = vmul.f32 %v3557_v48, %v3219_v45  ;;  %v3821_v37 = vmul.f32 %v3818_v40, %v6850_v13 }
 0xaaa   : > { %v4890_v55 = vpop.f32.mrf.mxu0 }
 0xaab   : > { %v3576_v57 = vpack.c.bf16 %v3559_v51, %v3558_v50 }
 0xaad   : > { %4908 = vmatmul.mubr.bf16.vlgmr.msra.gmra.mxu1 %v3576_v57 }
 0xb6d   : > { %v3659_v58 = vpop.f32.mrf.mxu1 }
 0xb6e   : > { %v3666_v60 = vmul.f32 0.35355338, %v3659_v58 }
 0xb6f   : > { %v4909_v59 = vpop.f32.mrf.mxu1 }
 0xb70   : > { %v3670_v61 = vmul.f32 0.2, %v3666_v60  ;;  %vm3668_vm1 = vcmp.ge.f32.partialorder %v3666_v60, 0.0 }
 0xb71   : > { %v3662_v62 = vpop.f32.mrf.mxu1 }
 0xb72   : > { %v3667_v63 = vmul.f32 0.35355338, %v3662_v62  ;;  %v3672_v52 = vsel %vm3668_vm1, %v3666_v60, %v3670_v61 }
 0xb73   : > { %3674 = vrot.lane.b32.xlu0 %v3672_v52, %s6039_s2  ;;  %v4910_v56 = vpop.f32.mrf.mxu1 }
 0xb74   : > { %v3671_v0 = vmul.f32 0.2, %v3667_v63  ;;  %vm3669_vm2 = vcmp.ge.f32.partialorder %v3667_v63, 0.0 }
 0xb76   : > { %v3673_v1 = vsel %vm3669_vm2, %v3667_v63, %v3671_v0 }
 0xb77   : > { %3676 = vrot.lane.b32.xlu1 %v3673_v1, %s6039_s2 }
 0xbe5   : > { %v3675_v16 = vpop.permute.xlu0 %3674 }
 0xbe6   : > { %v3678_v4 = vmax.f32 %v3672_v52, %v3675_v16 }
 0xbe8   : > { %v3680_v5 = vsub.f32 %v3672_v52, %v3678_v4 }
 0xbe9   : > { %v3677_v6 = vpop.permute.xlu1 %3676 }
 0xbea   : > { %v3682_v7 = vmul.f32 1.442695, %v3680_v5  ;;  %v3679_v8 = vmax.f32 %v3673_v1, %v3677_v6 }
 0xbec   : > { %5287 = vpow2.f32 %v3682_v7  ;;  %v3681_v9 = vsub.f32 %v3673_v1, %v3679_v8 }
 0xbee   : > { %v3684_v10 = vmul.f32 1.442695, %v3681_v9 }
 0xbf0   : > { %5289 = vpow2.f32 %v3684_v10 }
 0xbf9   : > { %v5288_v11 = vpop.eup %5287 }
 0xbfa   : > { %3686 = vrot.lane.b32.xlu1 %v5288_v11, %s6039_s2 }
 0xbfd   : > { %v5290_v15 = vpop.eup %5289 }
 0xbfe   : > { %3688 = vrot.lane.b32.xlu1 %v5290_v15, %s6039_s2 }
 0xc6c   : > { %v3687_v18 = vpop.permute.xlu1 %3686 }
 0xc6d   : > { %v3690_v19 = vadd.f32 %v5288_v11, %v3687_v18 }
 0xc6f   : > { %5291 = vrcp.f32 %v3690_v19 }
 0xc70   : > { %v3689_v20 = vpop.permute.xlu1 %3688 }
 0xc71   : > { %v3691_v21 = vadd.f32 %v5290_v15, %v3689_v20 }
 0xc73   : > { %5293 = vrcp.f32 %v3691_v21 }
 0xc7c   : > { %v5292_v22 = vpop.eup %5291 }
 0xc7d   : > { %v3694_v24 = vmul.f32 %v5292_v22, %v5288_v11 }
 0xc7f   : > { %v3696_v32 = vmul.f32 %v3694_v24, %v3441_v26 }
 0xc80   : > { %v5294_v25 = vpop.eup %5293 }
 0xc81   : > { %v3695_v29 = vmul.f32 %v5294_v25, %v5290_v15 }
 0xc83   : > { %v3697_v35 = vmul.f32 %v3695_v29, %v3444_v28 }
 0xc85   : > { %v3714_v34 = vpack.c.bf16 %v3697_v35, %v3696_v32 }
 0xc87   : > { %4928 = vmatmul.mubr.bf16.vlgmr.msra.gmra.mxu0 %v3714_v34 }
 0xd47   : > { %v3797_v31 = vpop.f32.mrf.mxu0 }
 0xd48   : > { %v3811_v27 = vmul.f32 %v3809_v30, %v3797_v31 }
 0xd49   : > { %v4929_v43 = vpop.f32.mrf.mxu0 }
 0xd4a   : > { %v3822_v33 = vadd.f32 %v3820_v42, %v3811_v27 }
 0xd4b   : > { %v3800_v44 = vpop.f32.mrf.mxu0 }
 0xd4c   : > { %3824 = vst.msk [vmem:[#allocation2] sm:$0xff] %vm1745_vm3, %v3822_v33  ;;  %v3826_v45 = vsel %vm1745_vm3, %v3822_v33, 0.0  ;;  %v3812_v47 = vmul.f32 %v3809_v30, %v3800_v44 }
 0xd4d   : > { %3828 = vst [vmem:[%s7323_s15] sm:$0xff] %v3826_v45  ;;  %v4930_v48 = vpop.f32.mrf.mxu0 }
 0xd4e   : > { %v3823_v49 = vadd.f32 %v3821_v37, %v3812_v47 }
 0xd50   : > { %3825 = vst.msk [vmem:[#allocation2 + $0x8] sm:$0xff] %vm1745_vm3, %v3823_v49  ;;  %v3827_v46 = vsel %vm1745_vm3, %v3823_v49, 0.0 }
 0xd51   : > { %3829 = vst [vmem:[%s7324_s11 + $0x8] sm:$0xff] %v3827_v46 }
 0xd52 PF: > { %s7325_s18 = sld [smem:[#allocation76_spill]]  ;;  %s7328_s15 = smov %s5967_s16 }
 0xd53   : > { %s7326_s0 = sld [smem:[#allocation74_spill]] }
 0xd54   : > { %s7327_s12 = sld [smem:[#allocation77_spill]] }
 0xd58   : > { %p96_p7 = scmp.ge.s32.totalorder %s7325_s18, 4  }
 0xd5a   : > { %s7329_s16 = smov %s7327_s12  ;;  %98 = sbr.rel (!%p96_p7) target bundleno = 77 (0x4d), region = 421 }
 0xd5f   :  { %3841 = vsyncpa [#allocation5], 1 }
 0xd60   :  { %3843 = vsyncpa [#allocation5 + $0x1], 1 }
 0xd61   :  { %3844 = vsyncpa [#allocation7], 1 }
 0xd62   :  { %3845 = vsyncpa [#allocation10], 1 }
 0xd63   :  { %3846 = vsyncpa [#allocation13], 1 }
 0xd64   :  { %3847 = vsyncpa [#allocation16], 1 }
 0xd65   :  { %3849 = vsyncpa [#allocation16 + $0x1], 1 }
 0xd66   :  { %3850 = vsyncpa [#allocation19], 1 }
 0xd67   :  { %3852 = vsyncpa [#allocation19 + $0x1], 1 }
 0xd68   :  { %3853 = vsyncpa [#allocation22], 1 }
 0xd69   :  { %3855 = vsyncpa [#allocation22 + $0x1], 1 }
 0xd6a   :  { %3856 = vsyncpa [#allocation25], 1 }
 0xd6b   :  { %3858 = vsyncpa [#allocation25 + $0x1], 1 }
 0xd6c   :  { %3859 = vsyncpa [#allocation28], 1 }
 0xd6d   :  { %3861 = vsyncpa [#allocation28 + $0x1], 1 }
 0xd6e   :  { %3862 = vsyncpa [#allocation31], 1 }
 0xd6f   :  { %3864 = vsyncpa [#allocation31 + $0x1], 1 }
 0xd70   :  { %3865 = vsyncpa [#allocation34], 1 }
 0xd71   :  { %3867 = vsyncpa [#allocation34 + $0x1], 1 }
 0xd72   :  { %3868 = vsyncpa [#allocation37], 1 }
 0xd73   :  { %3870 = vsyncpa [#allocation37 + $0x1], 1 }

</bundles_post_ra>
